<compile_context>
chip_gen: v7x
topology: tpu7x:2x2x1
jax: 0.10.0
libtpu: 0.0.40
codegen_flags: <defaults>
</compile_context>

<pallas_src>
import math
import functools

import jax
import jax.numpy as jnp
from jax import lax
from jax.experimental import pallas as pl
from jax.experimental.pallas import tpu as pltpu


# ---------------------------------------------------------------------------
# Transformer-XL relative shift on a query tile of positional scores.
#
#   out[i, j] = pos[i,   j - i + T - 1]   if j <= i
#             = 0                          if j == i + 1
#             = pos[i+1, j - i - 2]        if j >= i + 2
#
# `pos_lo` holds pos-score rows for global query rows [row0, row0 + Tq) and
# `pos_up` the rows for [row0 + 1, row0 + Tq] (the extra row comes from the
# zero-padded query scratch and is never selected).  Implemented with static
# lane rotations selected per row (log2(T) steps) — no (T,T,T) selector and
# no in-kernel reshape/gather.
# ---------------------------------------------------------------------------
def _relative_shift(pos_lo, pos_up, row0, key_len):
    T = key_len
    _, Tq, _ = pos_lo.shape
    row = lax.broadcasted_iota(jnp.int32, (1, Tq, 1), 1) + row0   # global i
    ii = lax.broadcasted_iota(jnp.int32, (1, Tq, T), 1) + row0
    jj = lax.broadcasted_iota(jnp.int32, (1, Tq, T), 2)

    def rot_left(x, s):           # out[..., j] = x[..., (j + s) % T], static s
        if s % T == 0:
            return x
        if T % 128 == 0:          # lane-aligned: single XLU vrot
            return pltpu.roll(x, shift=T - s, axis=x.ndim - 1)
        return jnp.concatenate([x[..., s:], x[..., :s]], axis=-1)

    def per_row_rot_left(x, amount):      # amount: (1, Tq, 1) int32 in [0, T)
        y = x
        for b in range(max(T - 1, 1).bit_length()):
            s = 1 << b
            if s >= T:
                break
            y = jnp.where(((amount >> b) & 1) == 1, rot_left(y, s), y)
        return y

    # lower triangle incl. diagonal: global row i rotated left by (T - 1 - i)
    g_lo = per_row_rot_left(pos_lo, (T - 1 - row) % T)
    # strict upper (j >= i + 2): uses pos row i+1, rotated left by (T - 2 - i)
    g_up = per_row_rot_left(pos_up, (T - 2 - row) % T)

    return jnp.where(jj <= ii, g_lo,
                     jnp.where(jj == ii + 1, jnp.zeros_like(pos_lo), g_up))


# ---------------------------------------------------------------------------
# Pallas kernel.  Grid = (batch, query tile).
#   qt == 0 : LayerNorm + fused QKV projection into persistent VMEM scratches
#   every qt: one (H, Tq, T) relative-attention block + output projection
# ---------------------------------------------------------------------------
def mhsa_kernel(x_ref, p_ref, gamma_ref, beta_ref, wqkv_ref, bqkv_ref,
                u_ref, v_ref, wo_ref, bo_ref, o_ref,
                qu_scr, qv_scr, k_scr, v_scr,
                *, num_heads, q_tile, compute_dtype):
    T, D = x_ref.shape[1], x_ref.shape[2]
    H = num_heads
    dh = D // H
    Tq = q_tile
    cd = compute_dtype
    f32 = jnp.float32
    inv_sqrt_d = 1.0 / math.sqrt(D)     # folded into the queries (perf review)

    qt = pl.program_id(1)

    def split_heads(m):                 # (R, D) -> (H, R, dh), static slices
        return jnp.stack([m[:, h * dh:(h + 1) * dh] for h in range(H)], axis=0)

    # --- per-batch prologue: LayerNorm + fused QKV projection (once) --------
    @pl.when(qt == 0)
    def _prologue():
        x = x_ref[0]                    # (T, D) f32
        # LayerNorm (eps=1e-5, biased variance; matches torch.nn.LayerNorm)
        mean = jnp.mean(x, axis=-1, keepdims=True)
        var = jnp.mean(jnp.square(x - mean), axis=-1, keepdims=True)
        xn = (x - mean) * lax.rsqrt(var + 1e-5)
        xn = xn * gamma_ref[...] + beta_ref[...]

        # fused Q/K/V projection: single (T, D) @ (D, 3D) MXU matmul
        qkv = jnp.dot(xn.astype(cd), wqkv_ref[...],
                      preferred_element_type=f32) + bqkv_ref[...]
        q = qkv[:, :D]
        k = qkv[:, D:2 * D]
        v = qkv[:, 2 * D:]

        # fold 1 / sqrt(d_model) into the biased queries
        qu = ((q + u_ref[...]) * inv_sqrt_d).astype(cd)   # content query
        qv = ((q + v_ref[...]) * inv_sqrt_d).astype(cd)   # positional query

        qu_scr[...] = split_heads(qu)                     # (H, T, dh)
        qv_h = split_heads(qv)
        # one zero-padded query row so "row i+1" exists for the last tile
        qv_scr[...] = jnp.concatenate(
            [qv_h, jnp.zeros((H, 1, dh), qv_h.dtype)], axis=1)
        k_scr[...] = split_heads(k.astype(cd))
        v_scr[...] = split_heads(v.astype(cd))

    # --- per-tile attention --------------------------------------------------
    row0 = pl.multiple_of(qt * Tq, Tq)

    qu_t = qu_scr[:, pl.ds(row0, Tq), :]          # (H, Tq,   dh)
    qv_t = qv_scr[:, pl.ds(row0, Tq + 1), :]      # (H, Tq+1, dh)
    k_h = k_scr[...]                              # (H, T, dh)
    v_h = v_scr[...]
    p_h = p_ref[...]                              # (H, T, dh), compute dtype

    content = jnp.einsum("htd,hsd->hts", qu_t, k_h, preferred_element_type=f32)
    pos_ext = jnp.einsum("htd,hsd->hts", qv_t, p_h, preferred_element_type=f32)

    # score already carries the 1/sqrt(d_model) scale (folded into qu/qv)
    score = content + _relative_shift(pos_ext[:, :Tq, :], pos_ext[:, 1:, :],
                                      row0, T)
    # TODO(synk): optional attention-mask path not implemented (mask=None).

    # --- softmax over the full key axis (exact; keys fully resident) --------
    score = score - jnp.max(score, axis=-1, keepdims=True)
    e = jnp.exp(score)
    denom = jnp.sum(e, axis=-1, keepdims=True)
    r = pl.reciprocal(denom, approx=True)
    r = r * (2.0 - denom * r)                     # one Newton step -> f32 exact
    attn = e * r

    # --- context + single output projection over the full D contraction -----
    ctx_h = jnp.einsum("hts,hsd->htd", attn.astype(cd), v_h,
                       preferred_element_type=f32)                # (H, Tq, dh)
    ctx = jnp.concatenate([ctx_h[h] for h in range(H)], axis=-1)  # (Tq, D)

    out = jnp.dot(ctx.astype(cd), wo_ref[...],
                  preferred_element_type=f32) + bo_ref[...]
    o_ref[0] = out.astype(o_ref.dtype)


# ---------------------------------------------------------------------------
# wrapper
# ---------------------------------------------------------------------------
def _pick_q_tile(T):
    if T <= 256:
        return T
    for tq in (256, 128, 64, 32, 16, 8):
        if T % tq == 0:
            return tq
    return T


def mhsa_forward(x, pe, params, num_heads, compute_dtype=jnp.float32,
                 q_tile=None):
    """Eval-mode forward of MultiHeadedSelfAttentionModule.

    compute_dtype: MXU operand dtype (bf16 recommended on v6e/v7x); layernorm,
    softmax and all accumulation stay f32.
    """
    B, T, D = x.shape
    H = num_heads
    assert D % H == 0
    dh = D // H
    cd = compute_dtype

    if q_tile is None:
        q_tile = _pick_q_tile(T)
    if q_tile < T and (T % q_tile != 0 or q_tile % 8 != 0):
        q_tile = T                      # fall back to a single query tile
    n_qt = T // q_tile

    # Batch-invariant positional projection (pe @ Wp) hoisted out of the
    # kernel; grid-invariant MXU operands pre-cast to compute_dtype.
    p = pe @ params["wp"]                                        # (T, D)
    p_heads = p.reshape(T, H, dh).transpose(1, 0, 2).astype(cd)  # (H, T, dh)

    wqkv = jnp.concatenate([params["wq"], params["wk"], params["wv"]],
                           axis=1).astype(cd)                    # (D, 3D)
    bqkv = jnp.concatenate([params["bq"], params["bk"], params["bv"]], axis=1)
    wo = params["wo"].astype(cd)

    # u/v biases flattened head-major so they broadcast over the (T, D) layout
    u_row = params["u"].reshape(1, D)
    v_row = params["v"].reshape(1, D)

    kernel = functools.partial(mhsa_kernel, num_heads=H, q_tile=q_tile,
                               compute_dtype=cd)

    operands = (x, p_heads, params["gamma"], params["beta"], wqkv, bqkv,
                u_row, v_row, wo, params["bo"])

    def run(single_buffer_weights):
        def rep(shape):                 # grid-invariant operand spec
            idx = lambda b, q, _n=len(shape): (0,) * _n
            if single_buffer_weights:
                # block index never changes -> one VMEM buffer is enough
                return pl.BlockSpec(shape, idx, pipeline_mode=pl.Buffered(1))
            return pl.BlockSpec(shape, idx)

        in_specs = [
            pl.BlockSpec((1, T, D), lambda b, q: (b, 0, 0)),     # x
            rep((H, T, dh)),                                     # pe @ Wp heads
            rep((1, D)), rep((1, D)),                            # gamma, beta
            rep((D, 3 * D)), rep((1, 3 * D)),                    # wqkv, bqkv
            rep((1, D)), rep((1, D)),                            # u_bias, v_bias
            rep((D, D)), rep((1, D)),                            # wo, bo
        ]

        out = pl.pallas_call(
            kernel,
            out_shape=jax.ShapeDtypeStruct((B, T, D), jnp.float32),
            grid_spec=pltpu.PrefetchScalarGridSpec(
                num_scalar_prefetch=0,
                grid=(B, n_qt),
                in_specs=in_specs,
                out_specs=pl.BlockSpec((1, q_tile, D),
                                       lambda b, q: (b, q, 0)),
                scratch_shapes=[
                    pltpu.VMEM((H, T, dh), cd),       # (q + u) / sqrt(D)
                    pltpu.VMEM((H, T + 1, dh), cd),   # (q + v) / sqrt(D), pad
                    pltpu.VMEM((H, T, dh), cd),       # k heads
                    pltpu.VMEM((H, T, dh), cd),       # v heads
                ]),
            compiler_params=pltpu.CompilerParams(
                # qt axis must be "arbitrary": scratches filled at qt == 0.
                dimension_semantics=("parallel", "arbitrary"),
                # leave headroom on v7x (64 MiB physical per TensorCore);
                # query tiling keeps the live score block at H*Tq*T f32.
                vmem_limit_bytes=48 * 1024 * 1024,
            ),
        )(*operands)
        return jax.block_until_ready(out)

    try:
        return run(True)
    except Exception:
        # pipeline_mode / pl.Buffered unsupported on this jax build ->
        # default double-buffering of the grid-invariant operands.
        return run(False)


# ---------------------------------------------------------------------------
# deterministic parameter init (synthetic; no checkpoint)
# ---------------------------------------------------------------------------
def init_params(key, d_model, num_heads):
    dh = d_model // num_heads
    keys = jax.random.split(key, 7)

    def xavier(k, shape):
        limit = math.sqrt(6.0 / (shape[0] + shape[1]))
        return jax.random.uniform(k, shape, jnp.float32, -limit, limit)

    return dict(
        gamma=jnp.ones((1, d_model), jnp.float32),
        beta=jnp.zeros((1, d_model), jnp.float32),
        wq=xavier(keys[0], (d_model, d_model)),
        bq=jnp.zeros((1, d_model), jnp.float32),
        wk=xavier(keys[1], (d_model, d_model)),
        bk=jnp.zeros((1, d_model), jnp.float32),
        wv=xavier(keys[2], (d_model, d_model)),
        bv=jnp.zeros((1, d_model), jnp.float32),
        wp=xavier(keys[3], (d_model, d_model)),
        u=xavier(keys[4], (num_heads, dh)),
        v=xavier(keys[5], (num_heads, dh)),
        wo=xavier(keys[6], (d_model, d_model)),
        bo=jnp.zeros((1, d_model), jnp.float32),
    )


def sinusoidal_pe(seq_len, d_model):
    pos = jnp.arange(seq_len, dtype=jnp.float32)[:, None]
    div = jnp.exp(jnp.arange(0, d_model, 2, dtype=jnp.float32)
                  * -(math.log(10000.0) / d_model))
    pe = jnp.zeros((seq_len, d_model), jnp.float32)
    pe = pe.at[:, 0::2].set(jnp.sin(pos * div))
    pe = pe.at[:, 1::2].set(jnp.cos(pos * div))
    return pe


# ---------------------------------------------------------------------------
# pure-JAX reference mirroring the PyTorch forward (correctness check)
# ---------------------------------------------------------------------------
def reference(x, pe, params, num_heads):
    B, T, D = x.shape
    H = num_heads
    dh = D // H

    mean = x.mean(-1, keepdims=True)
    var = ((x - mean) ** 2).mean(-1, keepdims=True)
    xn = (x - mean) / jnp.sqrt(var + 1e-5) * params["gamma"] + params["beta"]

    q = xn @ params["wq"] + params["bq"]
    k = xn @ params["wk"] + params["bk"]
    v = xn @ params["wv"] + params["bv"]
    pos = jnp.broadcast_to(pe, (B, T, D)) @ params["wp"]

    q = q.reshape(B, T, H, dh)
    k = k.reshape(B, T, H, dh).transpose(0, 2, 1, 3)
    v = v.reshape(B, T, H, dh).transpose(0, 2, 1, 3)
    pos = pos.reshape(B, T, H, dh).transpose(0, 2, 1, 3)

    content = jnp.einsum("bihd,bhjd->bhij", q + params["u"], k)
    pos_score = jnp.einsum("bihd,bhjd->bhij", q + params["v"], pos)

    # relative shift (pad / reshape / slice, exactly like the PyTorch code)
    zeros = jnp.zeros((B, H, T, 1), jnp.float32)
    padded = jnp.concatenate([zeros, pos_score], axis=-1).reshape(B, H, T + 1, T)
    pos_score = padded[:, :, 1:].reshape(B, H, T, T)

    score = (content + pos_score) / math.sqrt(D)
    attn = jax.nn.softmax(score, axis=-1)
    ctx = jnp.einsum("bhij,bhjd->bhid", attn, v).transpose(0, 2, 1, 3).reshape(B, T, D)
    return ctx @ params["wo"] + params["bo"]


if __name__ == "__main__":
    key = jax.random.PRNGKey(0)
    kx, kp, kx2 = jax.random.split(key, 3)

    # ---- test 1: single query tile, f32 MXU operands (tight check) --------
    B, T, D, H = 2, 16, 64, 4          # batch, seq, d_model, num_heads (small)
    x = jax.random.normal(kx, (B, T, D), jnp.float32)
    params = init_params(kp, D, H)
    pe = sinusoidal_pe(T, D)
    ref = reference(x, pe, params, H)

    out = mhsa_forward(x, pe, params, H, compute_dtype=jnp.float32)
    out = jax.block_until_ready(out)
    assert out.shape == (B, T, D)
    if not jnp.allclose(out, ref, atol=2e-3, rtol=2e-3):
        err = float(jnp.max(jnp.abs(out - ref)))
        raise AssertionError(f"f32 Pallas kernel disagrees with reference (max err {err})")

    # ---- test 2: bf16 MXU operands (f32 accumulation), loose check --------
    out_bf16 = mhsa_forward(x, pe, params, H, compute_dtype=jnp.bfloat16)
    out_bf16 = jax.block_until_ready(out_bf16)
    if not jnp.allclose(out_bf16, ref, atol=1e-1, rtol=1e-1):
        err = float(jnp.max(jnp.abs(out_bf16 - ref)))
        raise AssertionError(f"bf16 Pallas kernel deviates too far from reference (max err {err})")

    # ---- test 3: multi query-tile grid (T=32, Tq=16), f32 tight check -----
    T2 = 32
    x2 = jax.random.normal(kx2, (B, T2, D), jnp.float32)
    pe2 = sinusoidal_pe(T2, D)
    ref2 = reference(x2, pe2, params, H)
    out2 = mhsa_forward(x2, pe2, params, H, compute_dtype=jnp.float32, q_tile=16)
    out2 = jax.block_until_ready(out2)
    if not jnp.allclose(out2, ref2, atol=2e-3, rtol=2e-3):
        err = float(jnp.max(jnp.abs(out2 - ref2)))
        raise AssertionError(f"tiled Pallas kernel disagrees with reference (max err {err})")

    print("KERNEL_OK")
</pallas_src>

<mosaic_0001>
module attributes {stable_mosaic.version = 11 : i64} {
  func.func @mhsa_kernel(%arg0: i32, %arg1: i32, %arg2: memref<1x16x64xf32, #tpu.memory_space<vmem>>, %arg3: memref<4x16x16xf32, #tpu.memory_space<vmem>>, %arg4: memref<1x64xf32, #tpu.memory_space<vmem>>, %arg5: memref<1x64xf32, #tpu.memory_space<vmem>>, %arg6: memref<64x192xf32, #tpu.memory_space<vmem>>, %arg7: memref<1x192xf32, #tpu.memory_space<vmem>>, %arg8: memref<1x64xf32, #tpu.memory_space<vmem>>, %arg9: memref<1x64xf32, #tpu.memory_space<vmem>>, %arg10: memref<64x64xf32, #tpu.memory_space<vmem>>, %arg11: memref<1x64xf32, #tpu.memory_space<vmem>>, %arg12: memref<1x16x64xf32, #tpu.memory_space<vmem>>, %arg13: memref<4x16x16xf32, #tpu.memory_space<vmem>>, %arg14: memref<4x17x16xf32, #tpu.memory_space<vmem>>, %arg15: memref<4x16x16xf32, #tpu.memory_space<vmem>>, %arg16: memref<4x16x16xf32, #tpu.memory_space<vmem>>) attributes {dimension_semantics = [#tpu.dimension_semantics<parallel>, #tpu.dimension_semantics<arbitrary>], iteration_bounds = array<i64: 2, 1>, scalar_prefetch = 0 : i64, scratch_operands = 4 : i64, tpu.core_type = #tpu.core_type<tc>, window_params = [{transform_indices = @transform_0, window_bounds = array<i64: 1, 16, 64>}, {pipeline_mode = #tpu.pipeline_mode<synchronous>, transform_indices = @transform_1, window_bounds = array<i64: 4, 16, 16>}, {pipeline_mode = #tpu.pipeline_mode<synchronous>, transform_indices = @transform_2, window_bounds = array<i64: 1, 64>}, {pipeline_mode = #tpu.pipeline_mode<synchronous>, transform_indices = @transform_3, window_bounds = array<i64: 1, 64>}, {pipeline_mode = #tpu.pipeline_mode<synchronous>, transform_indices = @transform_4, window_bounds = array<i64: 64, 192>}, {pipeline_mode = #tpu.pipeline_mode<synchronous>, transform_indices = @transform_5, window_bounds = array<i64: 1, 192>}, {pipeline_mode = #tpu.pipeline_mode<synchronous>, transform_indices = @transform_6, window_bounds = array<i64: 1, 64>}, {pipeline_mode = #tpu.pipeline_mode<synchronous>, transform_indices = @transform_7, window_bounds = array<i64: 1, 64>}, {pipeline_mode = #tpu.pipeline_mode<synchronous>, transform_indices = @transform_8, window_bounds = array<i64: 64, 64>}, {pipeline_mode = #tpu.pipeline_mode<synchronous>, transform_indices = @transform_9, window_bounds = array<i64: 1, 64>}, {transform_indices = @transform_10, window_bounds = array<i64: 1, 16, 64>}]} {
    %c0_i32 = arith.constant 0 : i32
    %0 = arith.cmpi eq, %arg1, %c0_i32 : i32
    %1 = arith.extui %0 : i1 to i32
    %c0_i32_0 = arith.constant 0 : i32
    %2 = arith.cmpi ne, %1, %c0_i32_0 : i32
    scf.if %2 {
      %c0_61 = arith.constant 0 : index
      %c0_62 = arith.constant 0 : index
      %c0_63 = arith.constant 0 : index
      %199 = vector.load %arg2[%c0_61, %c0_62, %c0_63] : memref<1x16x64xf32, #tpu.memory_space<vmem>>, vector<1x16x64xf32>
      %200 = vector.shape_cast %199 : vector<1x16x64xf32> to vector<16x64xf32>
      %cst_64 = arith.constant dense<0.000000e+00> : vector<16xf32>
      %201 = vector.multi_reduction <add>, %200, %cst_64 [1] : vector<16x64xf32> to vector<16xf32>
      %202 = vector.shape_cast %201 : vector<16xf32> to vector<16x1xf32>
      %cst_65 = arith.constant 6.400000e+01 : f32
      %203 = vector.broadcast %cst_65 : f32 to vector<16x1xf32>
      %204 = arith.divf %202, %203 : vector<16x1xf32>
      %205 = vector.broadcast %204 : vector<16x1xf32> to vector<16x64xf32>
      %206 = arith.subf %200, %205 : vector<16x64xf32>
      %207 = arith.mulf %206, %206 : vector<16x64xf32>
      %cst_66 = arith.constant dense<0.000000e+00> : vector<16xf32>
      %208 = vector.multi_reduction <add>, %207, %cst_66 [1] : vector<16x64xf32> to vector<16xf32>
      %209 = vector.shape_cast %208 : vector<16xf32> to vector<16x1xf32>
      %cst_67 = arith.constant 6.400000e+01 : f32
      %210 = vector.broadcast %cst_67 : f32 to vector<16x1xf32>
      %211 = arith.divf %209, %210 : vector<16x1xf32>
      %212 = vector.broadcast %204 : vector<16x1xf32> to vector<16x64xf32>
      %213 = arith.subf %200, %212 : vector<16x64xf32>
      %cst_68 = arith.constant 9.99999974E-6 : f32
      %214 = vector.broadcast %cst_68 : f32 to vector<16x1xf32>
      %215 = arith.addf %211, %214 : vector<16x1xf32>
      %216 = math.rsqrt %215 : vector<16x1xf32>
      %217 = vector.broadcast %216 : vector<16x1xf32> to vector<16x64xf32>
      %218 = arith.mulf %213, %217 : vector<16x64xf32>
      %c0_69 = arith.constant 0 : index
      %c0_70 = arith.constant 0 : index
      %219 = vector.load %arg4[%c0_69, %c0_70] : memref<1x64xf32, #tpu.memory_space<vmem>>, vector<1x64xf32>
      %220 = vector.broadcast %219 : vector<1x64xf32> to vector<16x64xf32>
      %221 = arith.mulf %218, %220 : vector<16x64xf32>
      %c0_71 = arith.constant 0 : index
      %c0_72 = arith.constant 0 : index
      %222 = vector.load %arg5[%c0_71, %c0_72] : memref<1x64xf32, #tpu.memory_space<vmem>>, vector<1x64xf32>
      %223 = vector.broadcast %222 : vector<1x64xf32> to vector<16x64xf32>
      %224 = arith.addf %221, %223 : vector<16x64xf32>
      %c0_73 = arith.constant 0 : index
      %c0_74 = arith.constant 0 : index
      %225 = vector.load %arg6[%c0_73, %c0_74] : memref<64x192xf32, #tpu.memory_space<vmem>>, vector<64x192xf32>
      %cst_75 = arith.constant dense<0.000000e+00> : vector<16x192xf32>
      %226 = tpu.matmul %224, %225, %cst_75 {dimension_numbers = #tpu.dot_dimension_numbers<[1], [0], [0], [1], [0, 0, 1, 1], [], []>} : vector<16x64xf32>, vector<64x192xf32>, vector<16x192xf32> -> vector<16x192xf32>
      %c0_76 = arith.constant 0 : index
      %c0_77 = arith.constant 0 : index
      %227 = vector.load %arg7[%c0_76, %c0_77] : memref<1x192xf32, #tpu.memory_space<vmem>>, vector<1x192xf32>
      %228 = vector.broadcast %227 : vector<1x192xf32> to vector<16x192xf32>
      %229 = arith.addf %226, %228 : vector<16x192xf32>
      %230 = vector.extract_strided_slice %229 {offsets = [0, 0], sizes = [16, 64], strides = [1, 1]} : vector<16x192xf32> to vector<16x64xf32>
      %231 = vector.extract_strided_slice %229 {offsets = [0, 64], sizes = [16, 64], strides = [1, 1]} : vector<16x192xf32> to vector<16x64xf32>
      %232 = vector.extract_strided_slice %229 {offsets = [0, 128], sizes = [16, 64], strides = [1, 1]} : vector<16x192xf32> to vector<16x64xf32>
      %c0_78 = arith.constant 0 : index
      %c0_79 = arith.constant 0 : index
      %233 = vector.load %arg8[%c0_78, %c0_79] : memref<1x64xf32, #tpu.memory_space<vmem>>, vector<1x64xf32>
      %234 = vector.broadcast %233 : vector<1x64xf32> to vector<16x64xf32>
      %235 = arith.addf %230, %234 : vector<16x64xf32>
      %cst_80 = arith.constant 1.250000e-01 : f32
      %236 = vector.broadcast %cst_80 : f32 to vector<16x64xf32>
      %237 = arith.mulf %235, %236 : vector<16x64xf32>
      %c0_81 = arith.constant 0 : index
      %c0_82 = arith.constant 0 : index
      %238 = vector.load %arg9[%c0_81, %c0_82] : memref<1x64xf32, #tpu.memory_space<vmem>>, vector<1x64xf32>
      %239 = vector.broadcast %238 : vector<1x64xf32> to vector<16x64xf32>
      %240 = arith.addf %230, %239 : vector<16x64xf32>
      %cst_83 = arith.constant 1.250000e-01 : f32
      %241 = vector.broadcast %cst_83 : f32 to vector<16x64xf32>
      %242 = arith.mulf %240, %241 : vector<16x64xf32>
      %243 = vector.extract_strided_slice %237 {offsets = [0, 0], sizes = [16, 16], strides = [1, 1]} : vector<16x64xf32> to vector<16x16xf32>
      %244 = vector.extract_strided_slice %237 {offsets = [0, 16], sizes = [16, 16], strides = [1, 1]} : vector<16x64xf32> to vector<16x16xf32>
      %245 = vector.extract_strided_slice %237 {offsets = [0, 32], sizes = [16, 16], strides = [1, 1]} : vector<16x64xf32> to vector<16x16xf32>
      %246 = vector.extract_strided_slice %237 {offsets = [0, 48], sizes = [16, 16], strides = [1, 1]} : vector<16x64xf32> to vector<16x16xf32>
      %247 = vector.shape_cast %243 : vector<16x16xf32> to vector<1x16x16xf32>
      %248 = vector.shape_cast %244 : vector<16x16xf32> to vector<1x16x16xf32>
      %249 = vector.shape_cast %245 : vector<16x16xf32> to vector<1x16x16xf32>
      %250 = vector.shape_cast %246 : vector<16x16xf32> to vector<1x16x16xf32>
      %251 = tpu.concatenate %247, %248, %249, %250 in 0 : vector<1x16x16xf32>, vector<1x16x16xf32>, vector<1x16x16xf32>, vector<1x16x16xf32> -> vector<4x16x16xf32>
      %c0_84 = arith.constant 0 : index
      %c0_85 = arith.constant 0 : index
      %c0_86 = arith.constant 0 : index
      %252 = vector.load %arg13[%c0_84, %c0_85, %c0_86] : memref<4x16x16xf32, #tpu.memory_space<vmem>>, vector<4x16x16xf32>
      tpu.vector_store %arg13[%c0_84, %c0_85, %c0_86], %251 {strides = array<i32>} : memref<4x16x16xf32, #tpu.memory_space<vmem>>, vector<4x16x16xf32>,
      %253 = vector.extract_strided_slice %242 {offsets = [0, 0], sizes = [16, 16], strides = [1, 1]} : vector<16x64xf32> to vector<16x16xf32>
      %254 = vector.extract_strided_slice %242 {offsets = [0, 16], sizes = [16, 16], strides = [1, 1]} : vector<16x64xf32> to vector<16x16xf32>
      %255 = vector.extract_strided_slice %242 {offsets = [0, 32], sizes = [16, 16], strides = [1, 1]} : vector<16x64xf32> to vector<16x16xf32>
      %256 = vector.extract_strided_slice %242 {offsets = [0, 48], sizes = [16, 16], strides = [1, 1]} : vector<16x64xf32> to vector<16x16xf32>
      %257 = vector.shape_cast %253 : vector<16x16xf32> to vector<1x16x16xf32>
      %258 = vector.shape_cast %254 : vector<16x16xf32> to vector<1x16x16xf32>
      %259 = vector.shape_cast %255 : vector<16x16xf32> to vector<1x16x16xf32>
      %260 = vector.shape_cast %256 : vector<16x16xf32> to vector<1x16x16xf32>
      %261 = tpu.concatenate %257, %258, %259, %260 in 0 : vector<1x16x16xf32>, vector<1x16x16xf32>, vector<1x16x16xf32>, vector<1x16x16xf32> -> vector<4x16x16xf32>
      %cst_87 = arith.constant 0.000000e+00 : f32
      %262 = vector.broadcast %cst_87 : f32 to vector<4x1x16xf32>
      %263 = tpu.concatenate %261, %262 in 1 : vector<4x16x16xf32>, vector<4x1x16xf32> -> vector<4x17x16xf32>
      %c0_88 = arith.constant 0 : index
      %c0_89 = arith.constant 0 : index
      %c0_90 = arith.constant 0 : index
      %264 = vector.load %arg14[%c0_88, %c0_89, %c0_90] : memref<4x17x16xf32, #tpu.memory_space<vmem>>, vector<4x17x16xf32>
      tpu.vector_store %arg14[%c0_88, %c0_89, %c0_90], %263 {strides = array<i32>} : memref<4x17x16xf32, #tpu.memory_space<vmem>>, vector<4x17x16xf32>,
      %265 = vector.extract_strided_slice %231 {offsets = [0, 0], sizes = [16, 16], strides = [1, 1]} : vector<16x64xf32> to vector<16x16xf32>
      %266 = vector.extract_strided_slice %231 {offsets = [0, 16], sizes = [16, 16], strides = [1, 1]} : vector<16x64xf32> to vector<16x16xf32>
      %267 = vector.extract_strided_slice %231 {offsets = [0, 32], sizes = [16, 16], strides = [1, 1]} : vector<16x64xf32> to vector<16x16xf32>
      %268 = vector.extract_strided_slice %231 {offsets = [0, 48], sizes = [16, 16], strides = [1, 1]} : vector<16x64xf32> to vector<16x16xf32>
      %269 = vector.shape_cast %265 : vector<16x16xf32> to vector<1x16x16xf32>
      %270 = vector.shape_cast %266 : vector<16x16xf32> to vector<1x16x16xf32>
      %271 = vector.shape_cast %267 : vector<16x16xf32> to vector<1x16x16xf32>
      %272 = vector.shape_cast %268 : vector<16x16xf32> to vector<1x16x16xf32>
      %273 = tpu.concatenate %269, %270, %271, %272 in 0 : vector<1x16x16xf32>, vector<1x16x16xf32>, vector<1x16x16xf32>, vector<1x16x16xf32> -> vector<4x16x16xf32>
      %c0_91 = arith.constant 0 : index
      %c0_92 = arith.constant 0 : index
      %c0_93 = arith.constant 0 : index
      %274 = vector.load %arg15[%c0_91, %c0_92, %c0_93] : memref<4x16x16xf32, #tpu.memory_space<vmem>>, vector<4x16x16xf32>
      tpu.vector_store %arg15[%c0_91, %c0_92, %c0_93], %273 {strides = array<i32>} : memref<4x16x16xf32, #tpu.memory_space<vmem>>, vector<4x16x16xf32>,
      %275 = vector.extract_strided_slice %232 {offsets = [0, 0], sizes = [16, 16], strides = [1, 1]} : vector<16x64xf32> to vector<16x16xf32>
      %276 = vector.extract_strided_slice %232 {offsets = [0, 16], sizes = [16, 16], strides = [1, 1]} : vector<16x64xf32> to vector<16x16xf32>
      %277 = vector.extract_strided_slice %232 {offsets = [0, 32], sizes = [16, 16], strides = [1, 1]} : vector<16x64xf32> to vector<16x16xf32>
      %278 = vector.extract_strided_slice %232 {offsets = [0, 48], sizes = [16, 16], strides = [1, 1]} : vector<16x64xf32> to vector<16x16xf32>
      %279 = vector.shape_cast %275 : vector<16x16xf32> to vector<1x16x16xf32>
      %280 = vector.shape_cast %276 : vector<16x16xf32> to vector<1x16x16xf32>
      %281 = vector.shape_cast %277 : vector<16x16xf32> to vector<1x16x16xf32>
      %282 = vector.shape_cast %278 : vector<16x16xf32> to vector<1x16x16xf32>
      %283 = tpu.concatenate %279, %280, %281, %282 in 0 : vector<1x16x16xf32>, vector<1x16x16xf32>, vector<1x16x16xf32>, vector<1x16x16xf32> -> vector<4x16x16xf32>
      %c0_94 = arith.constant 0 : index
      %c0_95 = arith.constant 0 : index
      %c0_96 = arith.constant 0 : index
      %284 = vector.load %arg16[%c0_94, %c0_95, %c0_96] : memref<4x16x16xf32, #tpu.memory_space<vmem>>, vector<4x16x16xf32>
      tpu.vector_store %arg16[%c0_94, %c0_95, %c0_96], %283 {strides = array<i32>} : memref<4x16x16xf32, #tpu.memory_space<vmem>>, vector<4x16x16xf32>,
    } else {
    }
    %c16_i32 = arith.constant 16 : i32
    %3 = arith.muli %arg1, %c16_i32 : i32
    %4 = tpu.assume_multiple %3, 16 : i32
    %c0 = arith.constant 0 : index
    %5 = arith.index_cast %4 : i32 to index
    %c0_1 = arith.constant 0 : index
    %6 = vector.load %arg13[%c0, %5, %c0_1] : memref<4x16x16xf32, #tpu.memory_space<vmem>>, vector<4x16x16xf32>
    %c0_2 = arith.constant 0 : index
    %7 = arith.index_cast %4 : i32 to index
    %c0_3 = arith.constant 0 : index
    %8 = vector.load %arg14[%c0_2, %7, %c0_3] : memref<4x17x16xf32, #tpu.memory_space<vmem>>, vector<4x17x16xf32>
    %c0_4 = arith.constant 0 : index
    %c0_5 = arith.constant 0 : index
    %c0_6 = arith.constant 0 : index
    %9 = vector.load %arg15[%c0_4, %c0_5, %c0_6] : memref<4x16x16xf32, #tpu.memory_space<vmem>>, vector<4x16x16xf32>
    %c0_7 = arith.constant 0 : index
    %c0_8 = arith.constant 0 : index
    %c0_9 = arith.constant 0 : index
    %10 = vector.load %arg16[%c0_7, %c0_8, %c0_9] : memref<4x16x16xf32, #tpu.memory_space<vmem>>, vector<4x16x16xf32>
    %c0_10 = arith.constant 0 : index
    %c0_11 = arith.constant 0 : index
    %c0_12 = arith.constant 0 : index
    %11 = vector.load %arg3[%c0_10, %c0_11, %c0_12] : memref<4x16x16xf32, #tpu.memory_space<vmem>>, vector<4x16x16xf32>
    "tpu.trace_start"() <{level = 10 : i32, message = "htd,hsd->hts"}> : () -> ()
    %cst = arith.constant dense<0.000000e+00> : vector<4x16x16xf32>
    %12 = tpu.matmul %6, %9, %cst {dimension_numbers = #tpu.dot_dimension_numbers<[2], [2], [1], [1], [0, 0, 0, 1, 1, 1], [0], [0]>} : vector<4x16x16xf32>, vector<4x16x16xf32>, vector<4x16x16xf32> -> vector<4x16x16xf32>
    %cst_13 = arith.constant dense<0.000000e+00> : vector<4x17x16xf32>
    %13 = tpu.matmul %8, %11, %cst_13 {dimension_numbers = #tpu.dot_dimension_numbers<[2], [2], [1], [1], [0, 0, 0, 1, 1, 1], [0], [0]>} : vector<4x17x16xf32>, vector<4x16x16xf32>, vector<4x17x16xf32> -> vector<4x17x16xf32>
    "tpu.trace_stop"() : () -> ()
    %14 = vector.extract_strided_slice %13 {offsets = [0, 0, 0], sizes = [4, 16, 16], strides = [1, 1, 1]} : vector<4x17x16xf32> to vector<4x16x16xf32>
    %15 = vector.extract_strided_slice %13 {offsets = [0, 1, 0], sizes = [4, 16, 16], strides = [1, 1, 1]} : vector<4x17x16xf32> to vector<4x16x16xf32>
    %16 = tpu.iota {dimensions = array<i32: 1>} : vector<1x16x1xi32>
    %17 = vector.broadcast %4 : i32 to vector<1x16x1xi32>
    %18 = arith.addi %16, %17 : vector<1x16x1xi32>
    %19 = tpu.iota {dimensions = array<i32: 1>} : vector<1x16x16xi32>
    %20 = vector.broadcast %4 : i32 to vector<1x16x16xi32>
    %21 = arith.addi %19, %20 : vector<1x16x16xi32>
    %22 = tpu.iota {dimensions = array<i32: 2>} : vector<1x16x16xi32>
    %c15_i32 = arith.constant 15 : i32
    %23 = vector.broadcast %c15_i32 : i32 to vector<1x16x1xi32>
    %24 = arith.subi %23, %18 : vector<1x16x1xi32>
    %c16_i32_14 = arith.constant 16 : i32
    %c0_i32_15 = arith.constant 0 : i32
    %25 = arith.cmpi eq, %c16_i32_14, %c0_i32_15 : i32
    %c1_i32 = arith.constant 1 : i32
    %26 = arith.select %25, %c1_i32, %c16_i32_14 : i32
    %27 = vector.broadcast %26 : i32 to vector<1x16x1xi32>
    %28 = arith.remsi %24, %27 : vector<1x16x1xi32>
    %c0_i32_16 = arith.constant 0 : i32
    %29 = vector.broadcast %c0_i32_16 : i32 to vector<1x16x1xi32>
    %30 = arith.cmpi ne, %28, %29 : vector<1x16x1xi32>
    %c0_i32_17 = arith.constant 0 : i32
    %31 = vector.broadcast %c0_i32_17 : i32 to vector<1x16x1xi32>
    %32 = arith.cmpi slt, %28, %31 : vector<1x16x1xi32>
    %c0_i32_18 = arith.constant 0 : i32
    %33 = arith.cmpi slt, %26, %c0_i32_18 : i32
    %34 = vector.broadcast %33 : i1 to vector<1x16x1xi1>
    %35 = vector.broadcast %34 : vector<1x16x1xi1> to vector<1x16x1xi1>
    %36 = arith.xori %32, %35 : vector<1x16x1xi1>
    %37 = arith.andi %36, %30 : vector<1x16x1xi1>
    %38 = vector.broadcast %26 : i32 to vector<1x16x1xi32>
    %39 = arith.addi %28, %38 : vector<1x16x1xi32>
    %40 = arith.select %37, %39, %28 : vector<1x16x1xi1>, vector<1x16x1xi32>
    %c0_i32_19 = arith.constant 0 : i32
    %41 = vector.broadcast %c0_i32_19 : i32 to vector<1x16x1xi32>
    %42 = arith.shrsi %40, %41 : vector<1x16x1xi32>
    %c1_i32_20 = arith.constant 1 : i32
    %43 = vector.broadcast %c1_i32_20 : i32 to vector<1x16x1xi32>
    %44 = arith.andi %42, %43 : vector<1x16x1xi32>
    %c1_i32_21 = arith.constant 1 : i32
    %45 = vector.broadcast %c1_i32_21 : i32 to vector<1x16x1xi32>
    %46 = arith.cmpi eq, %44, %45 : vector<1x16x1xi32>
    %47 = vector.extract_strided_slice %14 {offsets = [0, 0, 1], sizes = [4, 16, 15], strides = [1, 1, 1]} : vector<4x16x16xf32> to vector<4x16x15xf32>
    %48 = vector.extract_strided_slice %14 {offsets = [0, 0, 0], sizes = [4, 16, 1], strides = [1, 1, 1]} : vector<4x16x16xf32> to vector<4x16x1xf32>
    %49 = tpu.concatenate %47, %48 in 2 : vector<4x16x15xf32>, vector<4x16x1xf32> -> vector<4x16x16xf32>
    %50 = vector.shape_cast %46 : vector<1x16x1xi1> to vector<1x16x1xi1>
    %51 = vector.broadcast %50 : vector<1x16x1xi1> to vector<4x16x16xi1>
    %52 = arith.select %51, %49, %14 : vector<4x16x16xi1>, vector<4x16x16xf32>
    %c1_i32_22 = arith.constant 1 : i32
    %53 = vector.broadcast %c1_i32_22 : i32 to vector<1x16x1xi32>
    %54 = arith.shrsi %40, %53 : vector<1x16x1xi32>
    %c1_i32_23 = arith.constant 1 : i32
    %55 = vector.broadcast %c1_i32_23 : i32 to vector<1x16x1xi32>
    %56 = arith.andi %54, %55 : vector<1x16x1xi32>
    %c1_i32_24 = arith.constant 1 : i32
    %57 = vector.broadcast %c1_i32_24 : i32 to vector<1x16x1xi32>
    %58 = arith.cmpi eq, %56, %57 : vector<1x16x1xi32>
    %59 = vector.extract_strided_slice %52 {offsets = [0, 0, 2], sizes = [4, 16, 14], strides = [1, 1, 1]} : vector<4x16x16xf32> to vector<4x16x14xf32>
    %60 = vector.extract_strided_slice %52 {offsets = [0, 0, 0], sizes = [4, 16, 2], strides = [1, 1, 1]} : vector<4x16x16xf32> to vector<4x16x2xf32>
    %61 = tpu.concatenate %59, %60 in 2 : vector<4x16x14xf32>, vector<4x16x2xf32> -> vector<4x16x16xf32>
    %62 = vector.shape_cast %58 : vector<1x16x1xi1> to vector<1x16x1xi1>
    %63 = vector.broadcast %62 : vector<1x16x1xi1> to vector<4x16x16xi1>
    %64 = arith.select %63, %61, %52 : vector<4x16x16xi1>, vector<4x16x16xf32>
    %c2_i32 = arith.constant 2 : i32
    %65 = vector.broadcast %c2_i32 : i32 to vector<1x16x1xi32>
    %66 = arith.shrsi %40, %65 : vector<1x16x1xi32>
    %c1_i32_25 = arith.constant 1 : i32
    %67 = vector.broadcast %c1_i32_25 : i32 to vector<1x16x1xi32>
    %68 = arith.andi %66, %67 : vector<1x16x1xi32>
    %c1_i32_26 = arith.constant 1 : i32
    %69 = vector.broadcast %c1_i32_26 : i32 to vector<1x16x1xi32>
    %70 = arith.cmpi eq, %68, %69 : vector<1x16x1xi32>
    %71 = vector.extract_strided_slice %64 {offsets = [0, 0, 4], sizes = [4, 16, 12], strides = [1, 1, 1]} : vector<4x16x16xf32> to vector<4x16x12xf32>
    %72 = vector.extract_strided_slice %64 {offsets = [0, 0, 0], sizes = [4, 16, 4], strides = [1, 1, 1]} : vector<4x16x16xf32> to vector<4x16x4xf32>
    %73 = tpu.concatenate %71, %72 in 2 : vector<4x16x12xf32>, vector<4x16x4xf32> -> vector<4x16x16xf32>
    %74 = vector.shape_cast %70 : vector<1x16x1xi1> to vector<1x16x1xi1>
    %75 = vector.broadcast %74 : vector<1x16x1xi1> to vector<4x16x16xi1>
    %76 = arith.select %75, %73, %64 : vector<4x16x16xi1>, vector<4x16x16xf32>
    %c3_i32 = arith.constant 3 : i32
    %77 = vector.broadcast %c3_i32 : i32 to vector<1x16x1xi32>
    %78 = arith.shrsi %40, %77 : vector<1x16x1xi32>
    %c1_i32_27 = arith.constant 1 : i32
    %79 = vector.broadcast %c1_i32_27 : i32 to vector<1x16x1xi32>
    %80 = arith.andi %78, %79 : vector<1x16x1xi32>
    %c1_i32_28 = arith.constant 1 : i32
    %81 = vector.broadcast %c1_i32_28 : i32 to vector<1x16x1xi32>
    %82 = arith.cmpi eq, %80, %81 : vector<1x16x1xi32>
    %83 = vector.extract_strided_slice %76 {offsets = [0, 0, 8], sizes = [4, 16, 8], strides = [1, 1, 1]} : vector<4x16x16xf32> to vector<4x16x8xf32>
    %84 = vector.extract_strided_slice %76 {offsets = [0, 0, 0], sizes = [4, 16, 8], strides = [1, 1, 1]} : vector<4x16x16xf32> to vector<4x16x8xf32>
    %85 = tpu.concatenate %83, %84 in 2 : vector<4x16x8xf32>, vector<4x16x8xf32> -> vector<4x16x16xf32>
    %86 = vector.shape_cast %82 : vector<1x16x1xi1> to vector<1x16x1xi1>
    %87 = vector.broadcast %86 : vector<1x16x1xi1> to vector<4x16x16xi1>
    %88 = arith.select %87, %85, %76 : vector<4x16x16xi1>, vector<4x16x16xf32>
    %c14_i32 = arith.constant 14 : i32
    %89 = vector.broadcast %c14_i32 : i32 to vector<1x16x1xi32>
    %90 = arith.subi %89, %18 : vector<1x16x1xi32>
    %c16_i32_29 = arith.constant 16 : i32
    %c0_i32_30 = arith.constant 0 : i32
    %91 = arith.cmpi eq, %c16_i32_29, %c0_i32_30 : i32
    %c1_i32_31 = arith.constant 1 : i32
    %92 = arith.select %91, %c1_i32_31, %c16_i32_29 : i32
    %93 = vector.broadcast %92 : i32 to vector<1x16x1xi32>
    %94 = arith.remsi %90, %93 : vector<1x16x1xi32>
    %c0_i32_32 = arith.constant 0 : i32
    %95 = vector.broadcast %c0_i32_32 : i32 to vector<1x16x1xi32>
    %96 = arith.cmpi ne, %94, %95 : vector<1x16x1xi32>
    %c0_i32_33 = arith.constant 0 : i32
    %97 = vector.broadcast %c0_i32_33 : i32 to vector<1x16x1xi32>
    %98 = arith.cmpi slt, %94, %97 : vector<1x16x1xi32>
    %c0_i32_34 = arith.constant 0 : i32
    %99 = arith.cmpi slt, %92, %c0_i32_34 : i32
    %100 = vector.broadcast %99 : i1 to vector<1x16x1xi1>
    %101 = vector.broadcast %100 : vector<1x16x1xi1> to vector<1x16x1xi1>
    %102 = arith.xori %98, %101 : vector<1x16x1xi1>
    %103 = arith.andi %102, %96 : vector<1x16x1xi1>
    %104 = vector.broadcast %92 : i32 to vector<1x16x1xi32>
    %105 = arith.addi %94, %104 : vector<1x16x1xi32>
    %106 = arith.select %103, %105, %94 : vector<1x16x1xi1>, vector<1x16x1xi32>
    %c0_i32_35 = arith.constant 0 : i32
    %107 = vector.broadcast %c0_i32_35 : i32 to vector<1x16x1xi32>
    %108 = arith.shrsi %106, %107 : vector<1x16x1xi32>
    %c1_i32_36 = arith.constant 1 : i32
    %109 = vector.broadcast %c1_i32_36 : i32 to vector<1x16x1xi32>
    %110 = arith.andi %108, %109 : vector<1x16x1xi32>
    %c1_i32_37 = arith.constant 1 : i32
    %111 = vector.broadcast %c1_i32_37 : i32 to vector<1x16x1xi32>
    %112 = arith.cmpi eq, %110, %111 : vector<1x16x1xi32>
    %113 = vector.extract_strided_slice %15 {offsets = [0, 0, 1], sizes = [4, 16, 15], strides = [1, 1, 1]} : vector<4x16x16xf32> to vector<4x16x15xf32>
    %114 = vector.extract_strided_slice %15 {offsets = [0, 0, 0], sizes = [4, 16, 1], strides = [1, 1, 1]} : vector<4x16x16xf32> to vector<4x16x1xf32>
    %115 = tpu.concatenate %113, %114 in 2 : vector<4x16x15xf32>, vector<4x16x1xf32> -> vector<4x16x16xf32>
    %116 = vector.shape_cast %112 : vector<1x16x1xi1> to vector<1x16x1xi1>
    %117 = vector.broadcast %116 : vector<1x16x1xi1> to vector<4x16x16xi1>
    %118 = arith.select %117, %115, %15 : vector<4x16x16xi1>, vector<4x16x16xf32>
    %c1_i32_38 = arith.constant 1 : i32
    %119 = vector.broadcast %c1_i32_38 : i32 to vector<1x16x1xi32>
    %120 = arith.shrsi %106, %119 : vector<1x16x1xi32>
    %c1_i32_39 = arith.constant 1 : i32
    %121 = vector.broadcast %c1_i32_39 : i32 to vector<1x16x1xi32>
    %122 = arith.andi %120, %121 : vector<1x16x1xi32>
    %c1_i32_40 = arith.constant 1 : i32
    %123 = vector.broadcast %c1_i32_40 : i32 to vector<1x16x1xi32>
    %124 = arith.cmpi eq, %122, %123 : vector<1x16x1xi32>
    %125 = vector.extract_strided_slice %118 {offsets = [0, 0, 2], sizes = [4, 16, 14], strides = [1, 1, 1]} : vector<4x16x16xf32> to vector<4x16x14xf32>
    %126 = vector.extract_strided_slice %118 {offsets = [0, 0, 0], sizes = [4, 16, 2], strides = [1, 1, 1]} : vector<4x16x16xf32> to vector<4x16x2xf32>
    %127 = tpu.concatenate %125, %126 in 2 : vector<4x16x14xf32>, vector<4x16x2xf32> -> vector<4x16x16xf32>
    %128 = vector.shape_cast %124 : vector<1x16x1xi1> to vector<1x16x1xi1>
    %129 = vector.broadcast %128 : vector<1x16x1xi1> to vector<4x16x16xi1>
    %130 = arith.select %129, %127, %118 : vector<4x16x16xi1>, vector<4x16x16xf32>
    %c2_i32_41 = arith.constant 2 : i32
    %131 = vector.broadcast %c2_i32_41 : i32 to vector<1x16x1xi32>
    %132 = arith.shrsi %106, %131 : vector<1x16x1xi32>
    %c1_i32_42 = arith.constant 1 : i32
    %133 = vector.broadcast %c1_i32_42 : i32 to vector<1x16x1xi32>
    %134 = arith.andi %132, %133 : vector<1x16x1xi32>
    %c1_i32_43 = arith.constant 1 : i32
    %135 = vector.broadcast %c1_i32_43 : i32 to vector<1x16x1xi32>
    %136 = arith.cmpi eq, %134, %135 : vector<1x16x1xi32>
    %137 = vector.extract_strided_slice %130 {offsets = [0, 0, 4], sizes = [4, 16, 12], strides = [1, 1, 1]} : vector<4x16x16xf32> to vector<4x16x12xf32>
    %138 = vector.extract_strided_slice %130 {offsets = [0, 0, 0], sizes = [4, 16, 4], strides = [1, 1, 1]} : vector<4x16x16xf32> to vector<4x16x4xf32>
    %139 = tpu.concatenate %137, %138 in 2 : vector<4x16x12xf32>, vector<4x16x4xf32> -> vector<4x16x16xf32>
    %140 = vector.shape_cast %136 : vector<1x16x1xi1> to vector<1x16x1xi1>
    %141 = vector.broadcast %140 : vector<1x16x1xi1> to vector<4x16x16xi1>
    %142 = arith.select %141, %139, %130 : vector<4x16x16xi1>, vector<4x16x16xf32>
    %c3_i32_44 = arith.constant 3 : i32
    %143 = vector.broadcast %c3_i32_44 : i32 to vector<1x16x1xi32>
    %144 = arith.shrsi %106, %143 : vector<1x16x1xi32>
    %c1_i32_45 = arith.constant 1 : i32
    %145 = vector.broadcast %c1_i32_45 : i32 to vector<1x16x1xi32>
    %146 = arith.andi %144, %145 : vector<1x16x1xi32>
    %c1_i32_46 = arith.constant 1 : i32
    %147 = vector.broadcast %c1_i32_46 : i32 to vector<1x16x1xi32>
    %148 = arith.cmpi eq, %146, %147 : vector<1x16x1xi32>
    %149 = vector.extract_strided_slice %142 {offsets = [0, 0, 8], sizes = [4, 16, 8], strides = [1, 1, 1]} : vector<4x16x16xf32> to vector<4x16x8xf32>
    %150 = vector.extract_strided_slice %142 {offsets = [0, 0, 0], sizes = [4, 16, 8], strides = [1, 1, 1]} : vector<4x16x16xf32> to vector<4x16x8xf32>
    %151 = tpu.concatenate %149, %150 in 2 : vector<4x16x8xf32>, vector<4x16x8xf32> -> vector<4x16x16xf32>
    %152 = vector.shape_cast %148 : vector<1x16x1xi1> to vector<1x16x1xi1>
    %153 = vector.broadcast %152 : vector<1x16x1xi1> to vector<4x16x16xi1>
    %154 = arith.select %153, %151, %142 : vector<4x16x16xi1>, vector<4x16x16xf32>
    %155 = arith.cmpi sle, %22, %21 : vector<1x16x16xi32>
    %c1_i32_47 = arith.constant 1 : i32
    %156 = vector.broadcast %c1_i32_47 : i32 to vector<1x16x16xi32>
    %157 = arith.addi %21, %156 : vector<1x16x16xi32>
    %158 = arith.cmpi eq, %22, %157 : vector<1x16x16xi32>
    %cst_48 = arith.constant 0.000000e+00 : f32
    %159 = vector.broadcast %cst_48 : f32 to vector<4x16x16xf32>
    %160 = vector.shape_cast %158 : vector<1x16x16xi1> to vector<1x16x16xi1>
    %161 = vector.broadcast %160 : vector<1x16x16xi1> to vector<4x16x16xi1>
    %162 = arith.select %161, %159, %154 : vector<4x16x16xi1>, vector<4x16x16xf32>
    %163 = vector.shape_cast %155 : vector<1x16x16xi1> to vector<1x16x16xi1>
    %164 = vector.broadcast %163 : vector<1x16x16xi1> to vector<4x16x16xi1>
    %165 = arith.select %164, %88, %162 : vector<4x16x16xi1>, vector<4x16x16xf32>
    %166 = arith.addf %12, %165 : vector<4x16x16xf32>
    %cst_49 = arith.constant dense<0xFF800000> : vector<4x16xf32>
    %167 = vector.multi_reduction <maximumf>, %166, %cst_49 [2] : vector<4x16x16xf32> to vector<4x16xf32>
    %168 = vector.shape_cast %167 : vector<4x16xf32> to vector<4x16x1xf32>
    %169 = vector.broadcast %168 : vector<4x16x1xf32> to vector<4x16x16xf32>
    %170 = arith.subf %166, %169 : vector<4x16x16xf32>
    %171 = math.exp %170 : vector<4x16x16xf32>
    %cst_50 = arith.constant dense<0.000000e+00> : vector<4x16xf32>
    %172 = vector.multi_reduction <add>, %171, %cst_50 [2] : vector<4x16x16xf32> to vector<4x16xf32>
    %173 = vector.shape_cast %172 : vector<4x16xf32> to vector<4x16x1xf32>
    %174 = tpu.reciprocal %173 {approx = true} : vector<4x16x1xf32> -> vector<4x16x1xf32>
    %175 = arith.mulf %173, %174 : vector<4x16x1xf32>
    %cst_51 = arith.constant 2.000000e+00 : f32
    %176 = vector.broadcast %cst_51 : f32 to vector<4x16x1xf32>
    %177 = arith.subf %176, %175 : vector<4x16x1xf32>
    %178 = arith.mulf %174, %177 : vector<4x16x1xf32>
    %179 = vector.broadcast %178 : vector<4x16x1xf32> to vector<4x16x16xf32>
    %180 = arith.mulf %171, %179 : vector<4x16x16xf32>
    "tpu.trace_start"() <{level = 10 : i32, message = "hts,hsd->htd"}> : () -> ()
    %cst_52 = arith.constant dense<0.000000e+00> : vector<4x16x16xf32>
    %181 = tpu.matmul %180, %10, %cst_52 {dimension_numbers = #tpu.dot_dimension_numbers<[2], [1], [1], [2], [0, 0, 0, 1, 1, 2], [0], [0]>} : vector<4x16x16xf32>, vector<4x16x16xf32>, vector<4x16x16xf32> -> vector<4x16x16xf32>
    "tpu.trace_stop"() : () -> ()
    %182 = vector.extract_strided_slice %181 {offsets = [0, 0, 0], sizes = [1, 16, 16], strides = [1, 1, 1]} : vector<4x16x16xf32> to vector<1x16x16xf32>
    %183 = vector.shape_cast %182 : vector<1x16x16xf32> to vector<16x16xf32>
    %184 = vector.extract_strided_slice %181 {offsets = [1, 0, 0], sizes = [1, 16, 16], strides = [1, 1, 1]} : vector<4x16x16xf32> to vector<1x16x16xf32>
    %185 = vector.shape_cast %184 : vector<1x16x16xf32> to vector<16x16xf32>
    %186 = vector.extract_strided_slice %181 {offsets = [2, 0, 0], sizes = [1, 16, 16], strides = [1, 1, 1]} : vector<4x16x16xf32> to vector<1x16x16xf32>
    %187 = vector.shape_cast %186 : vector<1x16x16xf32> to vector<16x16xf32>
    %188 = vector.extract_strided_slice %181 {offsets = [3, 0, 0], sizes = [1, 16, 16], strides = [1, 1, 1]} : vector<4x16x16xf32> to vector<1x16x16xf32>
    %189 = vector.shape_cast %188 : vector<1x16x16xf32> to vector<16x16xf32>
    %190 = tpu.concatenate %183, %185, %187, %189 in 1 : vector<16x16xf32>, vector<16x16xf32>, vector<16x16xf32>, vector<16x16xf32> -> vector<16x64xf32>
    %c0_53 = arith.constant 0 : index
    %c0_54 = arith.constant 0 : index
    %191 = vector.load %arg10[%c0_53, %c0_54] : memref<64x64xf32, #tpu.memory_space<vmem>>, vector<64x64xf32>
    %cst_55 = arith.constant dense<0.000000e+00> : vector<16x64xf32>
    %192 = tpu.matmul %190, %191, %cst_55 {dimension_numbers = #tpu.dot_dimension_numbers<[1], [0], [0], [1], [0, 0, 1, 1], [], []>} : vector<16x64xf32>, vector<64x64xf32>, vector<16x64xf32> -> vector<16x64xf32>
    %c0_56 = arith.constant 0 : index
    %c0_57 = arith.constant 0 : index
    %193 = vector.load %arg11[%c0_56, %c0_57] : memref<1x64xf32, #tpu.memory_space<vmem>>, vector<1x64xf32>
    %194 = vector.broadcast %193 : vector<1x64xf32> to vector<16x64xf32>
    %195 = arith.addf %192, %194 : vector<16x64xf32>
    %c0_58 = arith.constant 0 : index
    %c0_59 = arith.constant 0 : index
    %c0_60 = arith.constant 0 : index
    %196 = vector.load %arg12[%c0_58, %c0_59, %c0_60] : memref<1x16x64xf32, #tpu.memory_space<vmem>>, vector<1x16x64xf32>
    %197 = vector.shape_cast %196 : vector<1x16x64xf32> to vector<16x64xf32>
    %198 = vector.shape_cast %195 : vector<16x64xf32> to vector<1x16x64xf32>
    tpu.vector_store %arg12[%c0_58, %c0_59, %c0_60], %198 {strides = array<i32>} : memref<1x16x64xf32, #tpu.memory_space<vmem>>, vector<1x16x64xf32>,
    return
  }
  func.func @transform_0(%arg0: i32, %arg1: i32) -> (i32, i32, i32) {
    %c0_i32 = arith.constant 0 : i32
    %c0_i32_0 = arith.constant 0 : i32
    %c0_i32_1 = arith.constant 0 : i32
    return %arg0, %c0_i32, %c0_i32_0 : i32, i32, i32
  }
  func.func @transform_1(%arg0: i32, %arg1: i32) -> (i32, i32, i32) {
    %c0_i32 = arith.constant 0 : i32
    %c0_i32_0 = arith.constant 0 : i32
    %c0_i32_1 = arith.constant 0 : i32
    %c0_i32_2 = arith.constant 0 : i32
    return %c0_i32, %c0_i32_0, %c0_i32_1 : i32, i32, i32
  }
  func.func @transform_2(%arg0: i32, %arg1: i32) -> (i32, i32) {
    %c0_i32 = arith.constant 0 : i32
    %c0_i32_0 = arith.constant 0 : i32
    %c0_i32_1 = arith.constant 0 : i32
    return %c0_i32, %c0_i32_0 : i32, i32
  }
  func.func @transform_3(%arg0: i32, %arg1: i32) -> (i32, i32) {
    %c0_i32 = arith.constant 0 : i32
    %c0_i32_0 = arith.constant 0 : i32
    %c0_i32_1 = arith.constant 0 : i32
    return %c0_i32, %c0_i32_0 : i32, i32
  }
  func.func @transform_4(%arg0: i32, %arg1: i32) -> (i32, i32) {
    %c0_i32 = arith.constant 0 : i32
    %c0_i32_0 = arith.constant 0 : i32
    %c0_i32_1 = arith.constant 0 : i32
    return %c0_i32, %c0_i32_0 : i32, i32
  }
  func.func @transform_5(%arg0: i32, %arg1: i32) -> (i32, i32) {
    %c0_i32 = arith.constant 0 : i32
    %c0_i32_0 = arith.constant 0 : i32
    %c0_i32_1 = arith.constant 0 : i32
    return %c0_i32, %c0_i32_0 : i32, i32
  }
  func.func @transform_6(%arg0: i32, %arg1: i32) -> (i32, i32) {
    %c0_i32 = arith.constant 0 : i32
    %c0_i32_0 = arith.constant 0 : i32
    %c0_i32_1 = arith.constant 0 : i32
    return %c0_i32, %c0_i32_0 : i32, i32
  }
  func.func @transform_7(%arg0: i32, %arg1: i32) -> (i32, i32) {
    %c0_i32 = arith.constant 0 : i32
    %c0_i32_0 = arith.constant 0 : i32
    %c0_i32_1 = arith.constant 0 : i32
    return %c0_i32, %c0_i32_0 : i32, i32
  }
  func.func @transform_8(%arg0: i32, %arg1: i32) -> (i32, i32) {
    %c0_i32 = arith.constant 0 : i32
    %c0_i32_0 = arith.constant 0 : i32
    %c0_i32_1 = arith.constant 0 : i32
    return %c0_i32, %c0_i32_0 : i32, i32
  }
  func.func @transform_9(%arg0: i32, %arg1: i32) -> (i32, i32) {
    %c0_i32 = arith.constant 0 : i32
    %c0_i32_0 = arith.constant 0 : i32
    %c0_i32_1 = arith.constant 0 : i32
    return %c0_i32, %c0_i32_0 : i32, i32
  }
  func.func @transform_10(%arg0: i32, %arg1: i32) -> (i32, i32, i32) {
    %c0_i32 = arith.constant 0 : i32
    %c0_i32_0 = arith.constant 0 : i32
    return %arg0, %arg1, %c0_i32 : i32, i32, i32
  }
}

module attributes {stable_mosaic.version = 11 : i64} {
  func.func @mhsa_kernel(%arg0: i32, %arg1: i32, %arg2: memref<1x16x64xf32, #tpu.memory_space<vmem>>, %arg3: memref<4x16x16xf32, #tpu.memory_space<vmem>>, %arg4: memref<1x64xf32, #tpu.memory_space<vmem>>, %arg5: memref<1x64xf32, #tpu.memory_space<vmem>>, %arg6: memref<64x192xf32, #tpu.memory_space<vmem>>, %arg7: memref<1x192xf32, #tpu.memory_space<vmem>>, %arg8: memref<1x64xf32, #tpu.memory_space<vmem>>, %arg9: memref<1x64xf32, #tpu.memory_space<vmem>>, %arg10: memref<64x64xf32, #tpu.memory_space<vmem>>, %arg11: memref<1x64xf32, #tpu.memory_space<vmem>>, %arg12: memref<1x16x64xf32, #tpu.memory_space<vmem>>, %arg13: memref<4x16x16xf32, #tpu.memory_space<vmem>>, %arg14: memref<4x17x16xf32, #tpu.memory_space<vmem>>, %arg15: memref<4x16x16xf32, #tpu.memory_space<vmem>>, %arg16: memref<4x16x16xf32, #tpu.memory_space<vmem>>) attributes {dimension_semantics = [#tpu.dimension_semantics<parallel>, #tpu.dimension_semantics<arbitrary>], iteration_bounds = array<i64: 2, 1>, scalar_prefetch = 0 : i64, scratch_operands = 4 : i64, tpu.core_type = #tpu.core_type<tc>, window_params = [{transform_indices = @transform_0, window_bounds = array<i64: 1, 16, 64>}, {pipeline_mode = #tpu.pipeline_mode<synchronous>, transform_indices = @transform_1, window_bounds = array<i64: 4, 16, 16>}, {pipeline_mode = #tpu.pipeline_mode<synchronous>, transform_indices = @transform_2, window_bounds = array<i64: 1, 64>}, {pipeline_mode = #tpu.pipeline_mode<synchronous>, transform_indices = @transform_3, window_bounds = array<i64: 1, 64>}, {pipeline_mode = #tpu.pipeline_mode<synchronous>, transform_indices = @transform_4, window_bounds = array<i64: 64, 192>}, {pipeline_mode = #tpu.pipeline_mode<synchronous>, transform_indices = @transform_5, window_bounds = array<i64: 1, 192>}, {pipeline_mode = #tpu.pipeline_mode<synchronous>, transform_indices = @transform_6, window_bounds = array<i64: 1, 64>}, {pipeline_mode = #tpu.pipeline_mode<synchronous>, transform_indices = @transform_7, window_bounds = array<i64: 1, 64>}, {pipeline_mode = #tpu.pipeline_mode<synchronous>, transform_indices = @transform_8, window_bounds = array<i64: 64, 64>}, {pipeline_mode = #tpu.pipeline_mode<synchronous>, transform_indices = @transform_9, window_bounds = array<i64: 1, 64>}, {transform_indices = @transform_10, window_bounds = array<i64: 1, 16, 64>}]} {
    %c0_i32 = arith.constant 0 : i32
    %0 = arith.cmpi eq, %arg1, %c0_i32 : i32
    %1 = arith.extui %0 : i1 to i32
    %c0_i32_0 = arith.constant 0 : i32
    %2 = arith.cmpi ne, %1, %c0_i32_0 : i32
    scf.if %2 {
      %c0_61 = arith.constant 0 : index
      %c0_62 = arith.constant 0 : index
      %c0_63 = arith.constant 0 : index
      %199 = vector.load %arg2[%c0_61, %c0_62, %c0_63] : memref<1x16x64xf32, #tpu.memory_space<vmem>>, vector<1x16x64xf32>
      %200 = vector.shape_cast %199 : vector<1x16x64xf32> to vector<16x64xf32>
      %cst_64 = arith.constant dense<0.000000e+00> : vector<16xf32>
      %201 = vector.multi_reduction <add>, %200, %cst_64 [1] : vector<16x64xf32> to vector<16xf32>
      %202 = vector.shape_cast %201 : vector<16xf32> to vector<16x1xf32>
      %cst_65 = arith.constant 6.400000e+01 : f32
      %203 = vector.broadcast %cst_65 : f32 to vector<16x1xf32>
      %204 = arith.divf %202, %203 : vector<16x1xf32>
      %205 = vector.broadcast %204 : vector<16x1xf32> to vector<16x64xf32>
      %206 = arith.subf %200, %205 : vector<16x64xf32>
      %207 = arith.mulf %206, %206 : vector<16x64xf32>
      %cst_66 = arith.constant dense<0.000000e+00> : vector<16xf32>
      %208 = vector.multi_reduction <add>, %207, %cst_66 [1] : vector<16x64xf32> to vector<16xf32>
      %209 = vector.shape_cast %208 : vector<16xf32> to vector<16x1xf32>
      %cst_67 = arith.constant 6.400000e+01 : f32
      %210 = vector.broadcast %cst_67 : f32 to vector<16x1xf32>
      %211 = arith.divf %209, %210 : vector<16x1xf32>
      %212 = vector.broadcast %204 : vector<16x1xf32> to vector<16x64xf32>
      %213 = arith.subf %200, %212 : vector<16x64xf32>
      %cst_68 = arith.constant 9.99999974E-6 : f32
      %214 = vector.broadcast %cst_68 : f32 to vector<16x1xf32>
      %215 = arith.addf %211, %214 : vector<16x1xf32>
      %216 = math.rsqrt %215 : vector<16x1xf32>
      %217 = vector.broadcast %216 : vector<16x1xf32> to vector<16x64xf32>
      %218 = arith.mulf %213, %217 : vector<16x64xf32>
      %c0_69 = arith.constant 0 : index
      %c0_70 = arith.constant 0 : index
      %219 = vector.load %arg4[%c0_69, %c0_70] : memref<1x64xf32, #tpu.memory_space<vmem>>, vector<1x64xf32>
      %220 = vector.broadcast %219 : vector<1x64xf32> to vector<16x64xf32>
      %221 = arith.mulf %218, %220 : vector<16x64xf32>
      %c0_71 = arith.constant 0 : index
      %c0_72 = arith.constant 0 : index
      %222 = vector.load %arg5[%c0_71, %c0_72] : memref<1x64xf32, #tpu.memory_space<vmem>>, vector<1x64xf32>
      %223 = vector.broadcast %222 : vector<1x64xf32> to vector<16x64xf32>
      %224 = arith.addf %221, %223 : vector<16x64xf32>
      %c0_73 = arith.constant 0 : index
      %c0_74 = arith.constant 0 : index
      %225 = vector.load %arg6[%c0_73, %c0_74] : memref<64x192xf32, #tpu.memory_space<vmem>>, vector<64x192xf32>
      %cst_75 = arith.constant dense<0.000000e+00> : vector<16x192xf32>
      %226 = tpu.matmul %224, %225, %cst_75 {dimension_numbers = #tpu.dot_dimension_numbers<[1], [0], [0], [1], [0, 0, 1, 1], [], []>} : vector<16x64xf32>, vector<64x192xf32>, vector<16x192xf32> -> vector<16x192xf32>
      %c0_76 = arith.constant 0 : index
      %c0_77 = arith.constant 0 : index
      %227 = vector.load %arg7[%c0_76, %c0_77] : memref<1x192xf32, #tpu.memory_space<vmem>>, vector<1x192xf32>
      %228 = vector.broadcast %227 : vector<1x192xf32> to vector<16x192xf32>
      %229 = arith.addf %226, %228 : vector<16x192xf32>
      %230 = vector.extract_strided_slice %229 {offsets = [0, 0], sizes = [16, 64], strides = [1, 1]} : vector<16x192xf32> to vector<16x64xf32>
      %231 = vector.extract_strided_slice %229 {offsets = [0, 64], sizes = [16, 64], strides = [1, 1]} : vector<16x192xf32> to vector<16x64xf32>
      %232 = vector.extract_strided_slice %229 {offsets = [0, 128], sizes = [16, 64], strides = [1, 1]} : vector<16x192xf32> to vector<16x64xf32>
      %c0_78 = arith.constant 0 : index
      %c0_79 = arith.constant 0 : index
      %233 = vector.load %arg8[%c0_78, %c0_79] : memref<1x64xf32, #tpu.memory_space<vmem>>, vector<1x64xf32>
      %234 = vector.broadcast %233 : vector<1x64xf32> to vector<16x64xf32>
      %235 = arith.addf %230, %234 : vector<16x64xf32>
      %cst_80 = arith.constant 1.250000e-01 : f32
      %236 = vector.broadcast %cst_80 : f32 to vector<16x64xf32>
      %237 = arith.mulf %235, %236 : vector<16x64xf32>
      %c0_81 = arith.constant 0 : index
      %c0_82 = arith.constant 0 : index
      %238 = vector.load %arg9[%c0_81, %c0_82] : memref<1x64xf32, #tpu.memory_space<vmem>>, vector<1x64xf32>
      %239 = vector.broadcast %238 : vector<1x64xf32> to vector<16x64xf32>
      %240 = arith.addf %230, %239 : vector<16x64xf32>
      %cst_83 = arith.constant 1.250000e-01 : f32
      %241 = vector.broadcast %cst_83 : f32 to vector<16x64xf32>
      %242 = arith.mulf %240, %241 : vector<16x64xf32>
      %243 = vector.extract_strided_slice %237 {offsets = [0, 0], sizes = [16, 16], strides = [1, 1]} : vector<16x64xf32> to vector<16x16xf32>
      %244 = vector.extract_strided_slice %237 {offsets = [0, 16], sizes = [16, 16], strides = [1, 1]} : vector<16x64xf32> to vector<16x16xf32>
      %245 = vector.extract_strided_slice %237 {offsets = [0, 32], sizes = [16, 16], strides = [1, 1]} : vector<16x64xf32> to vector<16x16xf32>
      %246 = vector.extract_strided_slice %237 {offsets = [0, 48], sizes = [16, 16], strides = [1, 1]} : vector<16x64xf32> to vector<16x16xf32>
      %247 = vector.shape_cast %243 : vector<16x16xf32> to vector<1x16x16xf32>
      %248 = vector.shape_cast %244 : vector<16x16xf32> to vector<1x16x16xf32>
      %249 = vector.shape_cast %245 : vector<16x16xf32> to vector<1x16x16xf32>
      %250 = vector.shape_cast %246 : vector<16x16xf32> to vector<1x16x16xf32>
      %251 = tpu.concatenate %247, %248, %249, %250 in 0 : vector<1x16x16xf32>, vector<1x16x16xf32>, vector<1x16x16xf32>, vector<1x16x16xf32> -> vector<4x16x16xf32>
      %c0_84 = arith.constant 0 : index
      %c0_85 = arith.constant 0 : index
      %c0_86 = arith.constant 0 : index
      %252 = vector.load %arg13[%c0_84, %c0_85, %c0_86] : memref<4x16x16xf32, #tpu.memory_space<vmem>>, vector<4x16x16xf32>
      tpu.vector_store %arg13[%c0_84, %c0_85, %c0_86], %251 {strides = array<i32>} : memref<4x16x16xf32, #tpu.memory_space<vmem>>, vector<4x16x16xf32>,
      %253 = vector.extract_strided_slice %242 {offsets = [0, 0], sizes = [16, 16], strides = [1, 1]} : vector<16x64xf32> to vector<16x16xf32>
      %254 = vector.extract_strided_slice %242 {offsets = [0, 16], sizes = [16, 16], strides = [1, 1]} : vector<16x64xf32> to vector<16x16xf32>
      %255 = vector.extract_strided_slice %242 {offsets = [0, 32], sizes = [16, 16], strides = [1, 1]} : vector<16x64xf32> to vector<16x16xf32>
      %256 = vector.extract_strided_slice %242 {offsets = [0, 48], sizes = [16, 16], strides = [1, 1]} : vector<16x64xf32> to vector<16x16xf32>
      %257 = vector.shape_cast %253 : vector<16x16xf32> to vector<1x16x16xf32>
      %258 = vector.shape_cast %254 : vector<16x16xf32> to vector<1x16x16xf32>
      %259 = vector.shape_cast %255 : vector<16x16xf32> to vector<1x16x16xf32>
      %260 = vector.shape_cast %256 : vector<16x16xf32> to vector<1x16x16xf32>
      %261 = tpu.concatenate %257, %258, %259, %260 in 0 : vector<1x16x16xf32>, vector<1x16x16xf32>, vector<1x16x16xf32>, vector<1x16x16xf32> -> vector<4x16x16xf32>
      %cst_87 = arith.constant 0.000000e+00 : f32
      %262 = vector.broadcast %cst_87 : f32 to vector<4x1x16xf32>
      %263 = tpu.concatenate %261, %262 in 1 : vector<4x16x16xf32>, vector<4x1x16xf32> -> vector<4x17x16xf32>
      %c0_88 = arith.constant 0 : index
      %c0_89 = arith.constant 0 : index
      %c0_90 = arith.constant 0 : index
      %264 = vector.load %arg14[%c0_88, %c0_89, %c0_90] : memref<4x17x16xf32, #tpu.memory_space<vmem>>, vector<4x17x16xf32>
      tpu.vector_store %arg14[%c0_88, %c0_89, %c0_90], %263 {strides = array<i32>} : memref<4x17x16xf32, #tpu.memory_space<vmem>>, vector<4x17x16xf32>,
      %265 = vector.extract_strided_slice %231 {offsets = [0, 0], sizes = [16, 16], strides = [1, 1]} : vector<16x64xf32> to vector<16x16xf32>
      %266 = vector.extract_strided_slice %231 {offsets = [0, 16], sizes = [16, 16], strides = [1, 1]} : vector<16x64xf32> to vector<16x16xf32>
      %267 = vector.extract_strided_slice %231 {offsets = [0, 32], sizes = [16, 16], strides = [1, 1]} : vector<16x64xf32> to vector<16x16xf32>
      %268 = vector.extract_strided_slice %231 {offsets = [0, 48], sizes = [16, 16], strides = [1, 1]} : vector<16x64xf32> to vector<16x16xf32>
      %269 = vector.shape_cast %265 : vector<16x16xf32> to vector<1x16x16xf32>
      %270 = vector.shape_cast %266 : vector<16x16xf32> to vector<1x16x16xf32>
      %271 = vector.shape_cast %267 : vector<16x16xf32> to vector<1x16x16xf32>
      %272 = vector.shape_cast %268 : vector<16x16xf32> to vector<1x16x16xf32>
      %273 = tpu.concatenate %269, %270, %271, %272 in 0 : vector<1x16x16xf32>, vector<1x16x16xf32>, vector<1x16x16xf32>, vector<1x16x16xf32> -> vector<4x16x16xf32>
      %c0_91 = arith.constant 0 : index
      %c0_92 = arith.constant 0 : index
      %c0_93 = arith.constant 0 : index
      %274 = vector.load %arg15[%c0_91, %c0_92, %c0_93] : memref<4x16x16xf32, #tpu.memory_space<vmem>>, vector<4x16x16xf32>
      tpu.vector_store %arg15[%c0_91, %c0_92, %c0_93], %273 {strides = array<i32>} : memref<4x16x16xf32, #tpu.memory_space<vmem>>, vector<4x16x16xf32>,
      %275 = vector.extract_strided_slice %232 {offsets = [0, 0], sizes = [16, 16], strides = [1, 1]} : vector<16x64xf32> to vector<16x16xf32>
      %276 = vector.extract_strided_slice %232 {offsets = [0, 16], sizes = [16, 16], strides = [1, 1]} : vector<16x64xf32> to vector<16x16xf32>
      %277 = vector.extract_strided_slice %232 {offsets = [0, 32], sizes = [16, 16], strides = [1, 1]} : vector<16x64xf32> to vector<16x16xf32>
      %278 = vector.extract_strided_slice %232 {offsets = [0, 48], sizes = [16, 16], strides = [1, 1]} : vector<16x64xf32> to vector<16x16xf32>
      %279 = vector.shape_cast %275 : vector<16x16xf32> to vector<1x16x16xf32>
      %280 = vector.shape_cast %276 : vector<16x16xf32> to vector<1x16x16xf32>
      %281 = vector.shape_cast %277 : vector<16x16xf32> to vector<1x16x16xf32>
      %282 = vector.shape_cast %278 : vector<16x16xf32> to vector<1x16x16xf32>
      %283 = tpu.concatenate %279, %280, %281, %282 in 0 : vector<1x16x16xf32>, vector<1x16x16xf32>, vector<1x16x16xf32>, vector<1x16x16xf32> -> vector<4x16x16xf32>
      %c0_94 = arith.constant 0 : index
      %c0_95 = arith.constant 0 : index
      %c0_96 = arith.constant 0 : index
      %284 = vector.load %arg16[%c0_94, %c0_95, %c0_96] : memref<4x16x16xf32, #tpu.memory_space<vmem>>, vector<4x16x16xf32>
      tpu.vector_store %arg16[%c0_94, %c0_95, %c0_96], %283 {strides = array<i32>} : memref<4x16x16xf32, #tpu.memory_space<vmem>>, vector<4x16x16xf32>,
    } else {
    }
    %c16_i32 = arith.constant 16 : i32
    %3 = arith.muli %arg1, %c16_i32 : i32
    %4 = tpu.assume_multiple %3, 16 : i32
    %c0 = arith.constant 0 : index
    %5 = arith.index_cast %4 : i32 to index
    %c0_1 = arith.constant 0 : index
    %6 = vector.load %arg13[%c0, %5, %c0_1] : memref<4x16x16xf32, #tpu.memory_space<vmem>>, vector<4x16x16xf32>
    %c0_2 = arith.constant 0 : index
    %7 = arith.index_cast %4 : i32 to index
    %c0_3 = arith.constant 0 : index
    %8 = vector.load %arg14[%c0_2, %7, %c0_3] : memref<4x17x16xf32, #tpu.memory_space<vmem>>, vector<4x17x16xf32>
    %c0_4 = arith.constant 0 : index
    %c0_5 = arith.constant 0 : index
    %c0_6 = arith.constant 0 : index
    %9 = vector.load %arg15[%c0_4, %c0_5, %c0_6] : memref<4x16x16xf32, #tpu.memory_space<vmem>>, vector<4x16x16xf32>
    %c0_7 = arith.constant 0 : index
    %c0_8 = arith.constant 0 : index
    %c0_9 = arith.constant 0 : index
    %10 = vector.load %arg16[%c0_7, %c0_8, %c0_9] : memref<4x16x16xf32, #tpu.memory_space<vmem>>, vector<4x16x16xf32>
    %c0_10 = arith.constant 0 : index
    %c0_11 = arith.constant 0 : index
    %c0_12 = arith.constant 0 : index
    %11 = vector.load %arg3[%c0_10, %c0_11, %c0_12] : memref<4x16x16xf32, #tpu.memory_space<vmem>>, vector<4x16x16xf32>
    "tpu.trace_start"() <{level = 10 : i32, message = "htd,hsd->hts"}> : () -> ()
    %cst = arith.constant dense<0.000000e+00> : vector<4x16x16xf32>
    %12 = tpu.matmul %6, %9, %cst {dimension_numbers = #tpu.dot_dimension_numbers<[2], [2], [1], [1], [0, 0, 0, 1, 1, 1], [0], [0]>} : vector<4x16x16xf32>, vector<4x16x16xf32>, vector<4x16x16xf32> -> vector<4x16x16xf32>
    %cst_13 = arith.constant dense<0.000000e+00> : vector<4x17x16xf32>
    %13 = tpu.matmul %8, %11, %cst_13 {dimension_numbers = #tpu.dot_dimension_numbers<[2], [2], [1], [1], [0, 0, 0, 1, 1, 1], [0], [0]>} : vector<4x17x16xf32>, vector<4x16x16xf32>, vector<4x17x16xf32> -> vector<4x17x16xf32>
    "tpu.trace_stop"() : () -> ()
    %14 = vector.extract_strided_slice %13 {offsets = [0, 0, 0], sizes = [4, 16, 16], strides = [1, 1, 1]} : vector<4x17x16xf32> to vector<4x16x16xf32>
    %15 = vector.extract_strided_slice %13 {offsets = [0, 1, 0], sizes = [4, 16, 16], strides = [1, 1, 1]} : vector<4x17x16xf32> to vector<4x16x16xf32>
    %16 = tpu.iota {dimensions = array<i32: 1>} : vector<1x16x1xi32>
    %17 = vector.broadcast %4 : i32 to vector<1x16x1xi32>
    %18 = arith.addi %16, %17 : vector<1x16x1xi32>
    %19 = tpu.iota {dimensions = array<i32: 1>} : vector<1x16x16xi32>
    %20 = vector.broadcast %4 : i32 to vector<1x16x16xi32>
    %21 = arith.addi %19, %20 : vector<1x16x16xi32>
    %22 = tpu.iota {dimensions = array<i32: 2>} : vector<1x16x16xi32>
    %c15_i32 = arith.constant 15 : i32
    %23 = vector.broadcast %c15_i32 : i32 to vector<1x16x1xi32>
    %24 = arith.subi %23, %18 : vector<1x16x1xi32>
    %c16_i32_14 = arith.constant 16 : i32
    %c0_i32_15 = arith.constant 0 : i32
    %25 = arith.cmpi eq, %c16_i32_14, %c0_i32_15 : i32
    %c1_i32 = arith.constant 1 : i32
    %26 = arith.select %25, %c1_i32, %c16_i32_14 : i32
    %27 = vector.broadcast %26 : i32 to vector<1x16x1xi32>
    %28 = arith.remsi %24, %27 : vector<1x16x1xi32>
    %c0_i32_16 = arith.constant 0 : i32
    %29 = vector.broadcast %c0_i32_16 : i32 to vector<1x16x1xi32>
    %30 = arith.cmpi ne, %28, %29 : vector<1x16x1xi32>
    %c0_i32_17 = arith.constant 0 : i32
    %31 = vector.broadcast %c0_i32_17 : i32 to vector<1x16x1xi32>
    %32 = arith.cmpi slt, %28, %31 : vector<1x16x1xi32>
    %c0_i32_18 = arith.constant 0 : i32
    %33 = arith.cmpi slt, %26, %c0_i32_18 : i32
    %34 = vector.broadcast %33 : i1 to vector<1x16x1xi1>
    %35 = vector.broadcast %34 : vector<1x16x1xi1> to vector<1x16x1xi1>
    %36 = arith.xori %32, %35 : vector<1x16x1xi1>
    %37 = arith.andi %36, %30 : vector<1x16x1xi1>
    %38 = vector.broadcast %26 : i32 to vector<1x16x1xi32>
    %39 = arith.addi %28, %38 : vector<1x16x1xi32>
    %40 = arith.select %37, %39, %28 : vector<1x16x1xi1>, vector<1x16x1xi32>
    %c0_i32_19 = arith.constant 0 : i32
    %41 = vector.broadcast %c0_i32_19 : i32 to vector<1x16x1xi32>
    %42 = arith.shrsi %40, %41 : vector<1x16x1xi32>
    %c1_i32_20 = arith.constant 1 : i32
    %43 = vector.broadcast %c1_i32_20 : i32 to vector<1x16x1xi32>
    %44 = arith.andi %42, %43 : vector<1x16x1xi32>
    %c1_i32_21 = arith.constant 1 : i32
    %45 = vector.broadcast %c1_i32_21 : i32 to vector<1x16x1xi32>
    %46 = arith.cmpi eq, %44, %45 : vector<1x16x1xi32>
    %47 = vector.extract_strided_slice %14 {offsets = [0, 0, 1], sizes = [4, 16, 15], strides = [1, 1, 1]} : vector<4x16x16xf32> to vector<4x16x15xf32>
    %48 = vector.extract_strided_slice %14 {offsets = [0, 0, 0], sizes = [4, 16, 1], strides = [1, 1, 1]} : vector<4x16x16xf32> to vector<4x16x1xf32>
    %49 = tpu.concatenate %47, %48 in 2 : vector<4x16x15xf32>, vector<4x16x1xf32> -> vector<4x16x16xf32>
    %50 = vector.shape_cast %46 : vector<1x16x1xi1> to vector<1x16x1xi1>
    %51 = vector.broadcast %50 : vector<1x16x1xi1> to vector<4x16x16xi1>
    %52 = arith.select %51, %49, %14 : vector<4x16x16xi1>, vector<4x16x16xf32>
    %c1_i32_22 = arith.constant 1 : i32
    %53 = vector.broadcast %c1_i32_22 : i32 to vector<1x16x1xi32>
    %54 = arith.shrsi %40, %53 : vector<1x16x1xi32>
    %c1_i32_23 = arith.constant 1 : i32
    %55 = vector.broadcast %c1_i32_23 : i32 to vector<1x16x1xi32>
    %56 = arith.andi %54, %55 : vector<1x16x1xi32>
    %c1_i32_24 = arith.constant 1 : i32
    %57 = vector.broadcast %c1_i32_24 : i32 to vector<1x16x1xi32>
    %58 = arith.cmpi eq, %56, %57 : vector<1x16x1xi32>
    %59 = vector.extract_strided_slice %52 {offsets = [0, 0, 2], sizes = [4, 16, 14], strides = [1, 1, 1]} : vector<4x16x16xf32> to vector<4x16x14xf32>
    %60 = vector.extract_strided_slice %52 {offsets = [0, 0, 0], sizes = [4, 16, 2], strides = [1, 1, 1]} : vector<4x16x16xf32> to vector<4x16x2xf32>
    %61 = tpu.concatenate %59, %60 in 2 : vector<4x16x14xf32>, vector<4x16x2xf32> -> vector<4x16x16xf32>
    %62 = vector.shape_cast %58 : vector<1x16x1xi1> to vector<1x16x1xi1>
    %63 = vector.broadcast %62 : vector<1x16x1xi1> to vector<4x16x16xi1>
    %64 = arith.select %63, %61, %52 : vector<4x16x16xi1>, vector<4x16x16xf32>
    %c2_i32 = arith.constant 2 : i32
    %65 = vector.broadcast %c2_i32 : i32 to vector<1x16x1xi32>
    %66 = arith.shrsi %40, %65 : vector<1x16x1xi32>
    %c1_i32_25 = arith.constant 1 : i32
    %67 = vector.broadcast %c1_i32_25 : i32 to vector<1x16x1xi32>
    %68 = arith.andi %66, %67 : vector<1x16x1xi32>
    %c1_i32_26 = arith.constant 1 : i32
    %69 = vector.broadcast %c1_i32_26 : i32 to vector<1x16x1xi32>
    %70 = arith.cmpi eq, %68, %69 : vector<1x16x1xi32>
    %71 = vector.extract_strided_slice %64 {offsets = [0, 0, 4], sizes = [4, 16, 12], strides = [1, 1, 1]} : vector<4x16x16xf32> to vector<4x16x12xf32>
    %72 = vector.extract_strided_slice %64 {offsets = [0, 0, 0], sizes = [4, 16, 4], strides = [1, 1, 1]} : vector<4x16x16xf32> to vector<4x16x4xf32>
    %73 = tpu.concatenate %71, %72 in 2 : vector<4x16x12xf32>, vector<4x16x4xf32> -> vector<4x16x16xf32>
    %74 = vector.shape_cast %70 : vector<1x16x1xi1> to vector<1x16x1xi1>
    %75 = vector.broadcast %74 : vector<1x16x1xi1> to vector<4x16x16xi1>
    %76 = arith.select %75, %73, %64 : vector<4x16x16xi1>, vector<4x16x16xf32>
    %c3_i32 = arith.constant 3 : i32
    %77 = vector.broadcast %c3_i32 : i32 to vector<1x16x1xi32>
    %78 = arith.shrsi %40, %77 : vector<1x16x1xi32>
    %c1_i32_27 = arith.constant 1 : i32
    %79 = vector.broadcast %c1_i32_27 : i32 to vector<1x16x1xi32>
    %80 = arith.andi %78, %79 : vector<1x16x1xi32>
    %c1_i32_28 = arith.constant 1 : i32
    %81 = vector.broadcast %c1_i32_28 : i32 to vector<1x16x1xi32>
    %82 = arith.cmpi eq, %80, %81 : vector<1x16x1xi32>
    %83 = vector.extract_strided_slice %76 {offsets = [0, 0, 8], sizes = [4, 16, 8], strides = [1, 1, 1]} : vector<4x16x16xf32> to vector<4x16x8xf32>
    %84 = vector.extract_strided_slice %76 {offsets = [0, 0, 0], sizes = [4, 16, 8], strides = [1, 1, 1]} : vector<4x16x16xf32> to vector<4x16x8xf32>
    %85 = tpu.concatenate %83, %84 in 2 : vector<4x16x8xf32>, vector<4x16x8xf32> -> vector<4x16x16xf32>
    %86 = vector.shape_cast %82 : vector<1x16x1xi1> to vector<1x16x1xi1>
    %87 = vector.broadcast %86 : vector<1x16x1xi1> to vector<4x16x16xi1>
    %88 = arith.select %87, %85, %76 : vector<4x16x16xi1>, vector<4x16x16xf32>
    %c14_i32 = arith.constant 14 : i32
    %89 = vector.broadcast %c14_i32 : i32 to vector<1x16x1xi32>
    %90 = arith.subi %89, %18 : vector<1x16x1xi32>
    %c16_i32_29 = arith.constant 16 : i32
    %c0_i32_30 = arith.constant 0 : i32
    %91 = arith.cmpi eq, %c16_i32_29, %c0_i32_30 : i32
    %c1_i32_31 = arith.constant 1 : i32
    %92 = arith.select %91, %c1_i32_31, %c16_i32_29 : i32
    %93 = vector.broadcast %92 : i32 to vector<1x16x1xi32>
    %94 = arith.remsi %90, %93 : vector<1x16x1xi32>
    %c0_i32_32 = arith.constant 0 : i32
    %95 = vector.broadcast %c0_i32_32 : i32 to vector<1x16x1xi32>
    %96 = arith.cmpi ne, %94, %95 : vector<1x16x1xi32>
    %c0_i32_33 = arith.constant 0 : i32
    %97 = vector.broadcast %c0_i32_33 : i32 to vector<1x16x1xi32>
    %98 = arith.cmpi slt, %94, %97 : vector<1x16x1xi32>
    %c0_i32_34 = arith.constant 0 : i32
    %99 = arith.cmpi slt, %92, %c0_i32_34 : i32
    %100 = vector.broadcast %99 : i1 to vector<1x16x1xi1>
    %101 = vector.broadcast %100 : vector<1x16x1xi1> to vector<1x16x1xi1>
    %102 = arith.xori %98, %101 : vector<1x16x1xi1>
    %103 = arith.andi %102, %96 : vector<1x16x1xi1>
    %104 = vector.broadcast %92 : i32 to vector<1x16x1xi32>
    %105 = arith.addi %94, %104 : vector<1x16x1xi32>
    %106 = arith.select %103, %105, %94 : vector<1x16x1xi1>, vector<1x16x1xi32>
    %c0_i32_35 = arith.constant 0 : i32
    %107 = vector.broadcast %c0_i32_35 : i32 to vector<1x16x1xi32>
    %108 = arith.shrsi %106, %107 : vector<1x16x1xi32>
    %c1_i32_36 = arith.constant 1 : i32
    %109 = vector.broadcast %c1_i32_36 : i32 to vector<1x16x1xi32>
    %110 = arith.andi %108, %109 : vector<1x16x1xi32>
    %c1_i32_37 = arith.constant 1 : i32
    %111 = vector.broadcast %c1_i32_37 : i32 to vector<1x16x1xi32>
    %112 = arith.cmpi eq, %110, %111 : vector<1x16x1xi32>
    %113 = vector.extract_strided_slice %15 {offsets = [0, 0, 1], sizes = [4, 16, 15], strides = [1, 1, 1]} : vector<4x16x16xf32> to vector<4x16x15xf32>
    %114 = vector.extract_strided_slice %15 {offsets = [0, 0, 0], sizes = [4, 16, 1], strides = [1, 1, 1]} : vector<4x16x16xf32> to vector<4x16x1xf32>
    %115 = tpu.concatenate %113, %114 in 2 : vector<4x16x15xf32>, vector<4x16x1xf32> -> vector<4x16x16xf32>
    %116 = vector.shape_cast %112 : vector<1x16x1xi1> to vector<1x16x1xi1>
    %117 = vector.broadcast %116 : vector<1x16x1xi1> to vector<4x16x16xi1>
    %118 = arith.select %117, %115, %15 : vector<4x16x16xi1>, vector<4x16x16xf32>
    %c1_i32_38 = arith.constant 1 : i32
    %119 = vector.broadcast %c1_i32_38 : i32 to vector<1x16x1xi32>
    %120 = arith.shrsi %106, %119 : vector<1x16x1xi32>
    %c1_i32_39 = arith.constant 1 : i32
    %121 = vector.broadcast %c1_i32_39 : i32 to vector<1x16x1xi32>
    %122 = arith.andi %120, %121 : vector<1x16x1xi32>
    %c1_i32_40 = arith.constant 1 : i32
    %123 = vector.broadcast %c1_i32_40 : i32 to vector<1x16x1xi32>
    %124 = arith.cmpi eq, %122, %123 : vector<1x16x1xi32>
    %125 = vector.extract_strided_slice %118 {offsets = [0, 0, 2], sizes = [4, 16, 14], strides = [1, 1, 1]} : vector<4x16x16xf32> to vector<4x16x14xf32>
    %126 = vector.extract_strided_slice %118 {offsets = [0, 0, 0], sizes = [4, 16, 2], strides = [1, 1, 1]} : vector<4x16x16xf32> to vector<4x16x2xf32>
    %127 = tpu.concatenate %125, %126 in 2 : vector<4x16x14xf32>, vector<4x16x2xf32> -> vector<4x16x16xf32>
    %128 = vector.shape_cast %124 : vector<1x16x1xi1> to vector<1x16x1xi1>
    %129 = vector.broadcast %128 : vector<1x16x1xi1> to vector<4x16x16xi1>
    %130 = arith.select %129, %127, %118 : vector<4x16x16xi1>, vector<4x16x16xf32>
    %c2_i32_41 = arith.constant 2 : i32
    %131 = vector.broadcast %c2_i32_41 : i32 to vector<1x16x1xi32>
    %132 = arith.shrsi %106, %131 : vector<1x16x1xi32>
    %c1_i32_42 = arith.constant 1 : i32
    %133 = vector.broadcast %c1_i32_42 : i32 to vector<1x16x1xi32>
    %134 = arith.andi %132, %133 : vector<1x16x1xi32>
    %c1_i32_43 = arith.constant 1 : i32
    %135 = vector.broadcast %c1_i32_43 : i32 to vector<1x16x1xi32>
    %136 = arith.cmpi eq, %134, %135 : vector<1x16x1xi32>
    %137 = vector.extract_strided_slice %130 {offsets = [0, 0, 4], sizes = [4, 16, 12], strides = [1, 1, 1]} : vector<4x16x16xf32> to vector<4x16x12xf32>
    %138 = vector.extract_strided_slice %130 {offsets = [0, 0, 0], sizes = [4, 16, 4], strides = [1, 1, 1]} : vector<4x16x16xf32> to vector<4x16x4xf32>
    %139 = tpu.concatenate %137, %138 in 2 : vector<4x16x12xf32>, vector<4x16x4xf32> -> vector<4x16x16xf32>
    %140 = vector.shape_cast %136 : vector<1x16x1xi1> to vector<1x16x1xi1>
    %141 = vector.broadcast %140 : vector<1x16x1xi1> to vector<4x16x16xi1>
    %142 = arith.select %141, %139, %130 : vector<4x16x16xi1>, vector<4x16x16xf32>
    %c3_i32_44 = arith.constant 3 : i32
    %143 = vector.broadcast %c3_i32_44 : i32 to vector<1x16x1xi32>
    %144 = arith.shrsi %106, %143 : vector<1x16x1xi32>
    %c1_i32_45 = arith.constant 1 : i32
    %145 = vector.broadcast %c1_i32_45 : i32 to vector<1x16x1xi32>
    %146 = arith.andi %144, %145 : vector<1x16x1xi32>
    %c1_i32_46 = arith.constant 1 : i32
    %147 = vector.broadcast %c1_i32_46 : i32 to vector<1x16x1xi32>
    %148 = arith.cmpi eq, %146, %147 : vector<1x16x1xi32>
    %149 = vector.extract_strided_slice %142 {offsets = [0, 0, 8], sizes = [4, 16, 8], strides = [1, 1, 1]} : vector<4x16x16xf32> to vector<4x16x8xf32>
    %150 = vector.extract_strided_slice %142 {offsets = [0, 0, 0], sizes = [4, 16, 8], strides = [1, 1, 1]} : vector<4x16x16xf32> to vector<4x16x8xf32>
    %151 = tpu.concatenate %149, %150 in 2 : vector<4x16x8xf32>, vector<4x16x8xf32> -> vector<4x16x16xf32>
    %152 = vector.shape_cast %148 : vector<1x16x1xi1> to vector<1x16x1xi1>
    %153 = vector.broadcast %152 : vector<1x16x1xi1> to vector<4x16x16xi1>
    %154 = arith.select %153, %151, %142 : vector<4x16x16xi1>, vector<4x16x16xf32>
    %155 = arith.cmpi sle, %22, %21 : vector<1x16x16xi32>
    %c1_i32_47 = arith.constant 1 : i32
    %156 = vector.broadcast %c1_i32_47 : i32 to vector<1x16x16xi32>
    %157 = arith.addi %21, %156 : vector<1x16x16xi32>
    %158 = arith.cmpi eq, %22, %157 : vector<1x16x16xi32>
    %cst_48 = arith.constant 0.000000e+00 : f32
    %159 = vector.broadcast %cst_48 : f32 to vector<4x16x16xf32>
    %160 = vector.shape_cast %158 : vector<1x16x16xi1> to vector<1x16x16xi1>
    %161 = vector.broadcast %160 : vector<1x16x16xi1> to vector<4x16x16xi1>
    %162 = arith.select %161, %159, %154 : vector<4x16x16xi1>, vector<4x16x16xf32>
    %163 = vector.shape_cast %155 : vector<1x16x16xi1> to vector<1x16x16xi1>
    %164 = vector.broadcast %163 : vector<1x16x16xi1> to vector<4x16x16xi1>
    %165 = arith.select %164, %88, %162 : vector<4x16x16xi1>, vector<4x16x16xf32>
    %166 = arith.addf %12, %165 : vector<4x16x16xf32>
    %cst_49 = arith.constant dense<0xFF800000> : vector<4x16xf32>
    %167 = vector.multi_reduction <maximumf>, %166, %cst_49 [2] : vector<4x16x16xf32> to vector<4x16xf32>
    %168 = vector.shape_cast %167 : vector<4x16xf32> to vector<4x16x1xf32>
    %169 = vector.broadcast %168 : vector<4x16x1xf32> to vector<4x16x16xf32>
    %170 = arith.subf %166, %169 : vector<4x16x16xf32>
    %171 = math.exp %170 : vector<4x16x16xf32>
    %cst_50 = arith.constant dense<0.000000e+00> : vector<4x16xf32>
    %172 = vector.multi_reduction <add>, %171, %cst_50 [2] : vector<4x16x16xf32> to vector<4x16xf32>
    %173 = vector.shape_cast %172 : vector<4x16xf32> to vector<4x16x1xf32>
    %174 = tpu.reciprocal %173 {approx = true} : vector<4x16x1xf32> -> vector<4x16x1xf32>
    %175 = arith.mulf %173, %174 : vector<4x16x1xf32>
    %cst_51 = arith.constant 2.000000e+00 : f32
    %176 = vector.broadcast %cst_51 : f32 to vector<4x16x1xf32>
    %177 = arith.subf %176, %175 : vector<4x16x1xf32>
    %178 = arith.mulf %174, %177 : vector<4x16x1xf32>
    %179 = vector.broadcast %178 : vector<4x16x1xf32> to vector<4x16x16xf32>
    %180 = arith.mulf %171, %179 : vector<4x16x16xf32>
    "tpu.trace_start"() <{level = 10 : i32, message = "hts,hsd->htd"}> : () -> ()
    %cst_52 = arith.constant dense<0.000000e+00> : vector<4x16x16xf32>
    %181 = tpu.matmul %180, %10, %cst_52 {dimension_numbers = #tpu.dot_dimension_numbers<[2], [1], [1], [2], [0, 0, 0, 1, 1, 2], [0], [0]>} : vector<4x16x16xf32>, vector<4x16x16xf32>, vector<4x16x16xf32> -> vector<4x16x16xf32>
    "tpu.trace_stop"() : () -> ()
    %182 = vector.extract_strided_slice %181 {offsets = [0, 0, 0], sizes = [1, 16, 16], strides = [1, 1, 1]} : vector<4x16x16xf32> to vector<1x16x16xf32>
    %183 = vector.shape_cast %182 : vector<1x16x16xf32> to vector<16x16xf32>
    %184 = vector.extract_strided_slice %181 {offsets = [1, 0, 0], sizes = [1, 16, 16], strides = [1, 1, 1]} : vector<4x16x16xf32> to vector<1x16x16xf32>
    %185 = vector.shape_cast %184 : vector<1x16x16xf32> to vector<16x16xf32>
    %186 = vector.extract_strided_slice %181 {offsets = [2, 0, 0], sizes = [1, 16, 16], strides = [1, 1, 1]} : vector<4x16x16xf32> to vector<1x16x16xf32>
    %187 = vector.shape_cast %186 : vector<1x16x16xf32> to vector<16x16xf32>
    %188 = vector.extract_strided_slice %181 {offsets = [3, 0, 0], sizes = [1, 16, 16], strides = [1, 1, 1]} : vector<4x16x16xf32> to vector<1x16x16xf32>
    %189 = vector.shape_cast %188 : vector<1x16x16xf32> to vector<16x16xf32>
    %190 = tpu.concatenate %183, %185, %187, %189 in 1 : vector<16x16xf32>, vector<16x16xf32>, vector<16x16xf32>, vector<16x16xf32> -> vector<16x64xf32>
    %c0_53 = arith.constant 0 : index
    %c0_54 = arith.constant 0 : index
    %191 = vector.load %arg10[%c0_53, %c0_54] : memref<64x64xf32, #tpu.memory_space<vmem>>, vector<64x64xf32>
    %cst_55 = arith.constant dense<0.000000e+00> : vector<16x64xf32>
    %192 = tpu.matmul %190, %191, %cst_55 {dimension_numbers = #tpu.dot_dimension_numbers<[1], [0], [0], [1], [0, 0, 1, 1], [], []>} : vector<16x64xf32>, vector<64x64xf32>, vector<16x64xf32> -> vector<16x64xf32>
    %c0_56 = arith.constant 0 : index
    %c0_57 = arith.constant 0 : index
    %193 = vector.load %arg11[%c0_56, %c0_57] : memref<1x64xf32, #tpu.memory_space<vmem>>, vector<1x64xf32>
    %194 = vector.broadcast %193 : vector<1x64xf32> to vector<16x64xf32>
    %195 = arith.addf %192, %194 : vector<16x64xf32>
    %c0_58 = arith.constant 0 : index
    %c0_59 = arith.constant 0 : index
    %c0_60 = arith.constant 0 : index
    %196 = vector.load %arg12[%c0_58, %c0_59, %c0_60] : memref<1x16x64xf32, #tpu.memory_space<vmem>>, vector<1x16x64xf32>
    %197 = vector.shape_cast %196 : vector<1x16x64xf32> to vector<16x64xf32>
    %198 = vector.shape_cast %195 : vector<16x64xf32> to vector<1x16x64xf32>
    tpu.vector_store %arg12[%c0_58, %c0_59, %c0_60], %198 {strides = array<i32>} : memref<1x16x64xf32, #tpu.memory_space<vmem>>, vector<1x16x64xf32>,
    return
  }
  func.func @transform_0(%arg0: i32, %arg1: i32) -> (i32, i32, i32) {
    %c0_i32 = arith.constant 0 : i32
    %c0_i32_0 = arith.constant 0 : i32
    %c0_i32_1 = arith.constant 0 : i32
    return %arg0, %c0_i32, %c0_i32_0 : i32, i32, i32
  }
  func.func @transform_1(%arg0: i32, %arg1: i32) -> (i32, i32, i32) {
    %c0_i32 = arith.constant 0 : i32
    %c0_i32_0 = arith.constant 0 : i32
    %c0_i32_1 = arith.constant 0 : i32
    %c0_i32_2 = arith.constant 0 : i32
    return %c0_i32, %c0_i32_0, %c0_i32_1 : i32, i32, i32
  }
  func.func @transform_2(%arg0: i32, %arg1: i32) -> (i32, i32) {
    %c0_i32 = arith.constant 0 : i32
    %c0_i32_0 = arith.constant 0 : i32
    %c0_i32_1 = arith.constant 0 : i32
    return %c0_i32, %c0_i32_0 : i32, i32
  }
  func.func @transform_3(%arg0: i32, %arg1: i32) -> (i32, i32) {
    %c0_i32 = arith.constant 0 : i32
    %c0_i32_0 = arith.constant 0 : i32
    %c0_i32_1 = arith.constant 0 : i32
    return %c0_i32, %c0_i32_0 : i32, i32
  }
  func.func @transform_4(%arg0: i32, %arg1: i32) -> (i32, i32) {
    %c0_i32 = arith.constant 0 : i32
    %c0_i32_0 = arith.constant 0 : i32
    %c0_i32_1 = arith.constant 0 : i32
    return %c0_i32, %c0_i32_0 : i32, i32
  }
  func.func @transform_5(%arg0: i32, %arg1: i32) -> (i32, i32) {
    %c0_i32 = arith.constant 0 : i32
    %c0_i32_0 = arith.constant 0 : i32
    %c0_i32_1 = arith.constant 0 : i32
    return %c0_i32, %c0_i32_0 : i32, i32
  }
  func.func @transform_6(%arg0: i32, %arg1: i32) -> (i32, i32) {
    %c0_i32 = arith.constant 0 : i32
    %c0_i32_0 = arith.constant 0 : i32
    %c0_i32_1 = arith.constant 0 : i32
    return %c0_i32, %c0_i32_0 : i32, i32
  }
  func.func @transform_7(%arg0: i32, %arg1: i32) -> (i32, i32) {
    %c0_i32 = arith.constant 0 : i32
    %c0_i32_0 = arith.constant 0 : i32
    %c0_i32_1 = arith.constant 0 : i32
    return %c0_i32, %c0_i32_0 : i32, i32
  }
  func.func @transform_8(%arg0: i32, %arg1: i32) -> (i32, i32) {
    %c0_i32 = arith.constant 0 : i32
    %c0_i32_0 = arith.constant 0 : i32
    %c0_i32_1 = arith.constant 0 : i32
    return %c0_i32, %c0_i32_0 : i32, i32
  }
  func.func @transform_9(%arg0: i32, %arg1: i32) -> (i32, i32) {
    %c0_i32 = arith.constant 0 : i32
    %c0_i32_0 = arith.constant 0 : i32
    %c0_i32_1 = arith.constant 0 : i32
    return %c0_i32, %c0_i32_0 : i32, i32
  }
  func.func @transform_10(%arg0: i32, %arg1: i32) -> (i32, i32, i32) {
    %c0_i32 = arith.constant 0 : i32
    %c0_i32_0 = arith.constant 0 : i32
    return %arg0, %arg1, %c0_i32 : i32, i32, i32
  }
}

</mosaic_0001>

<bundles_post_ra>
// kernel: tpu_custom_call.1
= control target key start
LH: loop header
LB: loop body
LE: loop exit
PB: predicated region body
PF: predicated region fallthrough
CT: control target
= control target key end

     0   :  { %s5196_s0 = inlined_call_operand.hbm [shape: f32[2,16,64], index: 0, kind: input, shape index: {}]   ;;  %s5197_s1 = inlined_call_operand.hbm [shape: f32[4,16,16], index: 1, kind: input, shape index: {}]   ;;  %s5198_s2 = inlined_call_operand.vmem [shape: f32[1,64], index: 2, kind: input, shape index: {}]   ;;  %s5199_s3 = inlined_call_operand.vmem [shape: f32[1,64], index: 3, kind: input, shape index: {}]   ;;  %s5200_s4 = inlined_call_operand.hbm [shape: f32[64,192], index: 4, kind: input, shape index: {}]   ;;  %s5201_s5 = inlined_call_operand.vmem [shape: f32[1,192], index: 5, kind: input, shape index: {}]   ;;  %s5202_s6 = inlined_call_operand.vmem [shape: f32[1,64], index: 6, kind: input, shape index: {}]   ;;  %s5203_s7 = inlined_call_operand.vmem [shape: f32[1,64], index: 7, kind: input, shape index: {}]   ;;  %s5204_s8 = inlined_call_operand.hbm [shape: f32[64,64], index: 8, kind: input, shape index: {}]   ;;  %s5205_s9 = inlined_call_operand.vmem [shape: f32[1,64], index: 9, kind: input, shape index: {}]   ;;  %s5206_s10 = inlined_call_operand.hbm [shape: f32[2,16,64], index: 10, kind: output, shape index: {}]  }
   0x1   :  { %5218 = sst [smem:[#allocation22_spill]] %s5197_s1 }
   0x2   :  { %5219 = sst [smem:[#allocation23_spill]] %s5202_s6 }
   0x3   :  { %5220 = sst [smem:[#allocation24_spill]] %s5205_s9 }
   0x4   :  { %5221 = sst [smem:[#allocation25_spill]] %s5206_s10 }
   0x5   :  { %15 = vsyncpa [#allocation7], 0 }
   0x6   :  { %17 = vsyncpa [#allocation7 + $0x1], 0 }
   0x7   :  { %18 = vsyncpa [#allocation10], 0 }
   0x8   :  { %19 = vsyncpa [#allocation13], 0 }
   0x9   :  { %20 = vsyncpa [#allocation8], 0 }
   0xa   :  { %22 = vsyncpa [#allocation8 + $0x1], 0  ;;  %s3812_s13 = smov 0   ;;  %s3814_s14 = smov 0  }
   0xb   :  { %s3816_s15 = smov 0   ;;  %s3818_s16 = smov 0  }
   0xc   :  { %s3820_s17 = smov 0   ;;  %s3822_s18 = smov 0  }
   0xd LB: > { %5222 = sst [smem:[#allocation19_spill]] %s3707_s13  ;;  %s3017_s19 = sadd.s32 4294967295, %s3727_s18   ;;  %s3727_s18 = sphi %s3822_s18, %s28_s18   ;;  %s3723_s17 = sphi %s3820_s17, %s5264_s17   ;;  %s3719_s16 = sphi %s3818_s16, %s5263_s16   ;;  %s3715_s15 = sphi %s3816_s15, %s5262_s15   ;;  %s3711_s14 = sphi %s3814_s14, %s5261_s14   ;;  %s3707_s13 = sphi %s3812_s13, %s5260_s13  }
   0xe   : > { %5223 = sst [smem:[#allocation20_spill]] %s3719_s16  ;;  %s3018_s20 = sadd.s32 4294967294, %s3727_s18  }
   0xf   : > { %p60_p0 = scmp.ne.s32.totalorder %s3711_s14, %s3707_s13  ;;  %p3846_p1 = scmp.eq.s32.totalorder %s3017_s19, 0 }
  0x10   : > { %p3850_p2 = scmp.eq.s32.totalorder %s3017_s19, 1  ;;  %p281_p3 = scmp.eq.s32.totalorder %s3018_s20, 1 }
  0x11   : > { %s5224_s21 = scalar_select %p3846_p1, 1, 0 }
  0x12   : > { %s5225_s22 = scalar_select %p3850_p2, 1, 0 }
  0x13   : > { %p3856_p4 = por %p3846_p1, %p60_p0  ;;  %p3019_p5 = scmp.ge.s32.totalorder %s3727_s18, 1 }
  0x14   : > { %p3861_p6 = por %p281_p3, %p60_p0  ;;  %p288_p7 = scmp.lt.s32.totalorder %s3727_s18, 3 }
  0x15   : > { %s5226_s23 = scalar_select %p3856_p4, 1, 0 }
  0x16   : > { %s5227_s24 = scalar_select %p3861_p6, 1, 0 }
  0x17   : > { %p3866_p8 = pnand %p3019_p5, %p288_p7  ;;  %s3729_s26 = smov [#allocation9]  }
  0x18   : > { %5228 = sst [smem:[#allocation21_spill]] %s5227_s24  ;;  %s300_s27 = sshll.u32 %s3729_s26, 4  ;;  %s3870_s27 = int_to_ptr.vmem [resolvable:$true] %s300_s27 }
  0x19   : > { %s5229_s25 = scalar_select %p3866_p8, 1, 0 }
  0x1a   : > { %p3387_p9 = pneg %p3866_p8  ;;  %s3730_s29 = smov [#allocation11]  }
  0x1b   : > { %s319_s30 = sshll.u32 %s3730_s29, 4  ;;  %s5231_s1 = sld [smem:[#allocation22_spill]]  ;;  %s3881_s30 = int_to_ptr.vmem [resolvable:$true] %s319_s30 }
  0x1c   : > { %p3877_p11 = pnand %p3387_p9, %p3846_p1 }
  0x1e   : > { %p3891_p13 = pneg %p3877_p11 }
  0x21   : > { %s3523_s19 = scalar_lea.hbm %s5231_s1, 1024 }
  0x22   : > { %p3524_p12 = scmp.ne.s32.totalorder %s5231_s1, %s3523_s19  ;;  %p3530_p5 = scmp.lt.u32.totalorder %s3523_s19, %s5231_s1 }
  0x24   : > { %p3526_p0 = pnand %p3891_p13, %p3524_p12 }
  0x26   : > { %p3527_p3 = pneg %p3526_p0 }
  0x28   : > { %p3532_p7 = pnand %p3530_p5, %p3527_p3 }
  0x2a   : > { %3535 = shalt.err (!%p3532_p7)
}
  0x2b   : > { %s3536_s11 = scalar_lea.vmem %s3870_s27, 1024  ;;  %p3544_p1 = scmp.lt.s32.totalorder %s3870_s27, %s3870_s27 }
  0x2c   : > { %p3537_p9 = scmp.ne.s32.totalorder %s3870_s27, %s3536_s11  ;;  %p3545_p4 = scmp.lt.s32.totalorder %s3536_s11, %s3536_s11 }
  0x2e   : > { %p3539_p10 = pnand %p3537_p9, %p3891_p13  ;;  %p3546_p12 = por %p3545_p4, %p3544_p1 }
  0x30   : > { %p3540_p6 = pneg %p3539_p10 }
  0x32   : > { %p3547_p0 = pnand %p3546_p12, %p3540_p6 }
  0x34   : > { %3550 = shalt.err (!%p3547_p0)
}
  0x35   : > { %s5213_s12 = smov 128   ;;  %s5215_s13 = smov 8  }
  0x36   : > { %3390 = dma.hbm_to_vmem [thread:$0]  (!%p3877_p11), %s5231_s1, 1024, %s3870_s27, [#allocation10], %s5213_s12, %s5213_s12, %s5215_s13  }
  0x37   : > { %s3551_s11 = scalar_lea.hbm %s5200_s4, 2048 }
  0x38   : > { %p3552_p1 = scmp.ne.s32.totalorder %s5200_s4, %s3551_s11  ;;  %p3558_p10 = scmp.lt.u32.totalorder %s3551_s11, %s5200_s4 }
  0x3a   : > { %p3554_p4 = pnand %p3552_p1, %p3891_p13 }
  0x3c   : > { %p3555_p6 = pneg %p3554_p4 }
  0x3e   : > { %p3560_p3 = pnand %p3558_p10, %p3555_p6 }
  0x40   : > { %3563 = shalt.err (!%p3560_p3)
}
  0x41   : > { %s3564_s27 = scalar_lea.vmem %s3881_s30, 2048  ;;  %p3572_p12 = scmp.lt.s32.totalorder %s3881_s30, %s3881_s30 }
  0x42   : > { %p3565_p5 = scmp.ne.s32.totalorder %s3881_s30, %s3564_s27  ;;  %p3573_p0 = scmp.lt.s32.totalorder %s3564_s27, %s3564_s27 }
  0x44   : > { %p3567_p7 = pnand %p3565_p5, %p3891_p13  ;;  %p3574_p1 = por %p3573_p0, %p3572_p12 }
  0x46   : > { %p3568_p9 = pneg %p3567_p7 }
  0x48   : > { %p3575_p4 = pnand %p3574_p1, %p3568_p9 }
  0x4a   : > { %3578 = shalt.err (!%p3575_p4)
}
  0x4b   : > { %s3733_s9 = smov 256   ;;  %s3734_s6 = smov 16  }
  0x4c   : > { %3393 = dma.hbm_to_vmem [thread:$0]  (!%p3877_p11), %s5200_s4, 2048, %s3881_s30, [#allocation10], %s3733_s9, %s3733_s9, %s3734_s6  }
  0x4d   : > { %s3735_s19 = smov [#allocation12]   ;;  %s3579_s11 = scalar_lea.hbm %s5204_s8, 1024 }
  0x4e   : > { %s341_s20 = sshll.u32 %s3735_s19, 4  ;;  %p3580_p6 = scmp.ne.s32.totalorder %s5204_s8, %s3579_s11  ;;  %s342_s20 = int_to_ptr.vmem [resolvable:$true] %s341_s20 }
  0x4f   : > { %p3586_p5 = scmp.lt.u32.totalorder %s3579_s11, %s5204_s8 }
  0x50   : > { %p3582_p10 = pnand %p3580_p6, %p3891_p13 }
  0x52   : > { %p3583_p3 = pneg %p3582_p10 }
  0x54   : > { %p3588_p7 = pnand %p3586_p5, %p3583_p3 }
  0x56   : > { %3591 = shalt.err (!%p3588_p7)
}
  0x57   : > { %s3592_s30 = scalar_lea.vmem %s342_s20, 1024  ;;  %p3600_p1 = scmp.lt.s32.totalorder %s342_s20, %s342_s20 }
  0x58   : > { %p3593_p9 = scmp.ne.s32.totalorder %s342_s20, %s3592_s30  ;;  %p3601_p4 = scmp.lt.s32.totalorder %s3592_s30, %s3592_s30 }
  0x5a   : > { %p3595_p12 = pnand %p3593_p9, %p3891_p13  ;;  %p3602_p8 = por %p3601_p4, %p3600_p1 }
  0x5c   : > { %p3596_p0 = pneg %p3595_p12 }
  0x5e   : > { %p3603_p2 = pnand %p3602_p8, %p3596_p0 }
  0x60   : > { %3606 = shalt.err (!%p3603_p2)
}
  0x61   : > { %s5233_s12 = smov 8   ;;  %s5234_s9 = smov 128  }
  0x62   : > { %3396 = dma.hbm_to_vmem [thread:$0]  (!%p3877_p11), %s5204_s8, 1024, %s342_s20, [#allocation13], %s5234_s9, %s5234_s9, %s5233_s12  }
  0x63   : > { %s40_s24 = sadd.s32 1, %s3723_s17  ;;  %s47_s28 = sadd.s32 1, %s3715_s15 }
  0x64   : > { %p42_p2 = scmp.ge.s32.totalorder %s40_s24, 2  ;;  %p54_p8 = scmp.ne.s32.totalorder %s3715_s15, %s3711_s14 }
  0x65   : > { %p55_p13 = scmp.eq.s32.totalorder %s3727_s18, 0  ;;  %p5236_p10 = scmp.ne.s32.totalorder %s5225_s22, 0 }
  0x66   : > { %s5266_s24 = smov (%p42_p2, %s40_s24), 0  ;;  %p3408_p11 = scmp.lt.s32.totalorder %s3727_s18, 2 }
  0x67   : > { %p3966_p6 = por %p55_p13, %p54_p8  ;;  %p3972_p3 = por %p5236_p10, %p54_p8 }
  0x68   : > { %s44_s16 = ssub.s32 %s3723_s17, %s5266_s24  ;;  %s358_s19 = sand.u32 1, %s3715_s15  }
  0x69   : > { %p45_p5 = scmp.eq.s32.totalorder %s44_s16, 0  ;;  %s3024_s20 = sshll.u32 %s358_s19, 4 }
  0x6a   : > { %s3092_s29 = sshll.u32 %s3723_s17, 8  ;;  %s362_s22 = scalar_lea.vmem [#allocation6], %s3024_s20 }
  0x6b   : > { %s3981_s26 = scalar_select %p45_p5, %s3715_s15, %s47_s28  }
  0x6c   : > { %s3987_s30 = scalar_lea.hbm %s5196_s0, %s3092_s29  ;;  %s369_s1 = sshll.u32 %s362_s22, 4  ;;  %s3989_s1 = int_to_ptr.vmem [resolvable:$true] %s369_s1 }
  0x6d   : > { %p3993_p7 = pnand %p3408_p11, %p3966_p6  ;;  %s3997_s28 = scalar_lea.sflag [#allocation7], %s358_s19 }
  0x6e   : > { %s3607_s16 = scalar_lea.hbm %s3987_s30, 256  ;;  %s3612_s6 = scalar_lea.hbm %s5196_s0, 512 }
  0x6f   : > { %p3608_p9 = scmp.ne.s32.totalorder %s3987_s30, %s3607_s16  ;;  %p3609_p12 = pneg %p3993_p7 }
  0x70   : > { %p3613_p4 = scmp.lt.u32.totalorder %s3987_s30, %s5196_s0  ;;  %p3614_p2 = scmp.lt.u32.totalorder %s3612_s6, %s3607_s16 }
  0x71   : > { %p3610_p0 = pnand %p3609_p12, %p3608_p9  ;;  %p3616_p13 = scmp.lt.u32.totalorder %s3607_s16, %s3987_s30 }
  0x72   : > { %p3615_p8 = por %p3614_p2, %p3613_p4 }
  0x73   : > { %p3611_p1 = pneg %p3610_p0 }
  0x74   : > { %p3617_p6 = por %p3616_p13, %p3615_p8 }
  0x76   : > { %p3618_p10 = pnand %p3617_p6, %p3611_p1 }
  0x78   : > { %3621 = shalt.err (!%p3618_p10)
}
  0x79   : > { %s3622_s19 = scalar_lea.vmem %s3989_s1, 256  ;;  %s3736_s22 = smov [#allocation6]  }
  0x7a   : > { %p3623_p11 = scmp.ne.s32.totalorder %s3989_s1, %s3622_s19  ;;  %s3627_s20 = sshll.u32 %s3736_s22, 4  ;;  %s3628_s20 = int_to_ptr.vmem [resolvable:$false] %s3627_s20 }
  0x7b   : > { %s3629_s29 = scalar_lea.vmem %s3628_s20, 512  ;;  %p3630_p0 = scmp.lt.s32.totalorder %s3989_s1, %s3628_s20 }
  0x7c   : > { %p3625_p5 = pnand %p3623_p11, %p3609_p12  ;;  %p3631_p4 = scmp.lt.s32.totalorder %s3629_s29, %s3622_s19 }
  0x7e   : > { %p3626_p9 = pneg %p3625_p5  ;;  %p3632_p2 = por %p3631_p4, %p3630_p0 }
  0x80   : > { %p3633_p8 = pnand %p3632_p2, %p3626_p9 }
  0x82   : > { %3636 = shalt.err (!%p3633_p8)
}
  0x83   : > { %3400 = dma.hbm_to_vmem [thread:$0]  (!%p3993_p7), %s3987_s30, 256, %s3989_s1, %s3997_s28, %s5234_s9, %s5234_s9, %s5233_s12  }
  0x84   : > { %p5239_p12 = scmp.ne.s32.totalorder %s5229_s25, 0 }
  0x85   : > { %s4031_s16 = sand.u32 (!%p5239_p12), 1, %s3711_s14   ;;  %p5240_p1 = scmp.ne.s32.totalorder (!%p5239_p12), %s5226_s23, 0 }
  0x86   : > { %381 = sbr.rel (%p5239_p12) target bundleno = 2439 (0x987), region = 60  ;;  %s3028_s6 = sshll.u32 (!%p5239_p12), %s4031_s16, 4 }
  0x87   : > { %s384_s11 = scalar_lea.sflag (!%p5239_p12), [#allocation7], %s4031_s16  ;;  %s387_s13 = scalar_lea.vmem (!%p5239_p12), [#allocation6], %s3028_s6 }
  0x8d   : > { %3690 = dma.done.wait (%p5240_p1), %s384_s11, 256  }
  0x8e   : > { %3692 = vsyncadd (%p5240_p1), %s384_s11, 4294967040  ;;  %p5241_p7 = scmp.ne.s32.totalorder %s5224_s21, 0 }
  0x90   : > { %3694 = dma.done.wait (%p5241_p7), [#allocation10], 3072  }
  0x91   : > { %3696 = vsyncadd (%p5241_p7), [#allocation10], 4294964224 }
  0x92   : > { %3698 = dma.done.wait (%p5241_p7), [#allocation13], 1024  }
  0x93   : > { %3700 = vsyncadd (%p5241_p7), [#allocation13], 4294966272  ;;  %vm443_vm0 = vcmask 523264   ;;  %v441_v0 = vld [vmem:[%s387_s13] sm:$0xff]  ;;  %v442_v1 = vld [vmem:[%s387_s13 + $0x8] sm:$0xff]  ;;  %v3737_v33 = vmov 0.0   ;;  %v507_v60 = vlaneseq }
  0x94   : > { %v444_v2 = vsel %vm443_vm0, %v441_v0, 0.0  ;;  %v447_v3 = vsel %vm443_vm0, %v442_v1, 0.0  ;;  %v490_v14 = vld [vmem:[#allocation11 + $0x8] sm:$0xff]  ;;  %v492_v15 = vld [vmem:[#allocation11 + $0x18] sm:$0xff]  ;;  %v489_v17 = vld [vmem:[#allocation11] sm:$0xff]  ;;  %587 = vmatprep.mubr.f32.mxu0 %v3737_v33  ;;  %vm642_vm1 = vcmask 130048  }
  0x95   : > { %445 = vadd.xlane.f32.xlu0 %v444_v2  ;;  %v3283_v16 = vpack.c.bf16 %v492_v15, %v490_v14  ;;  %v491_v18 = vld [vmem:[#allocation11 + $0x10] sm:$0xff]  ;;  %v494_v20 = vld [vmem:[#allocation11 + $0x28] sm:$0xff]  ;;  %v496_v21 = vld [vmem:[#allocation11 + $0x38] sm:$0xff]  ;;  %v3738_v58 = vmov 0.0|0.0   ;;  %vm3739_vm3 = vmmov 0   ;;  %vm673_vm4 = vcmask 122880  }
  0x96   : > { %v3285_v19 = vpack.c.bf16 %v491_v18, %v489_v17  ;;  %v3287_v22 = vpack.c.bf16 %v496_v21, %v494_v20  ;;  %v493_v23 = vld [vmem:[#allocation11 + $0x20] sm:$0xff]  ;;  %v495_v24 = vld [vmem:[#allocation11 + $0x30] sm:$0xff]  ;;  %v498_v26 = vld [vmem:[#allocation11 + $0x48] sm:$0xff]  ;;  %3299 = vmatprep.subr.bf16.mxu1 %v3738_v58  ;;  %3160 = vmatprep.mubr.msk.f32.mxu1 %vm3739_vm3, %v3737_v33  ;;  %674 = vst.msk [vmem:[#allocation3 + $0x10] sm:$0x1] %vm673_vm4, %v3737_v33  ;;  %v4083_v61 = vshrl.u32 %v507_v60, 7 }
  0x97   : > { %3284 = vmatprep.subr.bf16.mxu0 %v3283_v16  ;;  %v3289_v25 = vpack.c.bf16 %v495_v24, %v493_v23  ;;  %v500_v27 = vld [vmem:[#allocation11 + $0x58] sm:$0xff]  ;;  %v497_v28 = vld [vmem:[#allocation11 + $0x40] sm:$0xff]  ;;  %v499_v30 = vld [vmem:[#allocation11 + $0x50] sm:$0xff]  ;;  %677 = vst.msk [vmem:[#allocation3 + $0x28] sm:$0x1] %vm673_vm4, %v3737_v33  ;;  %s5244_s22 = sld [smem:[#allocation23_spill]] }
  0x98   : > { %3286 = vmatpush1.bf16.msra.mxu0 %v3285_v19  ;;  %v3291_v29 = vpack.c.bf16 %v500_v27, %v498_v26  ;;  %v502_v31 = vld [vmem:[#allocation11 + $0x68] sm:$0xff]  ;;  %v504_v32 = vld [vmem:[#allocation11 + $0x78] sm:$0xff]  ;;  %v3293_v34 = vpack.c.bf16 %v499_v30, %v497_v28  ;;  %v501_v36 = vld [vmem:[#allocation11 + $0x60] sm:$0xff]  ;;  %680 = vst.msk [vmem:[#allocation3 + $0x40] sm:$0x1] %vm673_vm4, %v3737_v33  ;;  %v509_v62 = vsub.s32 0, %v4083_v61 }
  0x99   : > { %448 = vadd.xlane.f32.xlu0 %v447_v3  ;;  %3288 = vmatprep.subr.bf16.mxu0 %v3287_v22  ;;  %v3295_v35 = vpack.c.bf16 %v504_v32, %v502_v31  ;;  %v503_v37 = vld [vmem:[#allocation11 + $0x70] sm:$0xff]  ;;  %v3033_v46 = vld [vmem:[%s5198_s2] ss:$0 sm:$0xff]  ;;  %v798_v56 = vld [vmem:[#allocation9 + $0x8] sm:$0xff]  ;;  %683 = vst.msk [vmem:[#allocation3 + $0x58] sm:$0x1] %vm673_vm4, %v3737_v33 }
  0x9a   : > { %v3297_v38 = vpack.c.bf16 %v503_v37, %v501_v36  ;;  %v3034_v48 = vld [vmem:[%s5199_s3] ss:$0 sm:$0xff]  ;;  %vm4066_vm2 = vmpackc.low %vm642_vm1, %vm642_vm1  ;;  %s3740_s20 = smov 112   ;;  %v799_v24 = vld [vmem:[#allocation9 + $0x10] sm:$0xff]  ;;  %s3741_s29 = smov 96   ;;  %vm1628_vm5 = vcmask 1046528  }
  0x9b   : > { %v797_v55 = vld [vmem:[#allocation9] sm:$0xff]  ;;  %s3742_s11 = smov 80   ;;  %s3743_s13 = smov 64   ;;  %v803_v31 = vld [vmem:[#allocation9 + $0x30] sm:$0xff]  ;;  %v804_v32 = vld [vmem:[#allocation9 + $0x38] sm:$0xff]  ;;  %vm1280_vm6 = vcmask 121856  }
  0x9c   : > { %3290 = vmatpush1.bf16.msra.mxu0 %v3289_v25  ;;  %v3300_v57 = vpack.c.bf16 %v798_v56, %v797_v55  ;;  %v505_v63 = vld [vmem:[%s5201_s5] sm:$0x3]  ;;  %v800_v25 = vld [vmem:[#allocation9 + $0x18] sm:$0xff]  ;;  %v3312_v36 = vpack.c.bf16 %v804_v32, %v803_v31  ;;  %s3744_s21 = smov 127   ;;  %s3745_s23 = smov 15  }
  0x9d   : > { %3292 = vmatprep.subr.bf16.mxu0 %v3291_v29  ;;  %v3304_v26 = vpack.c.bf16 %v800_v25, %v799_v24  ;;  %v771_v29 = vld [vmem:[#allocation3 + $0x10] sm:$0x1]  ;;  %s3746_s25 = smov 14   ;;  %s3747_s12 = smov 126  }
  0x9e   : > { %3302 = vmatpush3.bf16.xpose.msk.msra.mxu1 %vm4066_vm2, %v3300_v57  ;;  %s3748_s9 = smov 12   ;;  %s3749_s30 = smov 124  }
  0x9f   : > { %3303 = vmatprep.subr.bf16.mxu1 %v3738_v58  ;;  %s3750_s1 = smov 120   ;;  %s3751_s28 = smov 8  }
  0xa0   : > { %3294 = vmatpush1.bf16.msra.mxu0 %v3293_v34  ;;  %v780_v56 = vld [vmem:[#allocation3 + $0x58] sm:$0x1]  ;;  %s3752_s27 = smov 16   ;;  %s3753_s19 = smov 32  }
  0xa1   : > { %3296 = vmatprep.subr.bf16.mxu0 %v3295_v35 }
  0xa4   : > { %3298 = vmatpush1.bf16.msra.mxu0 %v3297_v38 }
  0xa5   : > { %3307 = vmatprep.subr.bf16.mxu0 %v3738_v58 }
 0x122   : > { %v446_v4 = vpop.xlane.xlu0 %445 }
 0x123   : > { %v451_v5 = vmul.f32 0.015625, %v446_v4  ;;  %v3038_v4 = vld [vmem:[%s5203_s7] ss:$0 sm:$0xff] }
 0x125   : > { %v453_v6 = vsub.f32 %v441_v0, %v451_v5  ;;  %v513_v0 = vsub.s32 1, %v4083_v61  ;;  %v3037_v5 = vld [vmem:[%s5244_s22] ss:$0 sm:$0xff]  ;;  %s3754_s22 = smov 48  }
 0x126   : > { %v449_v7 = vpop.xlane.xlu0 %448 }
 0x127   : > { %v452_v8 = vmul.f32 0.015625, %v449_v7  ;;  %v455_v9 = vmul.f32 %v453_v6, %v453_v6  ;;  %v514_v2 = vrot.slane %v505_v63, %v513_v0 }
 0x129   : > { %v454_v10 = vsub.f32 %v442_v1, %v452_v8  ;;  %v457_v11 = vsel %vm443_vm0, %v455_v9, 0.0  ;;  %v510_v1 = vrot.slane %v505_v63, %v509_v62  ;;  %v801_v8 = vld [vmem:[#allocation9 + $0x20] sm:$0xff]  ;;  %v802_v9 = vld [vmem:[#allocation9 + $0x28] sm:$0xff] }
 0x12a   : > { %458 = vadd.xlane.f32.xlu1 %v457_v11  ;;  %v3308_v11 = vpack.c.bf16 %v802_v9, %v801_v8 }
 0x12b   : > { %v456_v12 = vmul.f32 %v454_v10, %v454_v10 }
 0x12d   : > { %v460_v13 = vsel %vm443_vm0, %v456_v12, 0.0 }
 0x12e   : > { %461 = vadd.xlane.f32.xlu1 %v460_v13 }
 0x1b7   : > { %v459_v39 = vpop.xlane.xlu1 %458 }
 0x1b8   : > { %v463_v40 = vmul.f32 0.015625, %v459_v39 }
 0x1ba   : > { %v465_v41 = vadd.f32 1e-05, %v463_v40 }
 0x1bb   : > { %v462_v42 = vpop.xlane.xlu1 %461 }
 0x1bc   : > { %3487 = vrsqrt.f32 %v465_v41  ;;  %v464_v43 = vmul.f32 0.015625, %v462_v42 }
 0x1be   : > { %v466_v44 = vadd.f32 1e-05, %v464_v43  ;;  %v774_v43 = vld [vmem:[#allocation3 + $0x28] sm:$0x1] }
 0x1c0   : > { %3489 = vrsqrt.f32 %v466_v44 }
 0x1c6   : > { %v3488_v45 = vpop.eup %3487 }
 0x1c7   : > { %v469_v47 = vmul.f32 %v3488_v45, %v453_v6 }
 0x1c9   : > { %v478_v49 = vmul.f32 %v3033_v46, %v469_v47 }
 0x1ca   : > { %v3490_v50 = vpop.eup %3489 }
 0x1cb   : > { %v487_v51 = vadd.f32 %v3034_v48, %v478_v49  ;;  %v470_v52 = vmul.f32 %v3490_v50, %v454_v10 }
 0x1cd   : > { %3035 = vmatmul.mubr.msk.f32.vlgmr.msra.gmra.mrb[0].mxu0 %vm443_vm0, %v487_v51  ;;  %v479_v53 = vmul.f32 %v3033_v46, %v470_v52  ;;  %v777_v51 = vld [vmem:[#allocation3 + $0x40] sm:$0x1] }
 0x1ce   : > { %593 = vmatprep.mubr.f32.mxu0 %v3737_v33  ;;  %3310 = vmatpush3.bf16.xpose.msk.msra.mxu0 %vm4066_vm2, %v3308_v11 }
 0x1cf   : > { %v488_v54 = vadd.f32 %v3034_v48, %v479_v53 }
 0x1d1   : > { %3036 = vmatmul.mubr.msk.f32.gmra.mrb[2].mxu0 %vm443_vm0, %v488_v54 }
 0x1d2   : > { %3186 = vmatprep.mubr.msk.f32.mxu0 %vm3739_vm3, %v3737_v33 }
 0x2a0   : > { %v589_v3 = vpop.f32.mrb[0].mxu0 }
 0x2a1   : > { %v590_v6 = vadd.f32 %v589_v3, %v510_v1  ;;  %v591_v7 = vpop.f32.mrb[1].mxu0 }
 0x2a2   : > { %v4096_v10 = vadd.f32 %v591_v7, %v514_v2 }
 0x2a3   : > { %v618_v12 = vadd.f32 %v3038_v4, %v590_v6  ;;  %v607_v13 = vadd.f32 %v3037_v5, %v590_v6 }
 0x2a4   : > { %750 = vst.msk [vmem:[#allocation5] sm:$0xff] %vm642_vm1, %v4096_v10  ;;  %v595_v14 = vpop.f32.mrb[2].mxu0 }
 0x2a5   : > { %v596_v15 = vadd.f32 %v595_v14, %v510_v1  ;;  %v597_v16 = vpop.f32.mrb[3].mxu0  ;;  %v620_v17 = vmul.f32 0.125, %v618_v12  ;;  %v609_v18 = vmul.f32 0.125, %v607_v13 }
 0x2a6   : > { %v4102_v19 = vadd.f32 %v597_v16, %v514_v2 }
 0x2a7   : > { %653 = vrot.lane.b32.xlu0 %v620_v17, %s3740_s20  ;;  %671 = vst.msk [vmem:[#allocation3] sm:$0xff] %vm642_vm1, %v620_v17  ;;  %v619_v20 = vadd.f32 %v3038_v4, %v596_v15  ;;  %643 = vst.msk [vmem:[#allocation2] sm:$0xff] %vm642_vm1, %v609_v18  ;;  %v608_v21 = vadd.f32 %v3037_v5, %v596_v15 }
 0x2a8   : > { %751 = vst.msk [vmem:[#allocation5 + $0x8] sm:$0xff] %vm642_vm1, %v4102_v19 }
 0x2a9   : > { %v621_v22 = vmul.f32 0.125, %v619_v20  ;;  %v610_v23 = vmul.f32 0.125, %v608_v21 }
 0x2ab   : > { %661 = vrot.lane.b32.xlu0 %v621_v22, %s3741_s29  ;;  %672 = vst.msk [vmem:[#allocation3 + $0x8] sm:$0xff] %vm642_vm1, %v621_v22  ;;  %655 = vrot.lane.b32.xlu1 %v621_v22, %s3740_s20  ;;  %644 = vst.msk [vmem:[#allocation2 + $0x8] sm:$0xff] %vm642_vm1, %v610_v23 }
 0x2ae   : > { %v769_v27 = vld [vmem:[#allocation3] sm:$0xff] }
 0x2af   : > { %3161 = vmatmul.mubr.msk.f32.vlgmr.msra.gmra.mrb[0].mxu1 %vm642_vm1, %v769_v27  ;;  %686 = vrot.lane.b32.xlu0 %v590_v6, %s3740_s20  ;;  %v790_v32 = vld [vmem:[#allocation5 + $0x8] sm:$0xff] }
 0x2b0   : > { %659 = vrot.lane.b32.xlu1 %v620_v17, %s3741_s29  ;;  %3163 = vmatprep.mubr.msk.f32.mxu1 %vm3739_vm3, %v3737_v33 }
 0x2b1   : > { %3306 = vmatpush3.bf16.xpose.msk.msra.mxu1 %vm4066_vm2, %v3304_v26 }
 0x2b2   : > { %v770_v28 = vld [vmem:[#allocation3 + $0x8] sm:$0xff]  ;;  %3311 = vmatprep.subr.bf16.mxu1 %v3738_v58  ;;  %v760_v58 = vld [vmem:[#allocation2] sm:$0xff] }
 0x2b3   : > { %690 = vrot.lane.b32.xlu0 %v590_v6, %s3741_s29  ;;  %3164 = vmatmul.mubr.msk.f32.gmra.mrb[2].mxu1 %vm642_vm1, %v770_v28 }
 0x2b4   : > { %665 = vrot.lane.b32.xlu1 %v620_v17, %s3742_s11  ;;  %3166 = vmatprep.mubr.msk.f32.mxu1 %vm3739_vm3, %v3737_v33 }
 0x2b7   : > { %694 = vrot.lane.b32.xlu0 %v590_v6, %s3742_s11  ;;  %3167 = vmatmul.mubr.msk.f32.gmra.mrb[4].mxu1 %vm642_vm1, %v771_v29 }
 0x2b8   : > { %667 = vrot.lane.b32.xlu1 %v621_v22, %s3742_s11  ;;  %3173 = vmatprep.mubr.msk.f32.mxu1 %vm3739_vm3, %v3737_v33 }
 0x2bb   : > { %698 = vrot.lane.b32.xlu0 %v590_v6, %s3743_s13  ;;  %v761_v6 = vld [vmem:[#allocation2 + $0x8] sm:$0xff] }
 0x2bc   : > { %688 = vrot.lane.b32.xlu1 %v596_v15, %s3740_s20 }
 0x2bf   : > { %624 = vrot.lane.b32.xlu0 %v609_v18, %s3740_s20 }
 0x2c0   : > { %692 = vrot.lane.b32.xlu1 %v596_v15, %s3741_s29 }
 0x2c3   : > { %630 = vrot.lane.b32.xlu0 %v609_v18, %s3741_s29 }
 0x2c4   : > { %696 = vrot.lane.b32.xlu1 %v596_v15, %s3742_s11 }
 0x2c7   : > { %636 = vrot.lane.b32.xlu0 %v609_v18, %s3742_s11 }
 0x2c8   : > { %700 = vrot.lane.b32.xlu1 %v596_v15, %s3743_s13 }
 0x2cc   : > { %626 = vrot.lane.b32.xlu1 %v610_v23, %s3740_s20 }
 0x2d0   : > { %632 = vrot.lane.b32.xlu1 %v610_v23, %s3741_s29 }
 0x2d4   : > { %638 = vrot.lane.b32.xlu1 %v610_v23, %s3742_s11 }
 0x319   : > { %v654_v30 = vpop.permute.xlu0 %653 }
 0x31a   : > { %675 = vst.msk [vmem:[#allocation3 + $0x18] sm:$0xff] %vm642_vm1, %v654_v30 }
 0x31d   : > { %v656_v34 = vpop.permute.xlu1 %655  ;;  %v662_v35 = vpop.permute.xlu0 %661 }
 0x31e   : > { %676 = vst.msk [vmem:[#allocation3 + $0x20] sm:$0xff] %vm642_vm1, %v656_v34  ;;  %679 = vst.msk [vmem:[#allocation3 + $0x38] sm:$0xff] %vm642_vm1, %v662_v35  ;;  %v789_v35 = vld [vmem:[#allocation5] sm:$0xff] }
 0x321   : > { %v687_v37 = vpop.permute.xlu0 %686  ;;  %v772_v38 = vld [vmem:[#allocation3 + $0x18] sm:$0xff] }
 0x322   : > { %v660_v39 = vpop.permute.xlu1 %659  ;;  %3174 = vmatmul.mubr.msk.f32.vlgmr.msra.gmra.mrb[6].mxu1 %vm642_vm1, %v772_v38  ;;  %702 = vrot.lane.b32.xlu0 %v687_v37, %s3743_s13 }
 0x323   : > { %678 = vst.msk [vmem:[#allocation3 + $0x30] sm:$0xff] %vm642_vm1, %v660_v39  ;;  %3176 = vmatprep.mubr.msk.f32.mxu1 %vm3739_vm3, %v3737_v33  ;;  %3314 = vmatpush3.bf16.xpose.msk.msra.mxu1 %vm4066_vm2, %v3312_v36  ;;  %v3339_v36 = vpack.c.bf16 %v790_v32, %v789_v35 }
 0x325   : > { %v691_v40 = vpop.permute.xlu0 %690  ;;  %v773_v41 = vld [vmem:[#allocation3 + $0x20] sm:$0xff]  ;;  %v776_v49 = vld [vmem:[#allocation3 + $0x38] sm:$0xff] }
 0x326   : > { %v666_v42 = vpop.permute.xlu1 %665  ;;  %3177 = vmatmul.mubr.msk.f32.gmra.mrb[8].mxu1 %vm642_vm1, %v773_v41  ;;  %706 = vrot.lane.b32.xlu0 %v691_v40, %s3743_s13 }
 0x327   : > { %681 = vst.msk [vmem:[#allocation3 + $0x48] sm:$0xff] %vm642_vm1, %v666_v42  ;;  %3179 = vmatprep.mubr.msk.f32.mxu1 %vm3739_vm3, %v3737_v33 }
 0x329   : > { %v695_v44 = vpop.permute.xlu0 %694 }
 0x32a   : > { %v668_v45 = vpop.permute.xlu1 %667  ;;  %3180 = vmatmul.mubr.msk.f32.gmra.mrb[10].mxu1 %vm642_vm1, %v774_v43  ;;  %v775_v46 = vld [vmem:[#allocation3 + $0x30] sm:$0xff]  ;;  %710 = vrot.lane.b32.xlu0 %v695_v44, %s3743_s13  ;;  %v1194_v44 = vsub.s32 15, %v4083_v61 }
 0x32b   : > { %682 = vst.msk [vmem:[#allocation3 + $0x50] sm:$0xff] %vm642_vm1, %v668_v45  ;;  %3187 = vmatmul.mubr.msk.f32.vlgmr.msra.gmra.mrb[4].mxu0 %vm642_vm1, %v775_v46  ;;  %3199 = vmatprep.mubr.msk.f32.mxu1 %vm3739_vm3, %v3737_v33 }
 0x32c   : > { %3189 = vmatprep.mubr.msk.f32.mxu0 %vm3739_vm3, %v3737_v33  ;;  %v4240_v45 = vand.u32 15, %v1194_v44 }
 0x32d   : > { %v699_v47 = vpop.permute.xlu0 %698 }
 0x32e   : > { %v689_v48 = vpop.permute.xlu1 %688  ;;  %722 = vst.msk [vmem:[#allocation4] sm:$0xff] %vm642_vm1, %v699_v47  ;;  %v778_v50 = vld [vmem:[#allocation3 + $0x48] sm:$0xff] }
 0x32f   : > { %704 = vrot.lane.b32.xlu1 %v689_v48, %s3743_s13  ;;  %3190 = vmatmul.mubr.msk.f32.gmra.mrb[6].mxu0 %vm642_vm1, %v776_v49  ;;  %v1220_v48 = vand.u32 1, %v4240_v45  ;;  %v4248_v49 = vadd.s32 8, %v4083_v61 }
 0x330   : > { %3200 = vmatmul.mubr.msk.f32.vlgmr.msra.gmra.mrb[12].mxu1 %vm642_vm1, %v778_v50  ;;  %3192 = vmatprep.mubr.msk.f32.mxu0 %vm3739_vm3, %v3737_v33 }
 0x331   : > { %3202 = vmatprep.mubr.msk.f32.mxu1 %vm3739_vm3, %v3737_v33  ;;  %v625_v52 = vpop.permute.xlu0 %624  ;;  %vm4252_vm7 = vcmp.eq.s32.totalorder %v1220_v48, 1 }
 0x332   : > { %v693_v53 = vpop.permute.xlu1 %692  ;;  %645 = vst.msk [vmem:[#allocation2 + $0x10] sm:$0xff] %vm642_vm1, %v625_v52  ;;  %v779_v54 = vld [vmem:[#allocation3 + $0x50] sm:$0xff] }
 0x333   : > { %708 = vrot.lane.b32.xlu1 %v693_v53, %s3743_s13  ;;  %3193 = vmatmul.mubr.msk.f32.gmra.mrb[8].mxu0 %vm642_vm1, %v777_v51 }
 0x334   : > { %3203 = vmatmul.mubr.msk.f32.gmra.mrb[14].mxu1 %vm642_vm1, %v779_v54 }
 0x335   : > { %3205 = vmatprep.mubr.msk.f32.mxu1 %vm3739_vm3, %v3737_v33  ;;  %v631_v55 = vpop.permute.xlu0 %630  ;;  %v781_v2 = vld [vmem:[#allocation4] sm:$0xff] }
 0x336   : > { %v697_v57 = vpop.permute.xlu1 %696  ;;  %647 = vst.msk [vmem:[#allocation2 + $0x20] sm:$0xff] %vm642_vm1, %v631_v55 }
 0x337   : > { %712 = vrot.lane.b32.xlu1 %v697_v57, %s3743_s13  ;;  %v1551_v57 = vsub.s32 14, %v4248_v49  ;;  %s5254_s13 = sld [smem:[#allocation24_spill]] }
 0x338   : > { %3206 = vmatmul.mubr.msk.f32.gmra.mrb[16].mxu1 %vm642_vm1, %v780_v56 }
 0x339   : > { %3212 = vmatprep.mubr.msk.f32.mxu1 %vm642_vm1, %v760_v58  ;;  %v637_v62 = vpop.permute.xlu0 %636  ;;  %v762_v63 = vld [vmem:[#allocation2 + $0x10] sm:$0xff]  ;;  %vm1559_vm8 = vcmp.lt.s32.totalorder %v1551_v57, 0 }
 0x33a   : > { %v701_v0 = vpop.permute.xlu1 %700  ;;  %649 = vst.msk [vmem:[#allocation2 + $0x30] sm:$0xff] %vm642_vm1, %v637_v62  ;;  %3219 = vmatprep.mubr.msk.f32.mxu0 %vm642_vm1, %v762_v63 }
 0x33b   : > { %723 = vst.msk [vmem:[#allocation4 + $0x8] sm:$0xff] %vm642_vm1, %v701_v0 }
 0x33d   : > { %v764_v7 = vld [vmem:[#allocation2 + $0x20] sm:$0xff] }
 0x33e   : > { %v627_v33 = vpop.permute.xlu1 %626 }
 0x33f   : > { %646 = vst.msk [vmem:[#allocation2 + $0x18] sm:$0xff] %vm642_vm1, %v627_v33 }
 0x341   : > { %v766_v41 = vld [vmem:[#allocation2 + $0x30] sm:$0xff] }
 0x342   : > { %v633_v1 = vpop.permute.xlu1 %632  ;;  %v782_v3 = vld [vmem:[#allocation4 + $0x8] sm:$0xff] }
 0x343   : > { %648 = vst.msk [vmem:[#allocation2 + $0x28] sm:$0xff] %vm642_vm1, %v633_v1  ;;  %v3315_v4 = vpack.c.bf16 %v782_v3, %v781_v2 }
 0x345   : > { %3317 = vmatprep.subr.msk.bf16.mxu1 %vm4066_vm2, %v3315_v4 }
 0x346   : > { %v639_v5 = vpop.permute.xlu1 %638  ;;  %3320 = vmatpush3.bf16.xpose.msk.msra.mxu1 %vm4066_vm2, %v3315_v4  ;;  %v763_v40 = vld [vmem:[#allocation2 + $0x18] sm:$0xff]  ;;  %v1560_v4 = vsub.s32 0, %v1551_v57 }
 0x347   : > { %650 = vst.msk [vmem:[#allocation2 + $0x38] sm:$0xff] %vm642_vm1, %v639_v5 }
 0x34a   : > { %v765_v42 = vld [vmem:[#allocation2 + $0x28] sm:$0xff] }
 0x34d   : > { %3213 = vmatmul.mubr.msk.f32.vlgmr.msra.gmra.mrb[18].mxu1 %vm642_vm1, %v761_v6 }
 0x34e   : > { %3226 = vmatprep.mubr.msk.f32.mxu1 %vm642_vm1, %v764_v7  ;;  %v767_v43 = vld [vmem:[#allocation2 + $0x38] sm:$0xff] }
 0x382   : > { %v4195_v8 = vpop.f32.mrb[0].mxu1 }
 0x383   : > { %v3162_v9 = vpop.f32.mrb[1].mxu1  ;;  %1232 = vrot.lane.b32.xlu0 %v4195_v8, %s3744_s21  ;;  %v1657_v12 = vrot.slane %v4195_v8, 1 }
 0x386   : > { %v4199_v11 = vpop.f32.mrb[2].mxu1 }
 0x387   : > { %v1658_v13 = vrot.slane %v4199_v11, 1  ;;  %v3165_v14 = vpop.f32.mrb[3].mxu1  ;;  %1234 = vrot.lane.b32.xlu1 %v4199_v11, %s3744_s21  ;;  %1256 = vrot.lane.b32.xlu0 %v4195_v8, %s3745_s23 }
 0x388   : > { %v3059_v14 = vmin.u32 %v1560_v4, %v1551_v57 }
 0x389   : > { %v4208_v15 = vsel %vm1628_vm5, %v1657_v12, %v1658_v13 }
 0x38a   : > { %v897_v16 = vpop.f32.mrb[4].mxu1 }
 0x38b   : > { %v1660_v17 = vrot.slane %v897_v16, 1  ;;  %1258 = vrot.lane.b32.xlu1 %v4199_v11, %s3745_s23  ;;  %1584 = vrot.lane.b32.xlu0 %v897_v16, %s3744_s21  ;;  %v3168_v18 = vpop.f32.mrb[5].mxu1 }
 0x38d   : > { %v4214_v20 = vsel %vm1628_vm5, %v1658_v13, %v1660_v17  ;;  %v1550_v13 = vsub.s32 14, %v4083_v61 }
 0x38f   : > { %1596 = vrot.lane.b32.xlu1 %v897_v16, %s3745_s23 }
 0x394   : > { %v703_v21 = vpop.permute.xlu0 %702 }
 0x395   : > { %724 = vst.msk [vmem:[#allocation4 + $0x10] sm:$0xff] %vm642_vm1, %v703_v21 }
 0x398   : > { %v707_v22 = vpop.permute.xlu0 %706 }
 0x399   : > { %726 = vst.msk [vmem:[#allocation4 + $0x20] sm:$0xff] %vm642_vm1, %v707_v22 }
 0x39c   : > { %v711_v23 = vpop.permute.xlu0 %710  ;;  %v783_v27 = vld [vmem:[#allocation4 + $0x10] sm:$0xff] }
 0x39d   : > { %728 = vst.msk [vmem:[#allocation4 + $0x30] sm:$0xff] %vm642_vm1, %v711_v23 }
 0x3a0   : > { %v785_v30 = vld [vmem:[#allocation4 + $0x20] sm:$0xff] }
 0x3a1   : > { %v705_v24 = vpop.permute.xlu1 %704 }
 0x3a2   : > { %725 = vst.msk [vmem:[#allocation4 + $0x18] sm:$0xff] %vm642_vm1, %v705_v24  ;;  %v4299_v24 = vand.u32 15, %v1550_v13 }
 0x3a4   : > { %v787_v37 = vld [vmem:[#allocation4 + $0x30] sm:$0xff] }
 0x3a5   : > { %v709_v25 = vpop.permute.xlu1 %708 }
 0x3a6   : > { %727 = vst.msk [vmem:[#allocation4 + $0x28] sm:$0xff] %vm642_vm1, %v709_v25 }
 0x3a9   : > { %v713_v26 = vpop.permute.xlu1 %712  ;;  %v784_v28 = vld [vmem:[#allocation4 + $0x18] sm:$0xff] }
 0x3aa   : > { %729 = vst.msk [vmem:[#allocation4 + $0x38] sm:$0xff] %vm642_vm1, %v713_v26  ;;  %v3321_v29 = vpack.c.bf16 %v784_v28, %v783_v27  ;;  %v1563_v26 = vand.u32 15, %v3059_v14 }
 0x3ac   : > { %3323 = vmatprep.subr.msk.bf16.mxu0 %vm4066_vm2, %v3321_v29 }
 0x3ad   : > { %3326 = vmatpush3.bf16.xpose.msk.msra.mxu0 %vm4066_vm2, %v3321_v29  ;;  %v786_v31 = vld [vmem:[#allocation4 + $0x28] sm:$0xff] }
 0x3ae   : > { %v3327_v34 = vpack.c.bf16 %v786_v31, %v785_v30 }
 0x3b0   : > { %3329 = vmatprep.subr.msk.bf16.mxu1 %vm4066_vm2, %v3327_v34 }
 0x3b1   : > { %3332 = vmatpush3.bf16.xpose.msk.msra.mxu1 %vm4066_vm2, %v3327_v34  ;;  %v788_v38 = vld [vmem:[#allocation4 + $0x38] sm:$0xff] }
 0x3b2   : > { %3340 = vmatprep.subr.bf16.mxu1 %v3339_v36  ;;  %v3333_v39 = vpack.c.bf16 %v788_v38, %v787_v37  ;;  %v1564_v37 = vsub.s32 0, %v1563_v26 }
 0x3b4   : > { %3220 = vmatmul.mubr.msk.f32.vlgmr.msra.gmra.mrb[10].mxu0 %vm642_vm1, %v763_v40  ;;  %3335 = vmatprep.subr.msk.bf16.mxu0 %vm4066_vm2, %v3333_v39  ;;  %v1565_v44 = vsel %vm1559_vm8, %v1564_v37, %v1563_v26 }
 0x3b5   : > { %3338 = vmatpush3.bf16.xpose.msk.msra.mxu0 %vm4066_vm2, %v3333_v39  ;;  %3233 = vmatprep.mubr.msk.f32.mxu0 %vm642_vm1, %v766_v41  ;;  %vm1567_vm10 = vcmp.ne.s32.totalorder %v1565_v44, 0  ;;  %vm1569_vm11 = vcmp.lt.s32.totalorder %v1565_v44, 0  ;;  %v1573_v48 = vadd.s32 16, %v1565_v44  ;;  %vm1363_vm2 = vcmask 113664  }
 0x3b6   : > { %vm1571_vm12 = vmand %vm1569_vm11, %vm1567_vm10  ;;  %vm1529_vm11 = vcmask 64512  }
 0x3b8   : > { %3227 = vmatmul.mubr.msk.f32.vlgmr.msra.gmra.mrb[20].mxu1 %vm642_vm1, %v765_v42 }
 0x3b9   : > { %3342 = vmatpush3.bf16.msra.mxu1 %v3339_v36  ;;  %v1576_v36 = vand.u32 1, %v4299_v24 }
 0x3bb   : > { %vm4320_vm9 = vcmp.eq.s32.totalorder %v1576_v36, 1 }
 0x3bc   : > { %3234 = vmatmul.mubr.msk.f32.vlgmr.msra.gmra.mrb[12].mxu0 %vm642_vm1, %v767_v43 }
 0x3f5   : > { %v4242_v46 = vpop.f32.mrb[6].mxu1  ;;  %v1233_v47 = vpop.permute.xlu0 %1232 }
 0x3f6   : > { %v3175_v59 = vpop.f32.mrb[7].mxu1  ;;  %1236 = vrot.lane.b32.xlu0 %v4242_v46, %s3744_s21  ;;  %v1662_v52 = vrot.slane %v4242_v46, 1 }
 0x3f9   : > { %v4250_v50 = vpop.f32.mrb[8].mxu1  ;;  %v1257_v54 = vpop.permute.xlu0 %1256 }
 0x3fa   : > { %v1663_v53 = vrot.slane %v4250_v50, 1  ;;  %v3178_v55 = vpop.f32.mrb[9].mxu1  ;;  %1260 = vrot.lane.b32.xlu0 %v4242_v46, %s3745_s23  ;;  %v1281_v56 = vsel %vm1280_vm6, %v1233_v47, %v1257_v54  ;;  %v1235_v2 = vpop.permute.xlu1 %1234 }
 0x3fb   : > { %v4265_v58 = vsel %vm4252_vm7, %v1281_v56, %v4195_v8  ;;  %v1629_v40 = vrot.slane %v1281_v56, 1 }
 0x3fc   : > { %v4268_v62 = vsel %vm1628_vm5, %v1662_v52, %v1663_v53  ;;  %1339 = vrot.lane.b32.xlu1 %v4265_v58, %s3746_s25 }
 0x3fd   : > { %v992_v63 = vpop.f32.mrb[10].mxu1  ;;  %v1585_v52 = vpop.permute.xlu0 %1584 }
 0x3fe   : > { %v4272_v0 = vpop.f32.mrb[4].mxu0  ;;  %v1665_v33 = vrot.slane %v992_v63, 1  ;;  %v3181_v1 = vpop.f32.mrb[11].mxu1 }
 0x3ff   : > { %v3188_v3 = vpop.f32.mrb[5].mxu0  ;;  %1240 = vrot.lane.b32.xlu0 %v4272_v0, %s3744_s21  ;;  %v1667_v7 = vrot.slane %v4272_v0, 1  ;;  %v1259_v17 = vpop.permute.xlu1 %1258 }
 0x400   : > { %v4277_v5 = vsel %vm1628_vm5, %v1663_v53, %v1665_v33  ;;  %1238 = vrot.lane.b32.xlu1 %v4250_v50, %s3744_s21  ;;  %v1282_v27 = vsel %vm1280_vm6, %v1235_v2, %v1259_v17  ;;  %v1195_v53 = vsub.s32 15, %v4248_v49 }
 0x401   : > { %v1630_v34 = vrot.slane %v1282_v27, 1 }
 0x402   : > { %v4281_v6 = vpop.f32.mrb[6].mxu0  ;;  %v4345_v57 = vand.u32 15, %v1195_v53 }
 0x403   : > { %v1668_v8 = vrot.slane %v4281_v6, 1  ;;  %v4285_v9 = vpop.f32.mrb[12].mxu1  ;;  %v3191_v12 = vpop.f32.mrb[7].mxu0  ;;  %1264 = vrot.lane.b32.xlu0 %v4272_v0, %s3745_s23  ;;  %v1631_v43 = vsel %vm1628_vm5, %v1629_v40, %v1630_v34 }
 0x404   : > { %v3201_v16 = vpop.f32.mrb[13].mxu1  ;;  %1262 = vrot.lane.b32.xlu1 %v4250_v50, %s3745_s23  ;;  %v1672_v28 = vrot.slane %v4285_v9, 1  ;;  %v4329_v47 = vsel %vm4320_vm9, %v1631_v43, %v4208_v15  ;;  %v1597_v59 = vpop.permute.xlu1 %1596  ;;  %v4338_v15 = vsel %vm1571_vm12, %v1573_v48, %v1565_v44  ;;  %v1221_v1 = vand.u32 1, %v4345_v57 }
 0x405   : > { %v4293_v18 = vsel %vm1628_vm5, %v1667_v7, %v1668_v8  ;;  %v1608_v54 = vsel %vm1280_vm6, %v1585_v52, %v1597_v59  ;;  %v1577_v56 = vand.u32 1, %v4338_v15  ;;  %v1693_v44 = vshra.s32 %v4299_v24, 1 }
 0x406   : > { %v1087_v21 = vpop.f32.mrb[8].mxu0  ;;  %v1632_v55 = vrot.slane %v1608_v54, 1  ;;  %vm4369_vm14 = vcmp.eq.s32.totalorder %v1221_v1, 1 }
 0x407   : > { %v1670_v22 = vrot.slane %v1087_v21, 1  ;;  %v4295_v23 = vpop.f32.mrb[14].mxu1  ;;  %1315 = vrot.lane.b32.xlu0 %v4265_v58, %s3747_s12  ;;  %v3194_v25 = vpop.f32.mrb[9].mxu0  ;;  %vm4350_vm13 = vcmp.eq.s32.totalorder %v1577_v56, 1 }
 0x408   : > { %v1673_v29 = vrot.slane %v4295_v23, 1  ;;  %v3204_v30 = vpop.f32.mrb[15].mxu1  ;;  %1242 = vrot.lane.b32.xlu1 %v4281_v6, %s3744_s21  ;;  %v1633_v33 = vsel %vm1628_vm5, %v1630_v34, %v1632_v55 }
 0x409   : > { %v4307_v31 = vsel %vm1628_vm5, %v1668_v8, %v1670_v22  ;;  %v4365_v4 = vsel %vm4350_vm13, %v1633_v33, %v4214_v20  ;;  %v4377_v8 = vsel %vm4369_vm14, %v1282_v27, %v4199_v11 }
 0x40a   : > { %v4310_v32 = vsel %vm1628_vm5, %v1672_v28, %v1673_v29 }
 0x40b   : > { %v1182_v35 = vpop.f32.mrb[16].mxu1  ;;  %1586 = vrot.lane.b32.xlu0 %v992_v63, %s3744_s21 }
 0x40c   : > { %v1675_v38 = vrot.slane %v1182_v35, 1  ;;  %v3207_v39 = vpop.f32.mrb[17].mxu1  ;;  %1266 = vrot.lane.b32.xlu1 %v4281_v6, %s3745_s23 }
 0x40e   : > { %v4317_v41 = vsel %vm1628_vm5, %v1673_v29, %v1675_v38 }
 0x40f   : > { %1588 = vrot.lane.b32.xlu0 %v1087_v21, %s3744_s21 }
 0x410   : > { %1598 = vrot.lane.b32.xlu1 %v992_v63, %s3745_s23 }
 0x413   : > { %1707 = vrot.lane.b32.xlu0 %v4329_v47, %s3747_s12 }
 0x414   : > { %1600 = vrot.lane.b32.xlu1 %v1087_v21, %s3745_s23 }
 0x417   : > { %1244 = vrot.lane.b32.xlu0 %v4285_v9, %s3744_s21 }
 0x418   : > { %1731 = vrot.lane.b32.xlu1 %v4329_v47, %s3746_s25 }
 0x41b   : > { %1268 = vrot.lane.b32.xlu0 %v4285_v9, %s3745_s23 }
 0x41c   : > { %1246 = vrot.lane.b32.xlu1 %v4295_v23, %s3744_s21 }
 0x41f   : > { %1590 = vrot.lane.b32.xlu0 %v1182_v35, %s3744_s21  ;;  %s435_s21 = scalar_lea.vmem [#allocation14], %s3028_s6  ;;  %s2885_s6 = scalar_lea.sflag [#allocation8], %s4031_s16 }
 0x420   : > { %v4356_v2 = vpop.f32.mrb[18].mxu1  ;;  %1270 = vrot.lane.b32.xlu1 %v4295_v23, %s3745_s23 }
 0x421   : > { %v4358_v3 = vpop.f32.mrb[19].mxu1 }
 0x423   : > { %1709 = vrot.lane.b32.xlu0 %v4365_v4, %s3747_s12 }
 0x424   : > { %1602 = vrot.lane.b32.xlu1 %v1182_v35, %s3745_s23  ;;  %s2900_s23 = sshll.u32 %s435_s21, 4  ;;  %s5139_s23 = int_to_ptr.vmem [resolvable:$true] %s2900_s23 }
 0x427   : > { %1317 = vrot.lane.b32.xlu0 %v4377_v8, %s3747_s12 }
 0x428   : > { %1733 = vrot.lane.b32.xlu1 %v4365_v4, %s3746_s25 }
 0x42c   : > { %1341 = vrot.lane.b32.xlu1 %v4377_v8, %s3746_s25 }
 0x468   : > { %v1237_v20 = vpop.permute.xlu0 %1236 }
 0x46c   : > { %v1261_v12 = vpop.permute.xlu0 %1260 }
 0x46d   : > { %v1283_v13 = vsel %vm1280_vm6, %v1237_v20, %v1261_v12 }
 0x46e   : > { %v4389_v14 = vsel %vm4252_vm7, %v1283_v13, %v4242_v46  ;;  %v4391_v11 = vpop.permute.xlu1 %1339  ;;  %v1634_v29 = vrot.slane %v1283_v13, 1 }
 0x46f   : > { %1343 = vrot.lane.b32.xlu1 %v4389_v14, %s3746_s25  ;;  %1319 = vrot.lane.b32.xlu0 %v4389_v14, %s3747_s12 }
 0x471   : > { %v1241_v16 = vpop.permute.xlu0 %1240 }
 0x472   : > { %v1239_v17 = vpop.permute.xlu1 %1238 }
 0x475   : > { %v1265_v21 = vpop.permute.xlu0 %1264 }
 0x476   : > { %v1285_v22 = vsel %vm1280_vm6, %v1241_v16, %v1265_v21  ;;  %v1263_v25 = vpop.permute.xlu1 %1262 }
 0x477   : > { %v4401_v26 = vsel %vm4252_vm7, %v1285_v22, %v4272_v0  ;;  %v1284_v46 = vsel %vm1280_vm6, %v1239_v17, %v1263_v25 }
 0x478   : > { %1347 = vrot.lane.b32.xlu1 %v4401_v26, %s3746_s25  ;;  %1323 = vrot.lane.b32.xlu0 %v4401_v26, %s3747_s12  ;;  %v1635_v27 = vrot.slane %v1284_v46, 1  ;;  %v4413_v34 = vsel %vm4369_vm14, %v1284_v46, %v4250_v50  ;;  %v1639_v50 = vrot.slane %v1285_v22, 1 }
 0x479   : > { %v4408_v28 = vpop.permute.xlu0 %1315 }
 0x47a   : > { %v1243_v30 = vpop.permute.xlu1 %1242  ;;  %v1636_v0 = vsel %vm1628_vm5, %v1634_v29, %v1635_v27 }
 0x47b   : > { %v4423_v37 = vsel %vm4320_vm9, %v1636_v0, %v4268_v62 }
 0x47c   : > { %1345 = vrot.lane.b32.xlu1 %v4413_v34, %s3746_s25  ;;  %1321 = vrot.lane.b32.xlu0 %v4413_v34, %s3747_s12 }
 0x47d   : > { %v1587_v35 = vpop.permute.xlu0 %1586 }
 0x47e   : > { %v1267_v36 = vpop.permute.xlu1 %1266 }
 0x47f   : > { %v1286_v38 = vsel %vm1280_vm6, %v1243_v30, %v1267_v36 }
 0x480   : > { %1735 = vrot.lane.b32.xlu1 %v4423_v37, %s3746_s25  ;;  %v1640_v39 = vrot.slane %v1286_v38, 1  ;;  %v4431_v43 = vsel %vm4369_vm14, %v1286_v38, %v4281_v6  ;;  %v4446_v6 = vand.u32 1, %v1693_v44 }
 0x481   : > { %v1589_v40 = vpop.permute.xlu0 %1588  ;;  %1325 = vrot.lane.b32.xlu0 %v4431_v43, %s3747_s12 }
 0x482   : > { %v1599_v62 = vpop.permute.xlu1 %1598  ;;  %v1641_v48 = vsel %vm1628_vm5, %v1639_v50, %v1640_v39  ;;  %vm1697_vm15 = vcmp.eq.s32.totalorder %v4446_v6, 1 }
 0x483   : > { %v4440_v59 = vsel %vm4320_vm9, %v1641_v48, %v4293_v18  ;;  %v1609_v53 = vsel %vm1280_vm6, %v1587_v35, %v1599_v62  ;;  %v1301_v48 = vshra.s32 %v4240_v45, 1 }
 0x484   : > { %1739 = vrot.lane.b32.xlu1 %v4440_v59, %s3746_s25  ;;  %v1637_v1 = vrot.slane %v1609_v53, 1  ;;  %v1694_v53 = vshra.s32 %v4338_v15, 1 }
 0x485   : > { %v1708_v52 = vpop.permute.xlu0 %1707  ;;  %1349 = vrot.lane.b32.xlu0 %v4431_v43, %s3746_s25  ;;  %v4528_v7 = vand.u32 1, %v1301_v48 }
 0x486   : > { %v1601_v55 = vpop.permute.xlu1 %1600  ;;  %v1638_v21 = vsel %vm1628_vm5, %v1635_v27, %v1637_v1  ;;  %v4544_v42 = vand.u32 1, %v1694_v53  ;;  %v1302_v1 = vshra.s32 %v4345_v57, 1 }
 0x487   : > { %v4449_v54 = vpop.f32.mrb[10].mxu0  ;;  %v1610_v22 = vsel %vm1280_vm6, %v1589_v40, %v1601_v55  ;;  %vm1305_vm3 = vcmp.eq.s32.totalorder %v4528_v7, 1 }
 0x488   : > { %v4451_v56 = vpop.f32.mrb[11].mxu0  ;;  %v1642_v30 = vrot.slane %v1610_v22, 1  ;;  %vm1698_vm4 = vcmp.eq.s32.totalorder %v4544_v42, 1 }
 0x489   : > { %v1245_v33 = vpop.permute.xlu0 %1244  ;;  %1711 = vrot.lane.b32.xlu0 %v4423_v37, %s3747_s12 }
 0x48a   : > { %v1732_v20 = vpop.permute.xlu1 %1731 }
 0x48b   : > { %v4456_v18 = vpop.f32.mrb[20].mxu1  ;;  %v1755_v12 = vsel %vm1363_vm2, %v1708_v52, %v1732_v20 }
 0x48c   : > { %v4459_v13 = vpop.f32.mrb[21].mxu1  ;;  %v4464_v16 = vsel %vm1697_vm15, %v1755_v12, %v4329_v47  ;;  %v4479_v47 = vsel %vm4350_vm13, %v1638_v21, %v4277_v5  ;;  %v1643_v5 = vsel %vm1628_vm5, %v1640_v39, %v1642_v30 }
 0x48d   : > { %v1269_v17 = vpop.permute.xlu0 %1268  ;;  %1715 = vrot.lane.b32.xlu0 %v4440_v59, %s3747_s12  ;;  %1813 = vrot.lane.b32.xlu1 %v4464_v16, %s3748_s9  ;;  %v4500_v50 = vsel %vm4350_vm13, %v1643_v5, %v4307_v31 }
 0x48e   : > { %v1247_v46 = vpop.permute.xlu1 %1246  ;;  %v1287_v0 = vsel %vm1280_vm6, %v1245_v33, %v1269_v17 }
 0x48f   : > { %v4472_v25 = vpop.f32.mrb[12].mxu0  ;;  %v4489_v35 = vsel %vm4252_vm7, %v1287_v0, %v4285_v9  ;;  %v1644_v44 = vrot.slane %v1287_v0, 1 }
 0x490   : > { %v4474_v29 = vpop.f32.mrb[13].mxu0 }
 0x491   : > { %1737 = vrot.lane.b32.xlu1 %v4479_v47, %s3746_s25  ;;  %1789 = vrot.lane.b32.xlu0 %v4464_v16, %s3749_s30  ;;  %v1591_v40 = vpop.permute.xlu0 %1590 }
 0x492   : > { %v1271_v27 = vpop.permute.xlu1 %1270 }
 0x493   : > { %v1288_v36 = vsel %vm1280_vm6, %v1247_v46, %v1271_v27 }
 0x494   : > { %v1645_v51 = vrot.slane %v1288_v36, 1  ;;  %v4510_v39 = vsel %vm4369_vm14, %v1288_v36, %v4295_v23 }
 0x495   : > { %1713 = vrot.lane.b32.xlu0 %v4479_v47, %s3747_s12  ;;  %1327 = vrot.lane.b32.xlu1 %v4489_v35, %s3747_s12  ;;  %v1710_v20 = vpop.permute.xlu0 %1709 }
 0x496   : > { %v1603_v38 = vpop.permute.xlu1 %1602  ;;  %v1646_v31 = vsel %vm1628_vm5, %v1644_v44, %v1645_v51 }
 0x497   : > { %v1611_v9 = vsel %vm1280_vm6, %v1591_v40, %v1603_v38  ;;  %v4521_v52 = vsel %vm4320_vm9, %v1646_v31, %v4310_v32  ;;  %v1364_v32 = vsel %vm1363_vm2, %v4408_v28, %v4391_v11  ;;  %v4558_v11 = vand.u32 1, %v1302_v1 }
 0x498   : > { %v1647_v62 = vrot.slane %v1611_v9, 1  ;;  %vm1446_vm6 = vcmask 97280  }
 0x499   : > { %1717 = vrot.lane.b32.xlu0 %v4500_v50, %s3747_s12  ;;  %1351 = vrot.lane.b32.xlu1 %v4489_v35, %s3746_s25  ;;  %v1318_v12 = vpop.permute.xlu0 %1317 }
 0x49a   : > { %v1648_v23 = vsel %vm1628_vm5, %v1645_v51, %v1647_v62  ;;  %v1734_v55 = vpop.permute.xlu1 %1733  ;;  %vm1306_vm5 = vcmp.eq.s32.totalorder %v4558_v11, 1  ;;  %v1384_v11 = vshra.s32 %v4240_v45, 2 }
 0x49b   : > { %v4534_v33 = vsel %vm4350_vm13, %v1648_v23, %v4317_v41  ;;  %v4550_v41 = vsel %vm1305_vm3, %v1364_v32, %v4265_v58  ;;  %v1756_v63 = vsel %vm1363_vm2, %v1710_v20, %v1734_v55 }
 0x49c   : > { %v4563_v17 = vsel %vm1698_vm4, %v1756_v63, %v4365_v4 }
 0x49d   : > { %1741 = vrot.lane.b32.xlu0 %v4500_v50, %s3746_s25  ;;  %1353 = vrot.lane.b32.xlu1 %v4510_v39, %s3746_s25 }
 0x49e   : > { %v1342_v28 = vpop.permute.xlu1 %1341 }
 0x49f   : > { %v1365_v58 = vsel %vm1363_vm2, %v1318_v12, %v1342_v28 }
 0x4a0   : > { %v4574_v21 = vsel %vm1306_vm5, %v1365_v58, %v4377_v8 }
 0x4a1   : > { %1329 = vrot.lane.b32.xlu0 %v4510_v39, %s3747_s12  ;;  %1719 = vrot.lane.b32.xlu1 %v4521_v52, %s3747_s12 }
 0x4a5   : > { %1743 = vrot.lane.b32.xlu1 %v4521_v52, %s3746_s25  ;;  %1721 = vrot.lane.b32.xlu0 %v4534_v33, %s3747_s12 }
 0x4a9   : > { %1745 = vrot.lane.b32.xlu1 %v4534_v33, %s3746_s25  ;;  %1398 = vrot.lane.b32.xlu0 %v4550_v41, %s3749_s30 }
 0x4ad   : > { %1422 = vrot.lane.b32.xlu1 %v4550_v41, %s3748_s9  ;;  %1791 = vrot.lane.b32.xlu0 %v4563_v17, %s3749_s30 }
 0x4b1   : > { %1815 = vrot.lane.b32.xlu1 %v4563_v17, %s3748_s9  ;;  %1400 = vrot.lane.b32.xlu0 %v4574_v21, %s3749_s30 }
 0x4b5   : > { %1424 = vrot.lane.b32.xlu1 %v4574_v21, %s3748_s9 }
 0x4e1   : > { %v1344_v4 = vpop.permute.xlu1 %1343  ;;  %v1320_v22 = vpop.permute.xlu0 %1319 }
 0x4e2   : > { %v1366_v46 = vsel %vm1363_vm2, %v1320_v22, %v1344_v4 }
 0x4e3   : > { %v4586_v30 = vsel %vm1305_vm3, %v1366_v46, %v4389_v14 }
 0x4e4   : > { %1426 = vrot.lane.b32.xlu1 %v4586_v30, %s3748_s9  ;;  %1402 = vrot.lane.b32.xlu0 %v4586_v30, %s3749_s30 }
 0x4ea   : > { %v1348_v8 = vpop.permute.xlu1 %1347  ;;  %v1324_v0 = vpop.permute.xlu0 %1323 }
 0x4eb   : > { %v1368_v27 = vsel %vm1363_vm2, %v1324_v0, %v1348_v8 }
 0x4ec   : > { %v4596_v5 = vsel %vm1305_vm3, %v1368_v27, %v4401_v26 }
 0x4ed   : > { %1430 = vrot.lane.b32.xlu1 %v4596_v5, %s3748_s9  ;;  %1406 = vrot.lane.b32.xlu0 %v4596_v5, %s3749_s30 }
 0x4ee   : > { %v1346_v14 = vpop.permute.xlu1 %1345  ;;  %v1322_v36 = vpop.permute.xlu0 %1321 }
 0x4ef   : > { %v1367_v38 = vsel %vm1363_vm2, %v1322_v36, %v1346_v14 }
 0x4f0   : > { %v4606_v40 = vsel %vm1306_vm5, %v1367_v38, %v4413_v34 }
 0x4f1   : > { %1428 = vrot.lane.b32.xlu1 %v4606_v40, %s3748_s9  ;;  %1404 = vrot.lane.b32.xlu0 %v4606_v40, %s3749_s30 }
 0x4f2   : > { %v1736_v51 = vpop.permute.xlu1 %1735 }
 0x4f3   : > { %v1326_v26 = vpop.permute.xlu0 %1325 }
 0x4f6   : > { %v1740_v34 = vpop.permute.xlu1 %1739 }
 0x4f7   : > { %v1350_v9 = vpop.permute.xlu0 %1349 }
 0x4f8   : > { %v1369_v44 = vsel %vm1363_vm2, %v1326_v26, %v1350_v9 }
 0x4f9   : > { %v4616_v62 = vsel %vm1306_vm5, %v1369_v44, %v4431_v43 }
 0x4fa   : > { %1408 = vrot.lane.b32.xlu0 %v4616_v62, %s3749_s30 }
 0x4fb   : > { %v1712_v31 = vpop.permute.xlu0 %1711 }
 0x4fc   : > { %v1757_v48 = vsel %vm1363_vm2, %v1712_v31, %v1736_v51  ;;  %v4706_v31 = vand.u32 1, %v1384_v11 }
 0x4fd   : > { %v4624_v23 = vsel %vm1697_vm15, %v1757_v48, %v4423_v37  ;;  %v1776_v48 = vshra.s32 %v4338_v15, 2 }
 0x4fe   : > { %1432 = vrot.lane.b32.xlu0 %v4616_v62, %s3748_s9  ;;  %1817 = vrot.lane.b32.xlu1 %v4624_v23, %s3748_s9  ;;  %vm1388_vm8 = vcmp.eq.s32.totalorder %v4706_v31, 1 }
 0x4ff   : > { %v1814_v43 = vpop.permute.xlu1 %1813  ;;  %v1716_v53 = vpop.permute.xlu0 %1715 }
 0x500   : > { %v1759_v55 = vsel %vm1363_vm2, %v1716_v53, %v1740_v34 }
 0x501   : > { %v4634_v32 = vsel %vm1697_vm15, %v1759_v55, %v4440_v59  ;;  %v1385_v55 = vshra.s32 %v4345_v57, 2 }
 0x502   : > { %1793 = vrot.lane.b32.xlu0 %v4624_v23, %s3749_s30  ;;  %1821 = vrot.lane.b32.xlu1 %v4634_v32, %s3748_s9 }
 0x503   : > { %v1738_v37 = vpop.permute.xlu1 %1737  ;;  %v1790_v1 = vpop.permute.xlu0 %1789 }
 0x506   : > { %1797 = vrot.lane.b32.xlu0 %v4634_v32, %s3749_s30 }
 0x507   : > { %v1328_v20 = vpop.permute.xlu1 %1327  ;;  %v1714_v63 = vpop.permute.xlu0 %1713 }
 0x508   : > { %v1758_v28 = vsel %vm1363_vm2, %v1714_v63, %v1738_v37  ;;  %v4734_v63 = vand.u32 1, %v1385_v55 }
 0x509   : > { %v4646_v59 = vsel %vm1698_vm4, %v1758_v28, %v4479_v47 }
 0x50a   : > { %1819 = vrot.lane.b32.xlu1 %v4646_v59, %s3748_s9  ;;  %1795 = vrot.lane.b32.xlu0 %v4646_v59, %s3749_s30  ;;  %vm1389_vm10 = vcmp.eq.s32.totalorder %v4734_v63, 1 }
 0x50b   : > { %v1352_v12 = vpop.permute.xlu1 %1351  ;;  %v1718_v58 = vpop.permute.xlu0 %1717 }
 0x50c   : > { %v1370_v4 = vsel %vm1363_vm2, %v1328_v20, %v1352_v12 }
 0x50d   : > { %v4656_v22 = vsel %vm1305_vm3, %v1370_v4, %v4489_v35 }
 0x50e   : > { %1410 = vrot.lane.b32.xlu1 %v4656_v22, %s3749_s30 }
 0x50f   : > { %v1354_v47 = vpop.permute.xlu1 %1353  ;;  %v1742_v46 = vpop.permute.xlu0 %1741 }
 0x510   : > { %v1760_v8 = vsel %vm1363_vm2, %v1718_v58, %v1742_v46 }
 0x511   : > { %v4664_v0 = vsel %vm1698_vm4, %v1760_v8, %v4500_v50  ;;  %v1775_v50 = vshra.s32 %v4299_v24, 2 }
 0x512   : > { %1434 = vrot.lane.b32.xlu1 %v4656_v22, %s3748_s9  ;;  %1799 = vrot.lane.b32.xlu0 %v4664_v0, %s3749_s30 }
 0x513   : > { %v1720_v35 = vpop.permute.xlu1 %1719  ;;  %v1330_v7 = vpop.permute.xlu0 %1329 }
 0x514   : > { %v1371_v27 = vsel %vm1363_vm2, %v1330_v7, %v1354_v47 }
 0x515   : > { %v4674_v14 = vsel %vm1306_vm5, %v1371_v27, %v4510_v39  ;;  %v4691_v39 = vand.u32 1, %v1775_v50 }
 0x516   : > { %1823 = vrot.lane.b32.xlu0 %v4664_v0, %s3748_s9  ;;  %1436 = vrot.lane.b32.xlu1 %v4674_v14, %s3748_s9 }
 0x517   : > { %v1744_v36 = vpop.permute.xlu1 %1743  ;;  %v1722_v38 = vpop.permute.xlu0 %1721  ;;  %vm1779_vm7 = vcmp.eq.s32.totalorder %v4691_v39, 1 }
 0x518   : > { %v1761_v26 = vsel %vm1363_vm2, %v1720_v35, %v1744_v36 }
 0x519   : > { %v4685_v51 = vsel %vm1697_vm15, %v1761_v26, %v4521_v52  ;;  %v1837_v52 = vsel %vm1446_vm6, %v1790_v1, %v1814_v43  ;;  %v4720_v43 = vand.u32 1, %v1776_v48 }
 0x51a   : > { %1801 = vrot.lane.b32.xlu1 %v4685_v51, %s3749_s30  ;;  %1412 = vrot.lane.b32.xlu0 %v4674_v14, %s3749_s30 }
 0x51b   : > { %v1746_v9 = vpop.permute.xlu1 %1745  ;;  %v1399_v34 = vpop.permute.xlu0 %1398  ;;  %vm1780_vm9 = vcmp.eq.s32.totalorder %v4720_v43, 1  ;;  %v1857_v43 = vshra.s32 %v4299_v24, 3  ;;  %v1858_v24 = vshra.s32 %v4338_v15, 3 }
 0x51c   : > { %v1762_v44 = vsel %vm1363_vm2, %v1722_v38, %v1746_v9 }
 0x51d   : > { %v4698_v6 = vsel %vm1698_vm4, %v1762_v44, %v4534_v33  ;;  %v4712_v33 = vsel %vm1779_vm7, %v1837_v52, %v4464_v16 }
 0x51e   : > { %1825 = vrot.lane.b32.xlu1 %v4685_v51, %s3748_s9  ;;  %1803 = vrot.lane.b32.xlu0 %v4698_v6, %s3749_s30  ;;  %s5255_s30 = sld [smem:[#allocation25_spill]] }
 0x51f   : > { %v1423_v53 = vpop.permute.xlu1 %1422  ;;  %v1792_v37 = vpop.permute.xlu0 %1791 }
 0x520   : > { %v1447_v42 = vsel %vm1446_vm6, %v1399_v34, %v1423_v53 }
 0x521   : > { %v4726_v16 = vsel %vm1388_vm8, %v1447_v42, %v4550_v41 }
 0x522   : > { %1827 = vrot.lane.b32.xlu1 %v4698_v6, %s3748_s9  ;;  %1871 = vrot.lane.b32.xlu0 %v4712_v33, %s3750_s1 }
 0x523   : > { %v1816_v1 = vpop.permute.xlu1 %1815  ;;  %v1401_v12 = vpop.permute.xlu0 %1400 }
 0x524   : > { %v1838_v20 = vsel %vm1446_vm6, %v1792_v37, %v1816_v1 }
 0x525   : > { %v4739_v41 = vsel %vm1780_vm9, %v1838_v20, %v4563_v17 }
 0x526   : > { %1895 = vrot.lane.b32.xlu1 %v4712_v33, %s3751_s28  ;;  %1481 = vrot.lane.b32.xlu0 %v4726_v16, %s3750_s1 }
 0x527   : > { %v1425_v28 = vpop.permute.xlu1 %1424 }
 0x528   : > { %v1448_v58 = vsel %vm1446_vm6, %v1401_v12, %v1425_v28 }
 0x529   : > { %v4750_v4 = vsel %vm1389_vm10, %v1448_v58, %v4574_v21 }
 0x52a   : > { %1505 = vrot.lane.b32.xlu1 %v4726_v16, %s3751_s28  ;;  %1873 = vrot.lane.b32.xlu0 %v4739_v41, %s3750_s1 }
 0x52e   : > { %1897 = vrot.lane.b32.xlu1 %v4739_v41, %s3751_s28  ;;  %1483 = vrot.lane.b32.xlu0 %v4750_v4, %s3750_s1 }
 0x532   : > { %1507 = vrot.lane.b32.xlu1 %v4750_v4, %s3751_s28 }
 0x556   : > { %v1427_v17 = vpop.permute.xlu1 %1426  ;;  %v1403_v47 = vpop.permute.xlu0 %1402 }
 0x557   : > { %v1449_v46 = vsel %vm1446_vm6, %v1403_v47, %v1427_v17 }
 0x558   : > { %v4762_v8 = vsel %vm1388_vm8, %v1449_v46, %v4586_v30 }
 0x559   : > { %1509 = vrot.lane.b32.xlu1 %v4762_v8, %s3751_s28  ;;  %1485 = vrot.lane.b32.xlu0 %v4762_v8, %s3750_s1 }
 0x55f   : > { %v1431_v21 = vpop.permute.xlu1 %1430  ;;  %v1407_v35 = vpop.permute.xlu0 %1406 }
 0x560   : > { %v1451_v7 = vsel %vm1446_vm6, %v1407_v35, %v1431_v21 }
 0x561   : > { %v4772_v27 = vsel %vm1388_vm8, %v1451_v7, %v4596_v5 }
 0x562   : > { %1513 = vrot.lane.b32.xlu1 %v4772_v27, %s3751_s28  ;;  %1489 = vrot.lane.b32.xlu0 %v4772_v27, %s3750_s1 }
 0x563   : > { %v1429_v30 = vpop.permute.xlu1 %1428  ;;  %v1405_v50 = vpop.permute.xlu0 %1404 }
 0x564   : > { %v1450_v36 = vsel %vm1446_vm6, %v1405_v50, %v1429_v30 }
 0x565   : > { %v4782_v38 = vsel %vm1389_vm10, %v1450_v36, %v4606_v40 }
 0x566   : > { %1511 = vrot.lane.b32.xlu1 %v4782_v38, %s3751_s28  ;;  %1487 = vrot.lane.b32.xlu0 %v4782_v38, %s3750_s1 }
 0x56c   : > { %v1409_v5 = vpop.permute.xlu0 %1408 }
 0x570   : > { %v1433_v26 = vpop.permute.xlu0 %1432  ;;  %v1818_v9 = vpop.permute.xlu1 %1817 }
 0x571   : > { %v1452_v11 = vsel %vm1446_vm6, %v1409_v5, %v1433_v26  ;;  %v1467_v26 = vshra.s32 %v4240_v45, 3 }
 0x572   : > { %v4792_v44 = vsel %vm1389_vm10, %v1452_v11, %v4616_v62 }
 0x573   : > { %1491 = vrot.lane.b32.xlu0 %v4792_v44, %s3750_s1  ;;  %v4882_v63 = vand.u32 1, %v1467_v26 }
 0x574   : > { %v1794_v40 = vpop.permute.xlu0 %1793  ;;  %v1822_v48 = vpop.permute.xlu1 %1821 }
 0x575   : > { %v1839_v34 = vsel %vm1446_vm6, %v1794_v40, %v1818_v9  ;;  %v4880_v9 = vand.u32 1, %v1857_v43  ;;  %v4885_v40 = vand.u32 127, %v507_v60  ;;  %vm1471_vm13 = vcmp.eq.s32.totalorder %v4882_v63, 1 }
 0x576   : > { %v4800_v52 = vsel %vm1779_vm7, %v1839_v34, %v4624_v23  ;;  %v4888_v34 = vadd.s32 1, %v4083_v61 }
 0x577   : > { %1515 = vrot.lane.b32.xlu0 %v4792_v44, %s3751_s28  ;;  %1899 = vrot.lane.b32.xlu1 %v4800_v52, %s3751_s28  ;;  %vm1861_vm12 = vcmp.eq.s32.totalorder %v4880_v9, 1  ;;  %vm1939_vm15 = vcmp.le.s32.totalorder %v4885_v40, %v4083_v61  ;;  %vm1940_vm5 = vcmp.le.s32.totalorder %v4885_v40, %v4248_v49 }
 0x578   : > { %v1798_v62 = vpop.permute.xlu0 %1797  ;;  %vm1943_vm14 = vcmp.eq.s32.totalorder %v4885_v40, %v4888_v34 }
 0x579   : > { %v1841_v53 = vsel %vm1446_vm6, %v1798_v62, %v1822_v48 }
 0x57a   : > { %v4810_v42 = vsel %vm1779_vm7, %v1841_v53, %v4634_v32  ;;  %v1468_v53 = vshra.s32 %v4345_v57, 3 }
 0x57b   : > { %1875 = vrot.lane.b32.xlu0 %v4800_v52, %s3750_s1  ;;  %1903 = vrot.lane.b32.xlu1 %v4810_v42, %s3751_s28 }
 0x57c   : > { %v1820_v23 = vpop.permute.xlu1 %1819  ;;  %v1796_v55 = vpop.permute.xlu0 %1795  ;;  %v4911_v57 = vand.u32 1, %v1468_v53 }
 0x57d   : > { %v1840_v37 = vsel %vm1446_vm6, %v1796_v55, %v1820_v23 }
 0x57e   : > { %v4820_v1 = vsel %vm1780_vm9, %v1840_v37, %v4646_v59  ;;  %v4906_v37 = vand.u32 1, %v1858_v24  ;;  %vm1472_vm3 = vcmp.eq.s32.totalorder %v4911_v57, 1 }
 0x57f   : > { %1879 = vrot.lane.b32.xlu0 %v4810_v42, %s3750_s1  ;;  %1901 = vrot.lane.b32.xlu1 %v4820_v1, %s3751_s28 }
 0x580   : > { %v1411_v32 = vpop.permute.xlu1 %1410  ;;  %vm1862_vm2 = vcmp.eq.s32.totalorder %v4906_v37, 1 }
 0x583   : > { %1877 = vrot.lane.b32.xlu0 %v4820_v1, %s3750_s1 }
 0x584   : > { %v1435_v20 = vpop.permute.xlu1 %1434  ;;  %v1800_v28 = vpop.permute.xlu0 %1799 }
 0x585   : > { %v1453_v12 = vsel %vm1446_vm6, %v1411_v32, %v1435_v20  ;;  %v4917_v20 = vadd.s32 1, %v4248_v49 }
 0x586   : > { %v4832_v58 = vsel %vm1388_vm8, %v1453_v12, %v4656_v22 }
 0x587   : > { %1493 = vrot.lane.b32.xlu1 %v4832_v58, %s3750_s1  ;;  %vm1944_vm4 = vcmp.eq.s32.totalorder %v4885_v40, %v4917_v20 }
 0x588   : > { %v1437_v59 = vpop.permute.xlu1 %1436  ;;  %v1824_v17 = vpop.permute.xlu0 %1823 }
 0x589   : > { %v1842_v47 = vsel %vm1446_vm6, %v1800_v28, %v1824_v17 }
 0x58a   : > { %v4840_v46 = vsel %vm1780_vm9, %v1842_v47, %v4664_v0 }
 0x58b   : > { %1517 = vrot.lane.b32.xlu1 %v4832_v58, %s3751_s28  ;;  %1881 = vrot.lane.b32.xlu0 %v4840_v46, %s3750_s1 }
 0x58c   : > { %v1802_v22 = vpop.permute.xlu1 %1801  ;;  %v1413_v31 = vpop.permute.xlu0 %1412 }
 0x58d   : > { %v1454_v5 = vsel %vm1446_vm6, %v1413_v31, %v1437_v59 }
 0x58f   : > { %1905 = vrot.lane.b32.xlu0 %v4840_v46, %s3751_s28 }
 0x590   : > { %v1826_v21 = vpop.permute.xlu1 %1825  ;;  %v1804_v0 = vpop.permute.xlu0 %1803 }
 0x591   : > { %v1843_v35 = vsel %vm1446_vm6, %v1802_v22, %v1826_v21 }
 0x592   : > { %v4852_v7 = vsel %vm1779_vm7, %v1843_v35, %v4685_v51  ;;  %v4870_v51 = vsel %vm1389_vm10, %v1454_v5, %v4674_v14  ;;  %vm2782_vm7 = vcmask 392192  }
 0x593   : > { %1883 = vrot.lane.b32.xlu1 %v4852_v7, %s3750_s1 }
 0x594   : > { %v1828_v30 = vpop.permute.xlu1 %1827 }
 0x595   : > { %v1844_v50 = vsel %vm1446_vm6, %v1804_v0, %v1828_v30  ;;  %vm2779_vm6 = vcmask 261120  }
 0x596   : > { %v4860_v36 = vsel %vm1780_vm9, %v1844_v50, %v4698_v6  ;;  %v1872_v6 = vpop.permute.xlu0 %1871 }
 0x597   : > { %1907 = vrot.lane.b32.xlu1 %v4852_v7, %s3751_s28  ;;  %1885 = vrot.lane.b32.xlu0 %v4860_v36, %s3750_s1 }
 0x598   : > { %v1896_v39 = vpop.permute.xlu1 %1895 }
 0x599   : > { %v1919_v48 = vsel %vm1529_vm11, %v1872_v6, %v1896_v39 }
 0x59a   : > { %v1482_v14 = vpop.permute.xlu0 %1481  ;;  %v1931_v60 = vsel %vm1861_vm12, %v1919_v48, %v4712_v33 }
 0x59b   : > { %1909 = vrot.lane.b32.xlu1 %v4860_v36, %s3751_s28  ;;  %1495 = vrot.lane.b32.xlu0 %v4870_v51, %s3750_s1  ;;  %v1949_v15 = vsel %vm1943_vm14, 0.0, %v1931_v60 }
 0x59c   : > { %v1506_v11 = vpop.permute.xlu1 %1505 }
 0x59d   : > { %v1530_v45 = vsel %vm1529_vm11, %v1482_v14, %v1506_v11 }
 0x59e   : > { %v1874_v23 = vpop.permute.xlu0 %1873  ;;  %v1542_v55 = vsel %vm1471_vm13, %v1530_v45, %v4726_v16 }
 0x59f   : > { %1519 = vrot.lane.b32.xlu1 %v4870_v51, %s3751_s28  ;;  %v1961_v33 = vsel %vm1939_vm15, %v1542_v55, %v1949_v15 }
 0x5a0   : > { %v1898_v62 = vpop.permute.xlu1 %1897  ;;  %v4924_v59 = vadd.f32 %v4358_v3, %v1961_v33 }
 0x5a1   : > { %v1920_v16 = vsel %vm1529_vm11, %v1874_v23, %v1898_v62 }
 0x5a2   : > { %v1484_v28 = vpop.permute.xlu0 %1483  ;;  %v1932_v17 = vsel %vm1862_vm2, %v1920_v16, %v4739_v41  ;;  %v2317_v22 = vsel %vm642_vm1, %v4924_v59, -inf }
 0x5a3   : > { %v1950_v3 = vsel %vm1944_vm4, 0.0, %v1932_v17 }
 0x5a4   : > { %v1508_v32 = vpop.permute.xlu1 %1507 }
 0x5a5   : > { %v1531_v12 = vsel %vm1529_vm11, %v1484_v28, %v1508_v32 }
 0x5a6   : > { %v1543_v47 = vsel %vm1472_vm3, %v1531_v12, %v4750_v4 }
 0x5a7   : > { %v1962_v31 = vsel %vm1940_vm5, %v1543_v47, %v1950_v3 }
 0x5a8   : > { %v4945_v41 = vadd.f32 %v4356_v2, %v1962_v31 }
 0x5aa   : > { %v2320_v4 = vsel %vm642_vm1, %v4945_v41, -inf }
 0x5ba   : > { %2318 = vmax.xlane.f32.xlu0 %v2317_v22 }
 0x5c3   : > { %2321 = vmax.xlane.f32.xlu1 %v2320_v4 }
 0x5cb   : > { %v1486_v21 = vpop.permute.xlu0 %1485  ;;  %v1510_v35 = vpop.permute.xlu1 %1509 }
 0x5cc   : > { %v1532_v26 = vsel %vm1529_vm11, %v1486_v21, %v1510_v35 }
 0x5cd   : > { %v1544_v45 = vsel %vm1471_vm13, %v1532_v26, %v4762_v8 }
 0x5d4   : > { %v1490_v0 = vpop.permute.xlu0 %1489  ;;  %v1514_v30 = vpop.permute.xlu1 %1513 }
 0x5d5   : > { %v1534_v62 = vsel %vm1529_vm11, %v1490_v0, %v1514_v30 }
 0x5d8   : > { %v1488_v50 = vpop.permute.xlu0 %1487  ;;  %v1512_v5 = vpop.permute.xlu1 %1511 }
 0x5d9   : > { %v1533_v33 = vsel %vm1529_vm11, %v1488_v50, %v1512_v5 }
 0x5da   : > { %v1545_v17 = vsel %vm1472_vm3, %v1533_v33, %v4782_v38 }
 0x5e5   : > { %v1492_v39 = vpop.permute.xlu0 %1491 }
 0x5e9   : > { %v1900_v6 = vpop.permute.xlu1 %1899  ;;  %v1516_v43 = vpop.permute.xlu0 %1515 }
 0x5ea   : > { %v1535_v4 = vsel %vm1529_vm11, %v1492_v39, %v1516_v43 }
 0x5ed   : > { %v1876_v11 = vpop.permute.xlu0 %1875  ;;  %v1904_v2 = vpop.permute.xlu1 %1903 }
 0x5ee   : > { %v1921_v14 = vsel %vm1529_vm11, %v1876_v11, %v1900_v6 }
 0x5ef   : > { %v1933_v48 = vsel %vm1861_vm12, %v1921_v14, %v4800_v52  ;;  %v1546_v52 = vsel %vm1471_vm13, %v1534_v62, %v4772_v27 }
 0x5f0   : > { %v1951_v24 = vsel %vm1943_vm14, 0.0, %v1933_v48 }
 0x5f1   : > { %v1880_v53 = vpop.permute.xlu0 %1879  ;;  %v1963_v60 = vsel %vm1939_vm15, %v1544_v45, %v1951_v24  ;;  %v1902_v16 = vpop.permute.xlu1 %1901 }
 0x5f2   : > { %v1923_v23 = vsel %vm1529_vm11, %v1880_v53, %v1904_v2  ;;  %v4966_v55 = vadd.f32 %v4451_v56, %v1963_v60 }
 0x5f3   : > { %v1935_v8 = vsel %vm1861_vm12, %v1923_v23, %v4810_v42 }
 0x5f4   : > { %v1953_v15 = vsel %vm1943_vm14, 0.0, %v1935_v8  ;;  %v2323_v32 = vsel %vm642_vm1, %v4966_v55, -inf }
 0x5f5   : > { %2324 = vmax.xlane.f32.xlu0 %v2323_v32  ;;  %v1878_v56 = vpop.permute.xlu0 %1877  ;;  %v1965_v42 = vsel %vm1939_vm15, %v1546_v52, %v1953_v15 }
 0x5f6   : > { %v1922_v28 = vsel %vm1529_vm11, %v1878_v56, %v1902_v16  ;;  %v4985_v27 = vadd.f32 %v4459_v13, %v1965_v42 }
 0x5f7   : > { %v1934_v12 = vsel %vm1862_vm2, %v1922_v28, %v4820_v1 }
 0x5f8   : > { %v1952_v47 = vsel %vm1944_vm4, 0.0, %v1934_v12  ;;  %v2329_v22 = vsel %vm642_vm1, %v4985_v27, -inf }
 0x5f9   : > { %2330 = vmax.xlane.f32.xlu0 %v2329_v22  ;;  %v1964_v13 = vsel %vm1940_vm5, %v1545_v17, %v1952_v47  ;;  %v1494_v1 = vpop.permute.xlu1 %1493 }
 0x5fa   : > { %v5002_v3 = vadd.f32 %v4449_v54, %v1964_v13  ;;  %v1547_v54 = vsel %vm1472_vm3, %v1535_v4, %v4792_v44 }
 0x5fc   : > { %v2326_v31 = vsel %vm642_vm1, %v5002_v3, -inf }
 0x5fd   : > { %2327 = vmax.xlane.f32.xlu0 %v2326_v31  ;;  %v1882_v38 = vpop.permute.xlu0 %1881  ;;  %v1518_v21 = vpop.permute.xlu1 %1517 }
 0x601   : > { %v1906_v35 = vpop.permute.xlu0 %1905 }
 0x602   : > { %v1924_v0 = vsel %vm1529_vm11, %v1882_v38, %v1906_v35 }
 0x603   : > { %v1936_v30 = vsel %vm1862_vm2, %v1924_v0, %v4840_v46  ;;  %v1536_v46 = vsel %vm1529_vm11, %v1494_v1, %v1518_v21 }
 0x604   : > { %v1954_v50 = vsel %vm1944_vm4, 0.0, %v1936_v30  ;;  %v1548_v2 = vsel %vm1471_vm13, %v1536_v46, %v4832_v58 }
 0x605   : > { %v1884_v5 = vpop.permute.xlu1 %1883  ;;  %v1966_v39 = vsel %vm1940_vm5, %v1547_v54, %v1954_v50 }
 0x606   : > { %v5021_v6 = vadd.f32 %v4456_v18, %v1966_v39 }
 0x608   : > { %v2332_v43 = vsel %vm642_vm1, %v5021_v6, -inf }
 0x609   : > { %v1908_v26 = vpop.permute.xlu1 %1907  ;;  %2333 = vmax.xlane.f32.xlu1 %v2332_v43  ;;  %v1886_v14 = vpop.permute.xlu0 %1885 }
 0x60a   : > { %v1925_v44 = vsel %vm1529_vm11, %v1884_v5, %v1908_v26 }
 0x60b   : > { %v1937_v11 = vsel %vm1861_vm12, %v1925_v44, %v4852_v7 }
 0x60c   : > { %v1955_v18 = vsel %vm1943_vm14, 0.0, %v1937_v11 }
 0x60d   : > { %v1910_v48 = vpop.permute.xlu1 %1909  ;;  %v1967_v45 = vsel %vm1939_vm15, %v1548_v2, %v1955_v18  ;;  %v1496_v58 = vpop.permute.xlu0 %1495 }
 0x60e   : > { %v1926_v24 = vsel %vm1529_vm11, %v1886_v14, %v1910_v48  ;;  %v2309_v62 = vadd.f32 %v4474_v29, %v1967_v45 }
 0x60f   : > { %v1938_v7 = vsel %vm1862_vm2, %v1926_v24, %v4860_v36 }
 0x610   : > { %v2335_v9 = vsel %vm642_vm1, %v2309_v62, -inf  ;;  %v1956_v61 = vsel %vm1944_vm4, 0.0, %v1938_v7 }
 0x611   : > { %v1520_v63 = vpop.permute.xlu1 %1519  ;;  %2336 = vmax.xlane.f32.xlu0 %v2335_v9 }
 0x612   : > { %v1537_v34 = vsel %vm1529_vm11, %v1496_v58, %v1520_v63 }
 0x613   : > { %v1549_v53 = vsel %vm1472_vm3, %v1537_v34, %v4870_v51 }
 0x614   : > { %v1968_v29 = vsel %vm1940_vm5, %v1549_v53, %v1956_v61 }
 0x615   : > { %v2314_v36 = vadd.f32 %v4472_v25, %v1968_v29 }
 0x617   : > { %v2338_v37 = vsel %vm642_vm1, %v2314_v36, -inf }
 0x618   : > { %2339 = vmax.xlane.f32.xlu1 %v2338_v37 }
 0x627   : > { %732 = vrot.lane.b32.xlu0 %v4096_v10, %s3740_s20 }
 0x629   : > { %734 = vrot.lane.b32.xlu1 %v4102_v19, %s3740_s20  ;;  %s5253_s20 = sld [smem:[#allocation20_spill]] }
 0x62d   : > { %738 = vrot.lane.b32.xlu1 %v4096_v10, %s3741_s29 }
 0x62f   : > { %s3093_s25 = sshll.u32 %s5253_s20, 8 }
 0x630   : > { %s5144_s1 = scalar_lea.hbm %s5255_s30, %s3093_s25 }
 0x631   : > { %740 = vrot.lane.b32.xlu1 %v4102_v19, %s3741_s29 }
 0x647   : > { %v2319_v51 = vpop.xlane.xlu0 %2318 }
 0x648   : > { %v2341_v49 = vsub.f32 %v4924_v59, %v2319_v51 }
 0x64a   : > { %v2349_v40 = vmul.f32 1.442695, %v2341_v49 }
 0x64c   : > { %3491 = vpow2.f32 %v2349_v40 }
 0x650   : > { %v2322_v25 = vpop.xlane.xlu1 %2321 }
 0x651   : > { %v2342_v57 = vsub.f32 %v4945_v41, %v2322_v25 }
 0x653   : > { %v2351_v20 = vmul.f32 1.442695, %v2342_v57 }
 0x655   : > { %3493 = vpow2.f32 %v2351_v20 }
 0x656   : > { %v5067_v60 = vpop.eup %3491 }
 0x657   : > { %v2365_v23 = vsel %vm642_vm1, %v5067_v60, 0.0 }
 0x658   : > { %2366 = vadd.xlane.f32.xlu0 %v2365_v23 }
 0x65f   : > { %v5071_v8 = vpop.eup %3493 }
 0x660   : > { %v2368_v52 = vsel %vm642_vm1, %v5071_v8, 0.0 }
 0x661   : > { %2369 = vadd.xlane.f32.xlu1 %v2368_v52 }
 0x682   : > { %v2325_v59 = vpop.xlane.xlu0 %2324 }
 0x683   : > { %v2343_v15 = vsub.f32 %v4966_v55, %v2325_v59 }
 0x685   : > { %v2353_v32 = vmul.f32 1.442695, %v2343_v15 }
 0x686   : > { %v2331_v33 = vpop.xlane.xlu0 %2330 }
 0x687   : > { %3495 = vpow2.f32 %v2353_v32  ;;  %v2345_v41 = vsub.f32 %v4985_v27, %v2331_v33 }
 0x689   : > { %v2357_v16 = vmul.f32 1.442695, %v2345_v41 }
 0x68a   : > { %v2328_v56 = vpop.xlane.xlu0 %2327 }
 0x68b   : > { %3497 = vpow2.f32 %v2357_v16  ;;  %v2344_v42 = vsub.f32 %v5002_v3, %v2328_v56 }
 0x68d   : > { %v2355_v28 = vmul.f32 1.442695, %v2344_v42 }
 0x68f   : > { %3499 = vpow2.f32 %v2355_v28 }
 0x691   : > { %v5078_v12 = vpop.eup %3495 }
 0x692   : > { %v2371_v17 = vsel %vm642_vm1, %v5078_v12, 0.0 }
 0x693   : > { %2372 = vadd.xlane.f32.xlu0 %v2371_v17 }
 0x695   : > { %v5082_v47 = vpop.eup %3497 }
 0x696   : > { %v2334_v55 = vpop.xlane.xlu1 %2333  ;;  %v2377_v22 = vsel %vm642_vm1, %v5082_v47, 0.0 }
 0x697   : > { %v2346_v27 = vsub.f32 %v5021_v6, %v2334_v55  ;;  %2378 = vadd.xlane.f32.xlu0 %v2377_v22 }
 0x699   : > { %v5087_v13 = vpop.eup %3499  ;;  %v2359_v3 = vmul.f32 1.442695, %v2346_v27 }
 0x69a   : > { %v2374_v1 = vsel %vm642_vm1, %v5087_v13, 0.0 }
 0x69b   : > { %3501 = vpow2.f32 %v2359_v3  ;;  %2375 = vadd.xlane.f32.xlu1 %v2374_v1 }
 0x69e   : > { %v2337_v31 = vpop.xlane.xlu0 %2336 }
 0x69f   : > { %v2347_v38 = vsub.f32 %v2309_v62, %v2337_v31 }
 0x6a1   : > { %v2361_v4 = vmul.f32 1.442695, %v2347_v38 }
 0x6a2   : > { %v733_v21 = vpop.permute.xlu0 %732 }
 0x6a3   : > { %3503 = vpow2.f32 %v2361_v4  ;;  %752 = vst.msk [vmem:[#allocation5 + $0x10] sm:$0xff] %vm642_vm1, %v733_v21 }
 0x6a5   : > { %v5092_v35 = vpop.eup %3501  ;;  %v2340_v0 = vpop.xlane.xlu1 %2339 }
 0x6a6   : > { %v2348_v30 = vsub.f32 %v2314_v36, %v2340_v0  ;;  %v2380_v54 = vsel %vm642_vm1, %v5092_v35, 0.0 }
 0x6a7   : > { %2381 = vadd.xlane.f32.xlu1 %v2380_v54 }
 0x6a8   : > { %v2363_v50 = vmul.f32 1.442695, %v2348_v30 }
 0x6a9   : > { %v735_v5 = vpop.permute.xlu1 %734 }
 0x6aa   : > { %3505 = vpow2.f32 %v2363_v50  ;;  %753 = vst.msk [vmem:[#allocation5 + $0x18] sm:$0xff] %vm642_vm1, %v735_v5  ;;  %v791_v26 = vld [vmem:[#allocation5 + $0x10] sm:$0xff] }
 0x6ad   : > { %v5097_v39 = vpop.eup %3503  ;;  %v739_v6 = vpop.permute.xlu1 %738 }
 0x6ae   : > { %754 = vst.msk [vmem:[#allocation5 + $0x20] sm:$0xff] %vm642_vm1, %v739_v6  ;;  %v2383_v43 = vsel %vm642_vm1, %v5097_v39, 0.0 }
 0x6af   : > { %2384 = vadd.xlane.f32.xlu0 %v2383_v43 }
 0x6b1   : > { %v741_v46 = vpop.permute.xlu1 %740  ;;  %v792_v44 = vld [vmem:[#allocation5 + $0x18] sm:$0xff] }
 0x6b2   : > { %755 = vst.msk [vmem:[#allocation5 + $0x28] sm:$0xff] %vm642_vm1, %v741_v46  ;;  %v3343_v11 = vpack.c.bf16 %v792_v44, %v791_v26  ;;  %v2785_v44 = vld [vmem:[#allocation12] sm:$0xff] }
 0x6b4   : > { %v5103_v14 = vpop.eup %3505  ;;  %3344 = vmatprep.subr.bf16.mxu1 %v3343_v11 }
 0x6b5   : > { %v2386_v2 = vsel %vm642_vm1, %v5103_v14, 0.0  ;;  %v793_v18 = vld [vmem:[#allocation5 + $0x20] sm:$0xff] }
 0x6b6   : > { %2387 = vadd.xlane.f32.xlu1 %v2386_v2 }
 0x6b9   : > { %v794_v48 = vld [vmem:[#allocation5 + $0x28] sm:$0xff] }
 0x6ba   : > { %v3347_v45 = vpack.c.bf16 %v794_v48, %v793_v18  ;;  %v2787_v18 = vld [vmem:[#allocation12 + $0x10] sm:$0xff]  ;;  %v2788_v48 = vld [vmem:[#allocation12 + $0x18] sm:$0xff] }
 0x6bc   : > { %3348 = vmatprep.subr.bf16.mxu0 %v3347_v45 }
 0x6bd   : > { %3350 = vmatpush3.bf16.msra.mxu0 %v3347_v45  ;;  %v3359_v45 = vpack.c.bf16 %v2788_v48, %v2787_v18 }
 0x6c5   : > { %744 = vrot.lane.b32.xlu0 %v4096_v10, %s3742_s11 }
 0x6c7   : > { %746 = vrot.lane.b32.xlu1 %v4102_v19, %s3742_s11 }
 0x6e5   : > { %v2367_v24 = vpop.xlane.xlu0 %2366 }
 0x6e6   : > { %3507 = vrcp.f32 %v2367_v24 }
 0x6ee   : > { %v2370_v62 = vpop.xlane.xlu1 %2369 }
 0x6ef   : > { %3509 = vrcp.f32 %v2370_v62 }
 0x6f0   : > { %v3508_v7 = vpop.eup %3507 }
 0x6f1   : > { %v2397_v9 = vmul.f32 %v3508_v7, %v2367_v24  ;;  %v2789_v24 = vld [vmem:[#allocation12 + $0x20] sm:$0xff] }
 0x6f3   : > { %v2405_v58 = vsub.f32 2.0, %v2397_v9  ;;  %v2792_v9 = vld [vmem:[#allocation12 + $0x38] sm:$0xff] }
 0x6f5   : > { %v2413_v63 = vmul.f32 %v3508_v7, %v2405_v58  ;;  %v2791_v7 = vld [vmem:[#allocation12 + $0x30] sm:$0xff] }
 0x6f6   : > { %v3367_v58 = vpack.c.bf16 %v2792_v9, %v2791_v7 }
 0x6f7   : > { %v2421_v34 = vmul.f32 %v5067_v60, %v2413_v63 }
 0x6f9   : > { %v3510_v61 = vpop.eup %3509  ;;  %3240 = vmatprep.mubr.msk.f32.mxu1 %vm642_vm1, %v2421_v34 }
 0x6fa   : > { %v2398_v53 = vmul.f32 %v3510_v61, %v2370_v62  ;;  %v2790_v62 = vld [vmem:[#allocation12 + $0x28] sm:$0xff] }
 0x6fc   : > { %v2406_v29 = vsub.f32 2.0, %v2398_v53 }
 0x6fe   : > { %v2414_v36 = vmul.f32 %v3510_v61, %v2406_v29 }
 0x700   : > { %v2422_v10 = vmul.f32 %v5071_v8, %v2414_v36 }
 0x702   : > { %3241 = vmatmul.mubr.msk.f32.vlgmr.msra.gmra.mrb[22].mxu1 %vm642_vm1, %v2422_v10 }
 0x703   : > { %3346 = vmatpush3.bf16.msra.mxu1 %v3343_v11  ;;  %v2786_v11 = vld [vmem:[#allocation12 + $0x8] sm:$0xff] }
 0x704   : > { %v3355_v2 = vpack.c.bf16 %v2786_v11, %v2785_v44 }
 0x706   : > { %3356 = vmatprep.subr.bf16.mxu0 %v3355_v2 }
 0x720   : > { %v2373_v19 = vpop.xlane.xlu0 %2372 }
 0x721   : > { %3511 = vrcp.f32 %v2373_v19 }
 0x724   : > { %v2379_v37 = vpop.xlane.xlu0 %2378 }
 0x725   : > { %3513 = vrcp.f32 %v2379_v37 }
 0x728   : > { %v2376_v51 = vpop.xlane.xlu1 %2375 }
 0x729   : > { %3515 = vrcp.f32 %v2376_v51 }
 0x72b   : > { %v3512_v49 = vpop.eup %3511 }
 0x72c   : > { %v2399_v40 = vmul.f32 %v3512_v49, %v2373_v19 }
 0x72e   : > { %v2407_v25 = vsub.f32 2.0, %v2399_v40 }
 0x72f   : > { %v3514_v57 = vpop.eup %3513 }
 0x730   : > { %v2415_v20 = vmul.f32 %v3512_v49, %v2407_v25  ;;  %v2401_v60 = vmul.f32 %v3514_v57, %v2379_v37 }
 0x732   : > { %v2423_v23 = vmul.f32 %v5078_v12, %v2415_v20  ;;  %v2409_v52 = vsub.f32 2.0, %v2401_v60 }
 0x733   : > { %v3516_v59 = vpop.eup %3515 }
 0x734   : > { %v2417_v8 = vmul.f32 %v3514_v57, %v2409_v52  ;;  %v2400_v15 = vmul.f32 %v3516_v59, %v2376_v51  ;;  %v2382_v32 = vpop.xlane.xlu1 %2381  ;;  %3247 = vmatprep.mubr.msk.f32.mxu1 %vm642_vm1, %v2423_v23  ;;  %v3084_v23 = vld [vmem:[%s5254_s13] ss:$0 sm:$0xff] }
 0x735   : > { %3517 = vrcp.f32 %v2382_v32 }
 0x736   : > { %v2425_v33 = vmul.f32 %v5082_v47, %v2417_v8  ;;  %v2408_v41 = vsub.f32 2.0, %v2400_v15 }
 0x738   : > { %v2416_v16 = vmul.f32 %v3516_v59, %v2408_v41  ;;  %3254 = vmatprep.mubr.msk.f32.mxu0 %vm642_vm1, %v2425_v33 }
 0x73a   : > { %v2424_v56 = vmul.f32 %v5087_v13, %v2416_v16 }
 0x73c   : > { %3248 = vmatmul.mubr.msk.f32.vlgmr.msra.gmra.mrb[24].mxu1 %vm642_vm1, %v2424_v56  ;;  %v2385_v42 = vpop.xlane.xlu0 %2384 }
 0x73d   : > { %3519 = vrcp.f32 %v2385_v42 }
 0x73f   : > { %v3518_v28 = vpop.eup %3517 }
 0x740   : > { %v2402_v12 = vmul.f32 %v3518_v28, %v2382_v32  ;;  %v745_v17 = vpop.permute.xlu0 %744 }
 0x741   : > { %756 = vst.msk [vmem:[#allocation5 + $0x30] sm:$0xff] %vm642_vm1, %v745_v17 }
 0x742   : > { %v2410_v55 = vsub.f32 2.0, %v2402_v12 }
 0x743   : > { %v2388_v22 = vpop.xlane.xlu1 %2387 }
 0x744   : > { %v2418_v27 = vmul.f32 %v3518_v28, %v2410_v55  ;;  %3521 = vrcp.f32 %v2388_v22 }
 0x746   : > { %v2426_v47 = vmul.f32 %v5092_v35, %v2418_v27 }
 0x747   : > { %v3520_v3 = vpop.eup %3519  ;;  %v747_v1 = vpop.permute.xlu1 %746 }
 0x748   : > { %v2403_v31 = vmul.f32 %v3520_v3, %v2385_v42  ;;  %757 = vst.msk [vmem:[#allocation5 + $0x38] sm:$0xff] %vm642_vm1, %v747_v1  ;;  %3255 = vmatmul.mubr.msk.f32.vlgmr.msra.gmra.mrb[14].mxu0 %vm642_vm1, %v2426_v47  ;;  %v795_v30 = vld [vmem:[#allocation5 + $0x30] sm:$0xff] }
 0x749   : > { %3358 = vmatpush3.bf16.msra.mxu0 %v3355_v2 }
 0x74a   : > { %v2411_v13 = vsub.f32 2.0, %v2403_v31  ;;  %3360 = vmatprep.subr.bf16.mxu0 %v3359_v45 }
 0x74c   : > { %v2419_v38 = vmul.f32 %v3520_v3, %v2411_v13 }
 0x74d   : > { %3362 = vmatpush3.bf16.msra.mxu0 %v3359_v45 }
 0x74e   : > { %v3522_v4 = vpop.eup %3521  ;;  %v2427_v21 = vmul.f32 %v5097_v39, %v2419_v38 }
 0x74f   : > { %v2404_v0 = vmul.f32 %v3522_v4, %v2388_v22  ;;  %v796_v54 = vld [vmem:[#allocation5 + $0x38] sm:$0xff] }
 0x750   : > { %3261 = vmatprep.mubr.msk.f32.mxu1 %vm642_vm1, %v2427_v21  ;;  %v3351_v50 = vpack.c.bf16 %v796_v54, %v795_v30 }
 0x751   : > { %v2412_v5 = vsub.f32 2.0, %v2404_v0 }
 0x752   : > { %3352 = vmatprep.subr.bf16.mxu1 %v3351_v50 }
 0x753   : > { %v2420_v35 = vmul.f32 %v3522_v4, %v2412_v5  ;;  %3354 = vmatpush3.bf16.msra.mxu1 %v3351_v50 }
 0x755   : > { %v2428_v6 = vmul.f32 %v5103_v14, %v2420_v35  ;;  %v3363_v14 = vpack.c.bf16 %v2790_v62, %v2789_v24 }
 0x757   : > { %3262 = vmatmul.mubr.msk.f32.vlgmr.msra.gmra.mrb[26].mxu1 %vm642_vm1, %v2428_v6  ;;  %3364 = vmatprep.subr.bf16.mxu0 %v3363_v14 }
 0x758   : > { %3366 = vmatpush3.bf16.msra.mxu0 %v3363_v14 }
 0x759   : > { %3368 = vmatprep.subr.bf16.mxu0 %v3367_v58 }
 0x75c   : > { %3370 = vmatpush3.bf16.msra.mxu0 %v3367_v58 }
 0x7d5   : > { %v3242_v43 = vpop.f32.mrb[22].mxu1 }
 0x7d6   : > { %v2501_v46 = vpop.f32.mrb[23].mxu1 }
 0x80f   : > { %v3249_v26 = vpop.f32.mrb[24].mxu1 }
 0x810   : > { %2757 = vrot.lane.b32.xlu1 %v3249_v26, %s3752_s27  ;;  %v2582_v39 = vpop.f32.mrb[25].mxu1 }
 0x811   : > { %2755 = vrot.lane.b32.xlu0 %v2582_v39, %s3752_s27  ;;  %s3637_s27 = scalar_lea.vmem %s5139_s23, 256 }
 0x812   : > { %p3638_p13 = scmp.ne.s32.totalorder %s5139_s23, %s3637_s27 }
 0x814   : > { %p3639_p6 = pnand %p3638_p13, %p3972_p3 }
 0x816   : > { %p3640_p10 = pneg %p3639_p6 }
 0x81b   : > { %v3256_v63 = vpop.f32.mrb[14].mxu0 }
 0x81c   : > { %2765 = vrot.lane.b32.xlu1 %v3256_v63, %s3753_s19  ;;  %v2663_v34 = vpop.f32.mrb[15].mxu0 }
 0x81d   : > { %2763 = vrot.lane.b32.xlu0 %v2663_v34, %s3753_s19  ;;  %s3755_s19 = smov [#allocation14]  }
 0x82a   : > { %v3263_v61 = vpop.f32.mrb[26].mxu1 }
 0x82b   : > { %2773 = vrot.lane.b32.xlu1 %v3263_v61, %s3754_s22  ;;  %v2744_v53 = vpop.f32.mrb[27].mxu1 }
 0x82c   : > { %2771 = vrot.lane.b32.xlu0 %v2744_v53, %s3754_s22  ;;  %s3641_s22 = sshll.u32 %s3755_s19, 4  ;;  %s3642_s22 = int_to_ptr.vmem [resolvable:$false] %s3641_s22 }
 0x82d   : > { %s3643_s20 = scalar_lea.vmem %s3642_s22, 512  ;;  %p3644_p11 = scmp.lt.s32.totalorder %s5139_s23, %s3642_s22 }
 0x82e   : > { %p3645_p5 = scmp.lt.s32.totalorder %s3643_s20, %s3637_s27 }
 0x830   : > { %p3646_p9 = por %p3645_p5, %p3644_p11 }
 0x832   : > { %p3647_p0 = pnand %p3646_p9, %p3640_p10 }
 0x882   : > { %v2758_v29 = vpop.permute.xlu1 %2757 }
 0x883   : > { %v2756_v36 = vpop.permute.xlu0 %2755  ;;  %v2778_v49 = vsel %vm642_vm1, %v3242_v43, %v2758_v29 }
 0x884   : > { %v2777_v37 = vsel %vm642_vm1, %v2501_v46, %v2756_v36 }
 0x88e   : > { %v2766_v10 = vpop.permute.xlu1 %2765 }
 0x88f   : > { %v2764_v19 = vpop.permute.xlu0 %2763  ;;  %v2781_v57 = vsel %vm2779_vm6, %v2778_v49, %v2766_v10 }
 0x890   : > { %v2780_v40 = vsel %vm2779_vm6, %v2777_v37, %v2764_v19 }
 0x89d   : > { %v2774_v51 = vpop.permute.xlu1 %2773 }
 0x89e   : > { %v2772_v25 = vpop.permute.xlu0 %2771  ;;  %v2784_v60 = vsel %vm2782_vm7, %v2781_v57, %v2774_v51 }
 0x89f   : > { %v2783_v20 = vsel %vm2782_vm7, %v2780_v40, %v2772_v25 }
 0x8a0   : > { %3280 = vmatprep.mubr.msk.f32.mxu0 %vm443_vm0, %v2783_v20 }
 0x8a1   : > { %3281 = vmatmul.mubr.msk.f32.vlgmr.msra.gmra.mrb[16].mxu0 %vm443_vm0, %v2784_v60 }
 0x974   : > { %v3282_v52 = vpop.f32.mrb[16].mxu0 }
 0x975   : > { %v2879_v59 = vadd.f32 %v3282_v52, %v3084_v23  ;;  %v2873_v8 = vpop.f32.mrb[17].mxu0 }
 0x976   : > { %v2874_v15 = vadd.f32 %v3084_v23, %v2873_v8 }
 0x977   : > { %2883 = vst.msk [vmem:[%s435_s21 + $0x8] sm:$0xff] %vm443_vm0, %v2879_v59 }
 0x978   : > { %2882 = vst.msk [vmem:[%s435_s21] sm:$0xff] %vm443_vm0, %v2874_v15 }
 0x979   : > { %3650 = shalt.err (!%p3647_p0)
}
 0x97a   : > { %s3651_s29 = scalar_lea.hbm %s5144_s1, 256  ;;  %s3655_s21 = scalar_lea.hbm %s5255_s30, 512 }
 0x97b   : > { %p3652_p4 = scmp.ne.s32.totalorder %s5144_s1, %s3651_s29  ;;  %p3656_p12 = scmp.lt.u32.totalorder %s5144_s1, %s5255_s30 }
 0x97c   : > { %p3657_p1 = scmp.lt.u32.totalorder %s3655_s21, %s3651_s29  ;;  %p3659_p13 = scmp.lt.u32.totalorder %s3651_s29, %s5144_s1 }
 0x97d   : > { %p3653_p2 = pnand %p3652_p4, %p3972_p3 }
 0x97e   : > { %p3658_p7 = por %p3657_p1, %p3656_p12 }
 0x97f   : > { %p3654_p8 = pneg %p3653_p2 }
 0x980   : > { %p3660_p6 = por %p3659_p13, %p3658_p7 }
 0x982   : > { %p3661_p10 = pnand %p3660_p6, %p3654_p8 }
 0x984   : > { %3664 = shalt.err (!%p3661_p10)
}
 0x985   : > { %s3756_s9 = smov 128  }
 0x986   : > { %3385 = dma.vmem_to_hbm [thread:$0]  (%p3972_p3), %s5139_s23, 256, %s5144_s1, %s2885_s6, %s3756_s9, %s3756_s9, %s3751_s28  }
 0x987 PF: > { %s5256_s27 = sld [smem:[#allocation19_spill]]  ;;  %s5257_s19 = sld [smem:[#allocation21_spill]] }
 0x988   : > { %p5259_p5 = scmp.ge.s32.totalorder %s3727_s18, 2 }
 0x98d   : > { %s2915_s22 = sand.u32 1, %s5256_s27   ;;  %p5258_p11 = scmp.ne.s32.totalorder %s5257_s19, 0 }
 0x98e   : > { %s2916_s20 = scalar_lea.sflag [#allocation8], %s2915_s22 }
 0x98f   : > { %p3402_p9 = pnand %p5259_p5, %p5258_p11 }
 0x991   : > { %3702 = dma.done.wait (!%p3402_p9), %s2916_s20, 256  }
 0x992   : > { %3704 = vsyncadd (!%p3402_p9), %s2916_s20, 4294967040  ;;  %s28_s18 = sadd.s32 1, %s3727_s18   ;;  %s5260_s13 = smov %s3711_s14 }
 0x993   : > { %p25_p0 = scmp.ge.s32.totalorder %s28_s18, 4   ;;  %s5261_s14 = smov %s3715_s15 }
 0x994   : > { %s5262_s15 = smov %s3981_s26  ;;  %s5263_s16 = smov %s3723_s17 }
 0x995   : > { %s5264_s17 = smov %s5266_s24  ;;  %27 = sbr.rel (!%p25_p0) target bundleno = 13 (0xd), region = 123 }
 0x99c   :  { %2921 = vsyncpa [#allocation7], 1 }
 0x99d   :  { %2923 = vsyncpa [#allocation7 + $0x1], 1 }
 0x99e   :  { %2924 = vsyncpa [#allocation10], 1 }
 0x99f   :  { %2925 = vsyncpa [#allocation13], 1 }
 0x9a0   :  { %2926 = vsyncpa [#allocation8], 1 }
 0x9a1   :  { %2928 = vsyncpa [#allocation8 + $0x1], 1 }

// kernel: tpu_custom_call.1
= control target key start
LH: loop header
LB: loop body
LE: loop exit
PB: predicated region body
PF: predicated region fallthrough
CT: control target
= control target key end

     0   :  { %s5196_s0 = inlined_call_operand.hbm [shape: f32[2,16,64], index: 0, kind: input, shape index: {}]   ;;  %s5197_s1 = inlined_call_operand.hbm [shape: f32[4,16,16], index: 1, kind: input, shape index: {}]   ;;  %s5198_s2 = inlined_call_operand.vmem [shape: f32[1,64], index: 2, kind: input, shape index: {}]   ;;  %s5199_s3 = inlined_call_operand.vmem [shape: f32[1,64], index: 3, kind: input, shape index: {}]   ;;  %s5200_s4 = inlined_call_operand.hbm [shape: f32[64,192], index: 4, kind: input, shape index: {}]   ;;  %s5201_s5 = inlined_call_operand.vmem [shape: f32[1,192], index: 5, kind: input, shape index: {}]   ;;  %s5202_s6 = inlined_call_operand.vmem [shape: f32[1,64], index: 6, kind: input, shape index: {}]   ;;  %s5203_s7 = inlined_call_operand.vmem [shape: f32[1,64], index: 7, kind: input, shape index: {}]   ;;  %s5204_s8 = inlined_call_operand.hbm [shape: f32[64,64], index: 8, kind: input, shape index: {}]   ;;  %s5205_s9 = inlined_call_operand.vmem [shape: f32[1,64], index: 9, kind: input, shape index: {}]   ;;  %s5206_s10 = inlined_call_operand.hbm [shape: f32[2,16,64], index: 10, kind: output, shape index: {}]  }
   0x1   :  { %5218 = sst [smem:[#allocation22_spill]] %s5197_s1 }
   0x2   :  { %5219 = sst [smem:[#allocation23_spill]] %s5202_s6 }
   0x3   :  { %5220 = sst [smem:[#allocation24_spill]] %s5205_s9 }
   0x4   :  { %5221 = sst [smem:[#allocation25_spill]] %s5206_s10 }
   0x5   :  { %15 = vsyncpa [#allocation7], 0 }
   0x6   :  { %17 = vsyncpa [#allocation7 + $0x1], 0 }
   0x7   :  { %18 = vsyncpa [#allocation10], 0 }
   0x8   :  { %19 = vsyncpa [#allocation13], 0 }
   0x9   :  { %20 = vsyncpa [#allocation8], 0 }
   0xa   :  { %22 = vsyncpa [#allocation8 + $0x1], 0  ;;  %s3812_s13 = smov 0   ;;  %s3814_s14 = smov 0  }
   0xb   :  { %s3816_s15 = smov 0   ;;  %s3818_s16 = smov 0  }
   0xc   :  { %s3820_s17 = smov 0   ;;  %s3822_s18 = smov 0  }
   0xd LB: > { %5222 = sst [smem:[#allocation19_spill]] %s3707_s13  ;;  %s3017_s19 = sadd.s32 4294967295, %s3727_s18   ;;  %s3727_s18 = sphi %s3822_s18, %s28_s18   ;;  %s3723_s17 = sphi %s3820_s17, %s5264_s17   ;;  %s3719_s16 = sphi %s3818_s16, %s5263_s16   ;;  %s3715_s15 = sphi %s3816_s15, %s5262_s15   ;;  %s3711_s14 = sphi %s3814_s14, %s5261_s14   ;;  %s3707_s13 = sphi %s3812_s13, %s5260_s13  }
   0xe   : > { %5223 = sst [smem:[#allocation20_spill]] %s3719_s16  ;;  %s3018_s20 = sadd.s32 4294967294, %s3727_s18  }
   0xf   : > { %p60_p0 = scmp.ne.s32.totalorder %s3711_s14, %s3707_s13  ;;  %p3846_p1 = scmp.eq.s32.totalorder %s3017_s19, 0 }
  0x10   : > { %p3850_p2 = scmp.eq.s32.totalorder %s3017_s19, 1  ;;  %p281_p3 = scmp.eq.s32.totalorder %s3018_s20, 1 }
  0x11   : > { %s5224_s21 = scalar_select %p3846_p1, 1, 0 }
  0x12   : > { %s5225_s22 = scalar_select %p3850_p2, 1, 0 }
  0x13   : > { %p3856_p4 = por %p3846_p1, %p60_p0  ;;  %p3019_p5 = scmp.ge.s32.totalorder %s3727_s18, 1 }
  0x14   : > { %p3861_p6 = por %p281_p3, %p60_p0  ;;  %p288_p7 = scmp.lt.s32.totalorder %s3727_s18, 3 }
  0x15   : > { %s5226_s23 = scalar_select %p3856_p4, 1, 0 }
  0x16   : > { %s5227_s24 = scalar_select %p3861_p6, 1, 0 }
  0x17   : > { %p3866_p8 = pnand %p3019_p5, %p288_p7  ;;  %s3729_s26 = smov [#allocation9]  }
  0x18   : > { %5228 = sst [smem:[#allocation21_spill]] %s5227_s24  ;;  %s300_s27 = sshll.u32 %s3729_s26, 4  ;;  %s3870_s27 = int_to_ptr.vmem [resolvable:$true] %s300_s27 }
  0x19   : > { %s5229_s25 = scalar_select %p3866_p8, 1, 0 }
  0x1a   : > { %p3387_p9 = pneg %p3866_p8  ;;  %s3730_s29 = smov [#allocation11]  }
  0x1b   : > { %s319_s30 = sshll.u32 %s3730_s29, 4  ;;  %s5231_s1 = sld [smem:[#allocation22_spill]]  ;;  %s3881_s30 = int_to_ptr.vmem [resolvable:$true] %s319_s30 }
  0x1c   : > { %p3877_p11 = pnand %p3387_p9, %p3846_p1 }
  0x1e   : > { %p3891_p13 = pneg %p3877_p11 }
  0x21   : > { %s3523_s19 = scalar_lea.hbm %s5231_s1, 1024 }
  0x22   : > { %p3524_p12 = scmp.ne.s32.totalorder %s5231_s1, %s3523_s19  ;;  %p3530_p5 = scmp.lt.u32.totalorder %s3523_s19, %s5231_s1 }
  0x24   : > { %p3526_p0 = pnand %p3891_p13, %p3524_p12 }
  0x26   : > { %p3527_p3 = pneg %p3526_p0 }
  0x28   : > { %p3532_p7 = pnand %p3530_p5, %p3527_p3 }
  0x2a   : > { %3535 = shalt.err (!%p3532_p7)
}
  0x2b   : > { %s3536_s11 = scalar_lea.vmem %s3870_s27, 1024  ;;  %p3544_p1 = scmp.lt.s32.totalorder %s3870_s27, %s3870_s27 }
  0x2c   : > { %p3537_p9 = scmp.ne.s32.totalorder %s3870_s27, %s3536_s11  ;;  %p3545_p4 = scmp.lt.s32.totalorder %s3536_s11, %s3536_s11 }
  0x2e   : > { %p3539_p10 = pnand %p3537_p9, %p3891_p13  ;;  %p3546_p12 = por %p3545_p4, %p3544_p1 }
  0x30   : > { %p3540_p6 = pneg %p3539_p10 }
  0x32   : > { %p3547_p0 = pnand %p3546_p12, %p3540_p6 }
  0x34   : > { %3550 = shalt.err (!%p3547_p0)
}
  0x35   : > { %s5213_s12 = smov 128   ;;  %s5215_s13 = smov 8  }
  0x36   : > { %3390 = dma.hbm_to_vmem [thread:$0]  (!%p3877_p11), %s5231_s1, 1024, %s3870_s27, [#allocation10], %s5213_s12, %s5213_s12, %s5215_s13  }
  0x37   : > { %s3551_s11 = scalar_lea.hbm %s5200_s4, 2048 }
  0x38   : > { %p3552_p1 = scmp.ne.s32.totalorder %s5200_s4, %s3551_s11  ;;  %p3558_p10 = scmp.lt.u32.totalorder %s3551_s11, %s5200_s4 }
  0x3a   : > { %p3554_p4 = pnand %p3552_p1, %p3891_p13 }
  0x3c   : > { %p3555_p6 = pneg %p3554_p4 }
  0x3e   : > { %p3560_p3 = pnand %p3558_p10, %p3555_p6 }
  0x40   : > { %3563 = shalt.err (!%p3560_p3)
}
  0x41   : > { %s3564_s27 = scalar_lea.vmem %s3881_s30, 2048  ;;  %p3572_p12 = scmp.lt.s32.totalorder %s3881_s30, %s3881_s30 }
  0x42   : > { %p3565_p5 = scmp.ne.s32.totalorder %s3881_s30, %s3564_s27  ;;  %p3573_p0 = scmp.lt.s32.totalorder %s3564_s27, %s3564_s27 }
  0x44   : > { %p3567_p7 = pnand %p3565_p5, %p3891_p13  ;;  %p3574_p1 = por %p3573_p0, %p3572_p12 }
  0x46   : > { %p3568_p9 = pneg %p3567_p7 }
  0x48   : > { %p3575_p4 = pnand %p3574_p1, %p3568_p9 }
  0x4a   : > { %3578 = shalt.err (!%p3575_p4)
}
  0x4b   : > { %s3733_s9 = smov 256   ;;  %s3734_s6 = smov 16  }
  0x4c   : > { %3393 = dma.hbm_to_vmem [thread:$0]  (!%p3877_p11), %s5200_s4, 2048, %s3881_s30, [#allocation10], %s3733_s9, %s3733_s9, %s3734_s6  }
  0x4d   : > { %s3735_s19 = smov [#allocation12]   ;;  %s3579_s11 = scalar_lea.hbm %s5204_s8, 1024 }
  0x4e   : > { %s341_s20 = sshll.u32 %s3735_s19, 4  ;;  %p3580_p6 = scmp.ne.s32.totalorder %s5204_s8, %s3579_s11  ;;  %s342_s20 = int_to_ptr.vmem [resolvable:$true] %s341_s20 }
  0x4f   : > { %p3586_p5 = scmp.lt.u32.totalorder %s3579_s11, %s5204_s8 }
  0x50   : > { %p3582_p10 = pnand %p3580_p6, %p3891_p13 }
  0x52   : > { %p3583_p3 = pneg %p3582_p10 }
  0x54   : > { %p3588_p7 = pnand %p3586_p5, %p3583_p3 }
  0x56   : > { %3591 = shalt.err (!%p3588_p7)
}
  0x57   : > { %s3592_s30 = scalar_lea.vmem %s342_s20, 1024  ;;  %p3600_p1 = scmp.lt.s32.totalorder %s342_s20, %s342_s20 }
  0x58   : > { %p3593_p9 = scmp.ne.s32.totalorder %s342_s20, %s3592_s30  ;;  %p3601_p4 = scmp.lt.s32.totalorder %s3592_s30, %s3592_s30 }
  0x5a   : > { %p3595_p12 = pnand %p3593_p9, %p3891_p13  ;;  %p3602_p8 = por %p3601_p4, %p3600_p1 }
  0x5c   : > { %p3596_p0 = pneg %p3595_p12 }
  0x5e   : > { %p3603_p2 = pnand %p3602_p8, %p3596_p0 }
  0x60   : > { %3606 = shalt.err (!%p3603_p2)
}
  0x61   : > { %s5233_s12 = smov 8   ;;  %s5234_s9 = smov 128  }
  0x62   : > { %3396 = dma.hbm_to_vmem [thread:$0]  (!%p3877_p11), %s5204_s8, 1024, %s342_s20, [#allocation13], %s5234_s9, %s5234_s9, %s5233_s12  }
  0x63   : > { %s40_s24 = sadd.s32 1, %s3723_s17  ;;  %s47_s28 = sadd.s32 1, %s3715_s15 }
  0x64   : > { %p42_p2 = scmp.ge.s32.totalorder %s40_s24, 2  ;;  %p54_p8 = scmp.ne.s32.totalorder %s3715_s15, %s3711_s14 }
  0x65   : > { %p55_p13 = scmp.eq.s32.totalorder %s3727_s18, 0  ;;  %p5236_p10 = scmp.ne.s32.totalorder %s5225_s22, 0 }
  0x66   : > { %s5266_s24 = smov (%p42_p2, %s40_s24), 0  ;;  %p3408_p11 = scmp.lt.s32.totalorder %s3727_s18, 2 }
  0x67   : > { %p3966_p6 = por %p55_p13, %p54_p8  ;;  %p3972_p3 = por %p5236_p10, %p54_p8 }
  0x68   : > { %s44_s16 = ssub.s32 %s3723_s17, %s5266_s24  ;;  %s358_s19 = sand.u32 1, %s3715_s15  }
  0x69   : > { %p45_p5 = scmp.eq.s32.totalorder %s44_s16, 0  ;;  %s3024_s20 = sshll.u32 %s358_s19, 4 }
  0x6a   : > { %s3092_s29 = sshll.u32 %s3723_s17, 8  ;;  %s362_s22 = scalar_lea.vmem [#allocation6], %s3024_s20 }
  0x6b   : > { %s3981_s26 = scalar_select %p45_p5, %s3715_s15, %s47_s28  }
  0x6c   : > { %s3987_s30 = scalar_lea.hbm %s5196_s0, %s3092_s29  ;;  %s369_s1 = sshll.u32 %s362_s22, 4  ;;  %s3989_s1 = int_to_ptr.vmem [resolvable:$true] %s369_s1 }
  0x6d   : > { %p3993_p7 = pnand %p3408_p11, %p3966_p6  ;;  %s3997_s28 = scalar_lea.sflag [#allocation7], %s358_s19 }
  0x6e   : > { %s3607_s16 = scalar_lea.hbm %s3987_s30, 256  ;;  %s3612_s6 = scalar_lea.hbm %s5196_s0, 512 }
  0x6f   : > { %p3608_p9 = scmp.ne.s32.totalorder %s3987_s30, %s3607_s16  ;;  %p3609_p12 = pneg %p3993_p7 }
  0x70   : > { %p3613_p4 = scmp.lt.u32.totalorder %s3987_s30, %s5196_s0  ;;  %p3614_p2 = scmp.lt.u32.totalorder %s3612_s6, %s3607_s16 }
  0x71   : > { %p3610_p0 = pnand %p3609_p12, %p3608_p9  ;;  %p3616_p13 = scmp.lt.u32.totalorder %s3607_s16, %s3987_s30 }
  0x72   : > { %p3615_p8 = por %p3614_p2, %p3613_p4 }
  0x73   : > { %p3611_p1 = pneg %p3610_p0 }
  0x74   : > { %p3617_p6 = por %p3616_p13, %p3615_p8 }
  0x76   : > { %p3618_p10 = pnand %p3617_p6, %p3611_p1 }
  0x78   : > { %3621 = shalt.err (!%p3618_p10)
}
  0x79   : > { %s3622_s19 = scalar_lea.vmem %s3989_s1, 256  ;;  %s3736_s22 = smov [#allocation6]  }
  0x7a   : > { %p3623_p11 = scmp.ne.s32.totalorder %s3989_s1, %s3622_s19  ;;  %s3627_s20 = sshll.u32 %s3736_s22, 4  ;;  %s3628_s20 = int_to_ptr.vmem [resolvable:$false] %s3627_s20 }
  0x7b   : > { %s3629_s29 = scalar_lea.vmem %s3628_s20, 512  ;;  %p3630_p0 = scmp.lt.s32.totalorder %s3989_s1, %s3628_s20 }
  0x7c   : > { %p3625_p5 = pnand %p3623_p11, %p3609_p12  ;;  %p3631_p4 = scmp.lt.s32.totalorder %s3629_s29, %s3622_s19 }
  0x7e   : > { %p3626_p9 = pneg %p3625_p5  ;;  %p3632_p2 = por %p3631_p4, %p3630_p0 }
  0x80   : > { %p3633_p8 = pnand %p3632_p2, %p3626_p9 }
  0x82   : > { %3636 = shalt.err (!%p3633_p8)
}
  0x83   : > { %3400 = dma.hbm_to_vmem [thread:$0]  (!%p3993_p7), %s3987_s30, 256, %s3989_s1, %s3997_s28, %s5234_s9, %s5234_s9, %s5233_s12  }
  0x84   : > { %p5239_p12 = scmp.ne.s32.totalorder %s5229_s25, 0 }
  0x85   : > { %s4031_s16 = sand.u32 (!%p5239_p12), 1, %s3711_s14   ;;  %p5240_p1 = scmp.ne.s32.totalorder (!%p5239_p12), %s5226_s23, 0 }
  0x86   : > { %381 = sbr.rel (%p5239_p12) target bundleno = 2439 (0x987), region = 60  ;;  %s3028_s6 = sshll.u32 (!%p5239_p12), %s4031_s16, 4 }
  0x87   : > { %s384_s11 = scalar_lea.sflag (!%p5239_p12), [#allocation7], %s4031_s16  ;;  %s387_s13 = scalar_lea.vmem (!%p5239_p12), [#allocation6], %s3028_s6 }
  0x8d   : > { %3690 = dma.done.wait (%p5240_p1), %s384_s11, 256  }
  0x8e   : > { %3692 = vsyncadd (%p5240_p1), %s384_s11, 4294967040  ;;  %p5241_p7 = scmp.ne.s32.totalorder %s5224_s21, 0 }
  0x90   : > { %3694 = dma.done.wait (%p5241_p7), [#allocation10], 3072  }
  0x91   : > { %3696 = vsyncadd (%p5241_p7), [#allocation10], 4294964224 }
  0x92   : > { %3698 = dma.done.wait (%p5241_p7), [#allocation13], 1024  }
  0x93   : > { %3700 = vsyncadd (%p5241_p7), [#allocation13], 4294966272  ;;  %vm443_vm0 = vcmask 523264   ;;  %v441_v0 = vld [vmem:[%s387_s13] sm:$0xff]  ;;  %v442_v1 = vld [vmem:[%s387_s13 + $0x8] sm:$0xff]  ;;  %v3737_v33 = vmov 0.0   ;;  %v507_v60 = vlaneseq }
  0x94   : > { %v444_v2 = vsel %vm443_vm0, %v441_v0, 0.0  ;;  %v447_v3 = vsel %vm443_vm0, %v442_v1, 0.0  ;;  %v490_v14 = vld [vmem:[#allocation11 + $0x8] sm:$0xff]  ;;  %v492_v15 = vld [vmem:[#allocation11 + $0x18] sm:$0xff]  ;;  %v489_v17 = vld [vmem:[#allocation11] sm:$0xff]  ;;  %587 = vmatprep.mubr.f32.mxu0 %v3737_v33  ;;  %vm642_vm1 = vcmask 130048  }
  0x95   : > { %445 = vadd.xlane.f32.xlu0 %v444_v2  ;;  %v3283_v16 = vpack.c.bf16 %v492_v15, %v490_v14  ;;  %v491_v18 = vld [vmem:[#allocation11 + $0x10] sm:$0xff]  ;;  %v494_v20 = vld [vmem:[#allocation11 + $0x28] sm:$0xff]  ;;  %v496_v21 = vld [vmem:[#allocation11 + $0x38] sm:$0xff]  ;;  %v3738_v58 = vmov 0.0|0.0   ;;  %vm3739_vm3 = vmmov 0   ;;  %vm673_vm4 = vcmask 122880  }
  0x96   : > { %v3285_v19 = vpack.c.bf16 %v491_v18, %v489_v17  ;;  %v3287_v22 = vpack.c.bf16 %v496_v21, %v494_v20  ;;  %v493_v23 = vld [vmem:[#allocation11 + $0x20] sm:$0xff]  ;;  %v495_v24 = vld [vmem:[#allocation11 + $0x30] sm:$0xff]  ;;  %v498_v26 = vld [vmem:[#allocation11 + $0x48] sm:$0xff]  ;;  %3299 = vmatprep.subr.bf16.mxu1 %v3738_v58  ;;  %3160 = vmatprep.mubr.msk.f32.mxu1 %vm3739_vm3, %v3737_v33  ;;  %674 = vst.msk [vmem:[#allocation3 + $0x10] sm:$0x1] %vm673_vm4, %v3737_v33  ;;  %v4083_v61 = vshrl.u32 %v507_v60, 7 }
  0x97   : > { %3284 = vmatprep.subr.bf16.mxu0 %v3283_v16  ;;  %v3289_v25 = vpack.c.bf16 %v495_v24, %v493_v23  ;;  %v500_v27 = vld [vmem:[#allocation11 + $0x58] sm:$0xff]  ;;  %v497_v28 = vld [vmem:[#allocation11 + $0x40] sm:$0xff]  ;;  %v499_v30 = vld [vmem:[#allocation11 + $0x50] sm:$0xff]  ;;  %677 = vst.msk [vmem:[#allocation3 + $0x28] sm:$0x1] %vm673_vm4, %v3737_v33  ;;  %s5244_s22 = sld [smem:[#allocation23_spill]] }
  0x98   : > { %3286 = vmatpush1.bf16.msra.mxu0 %v3285_v19  ;;  %v3291_v29 = vpack.c.bf16 %v500_v27, %v498_v26  ;;  %v502_v31 = vld [vmem:[#allocation11 + $0x68] sm:$0xff]  ;;  %v504_v32 = vld [vmem:[#allocation11 + $0x78] sm:$0xff]  ;;  %v3293_v34 = vpack.c.bf16 %v499_v30, %v497_v28  ;;  %v501_v36 = vld [vmem:[#allocation11 + $0x60] sm:$0xff]  ;;  %680 = vst.msk [vmem:[#allocation3 + $0x40] sm:$0x1] %vm673_vm4, %v3737_v33  ;;  %v509_v62 = vsub.s32 0, %v4083_v61 }
  0x99   : > { %448 = vadd.xlane.f32.xlu0 %v447_v3  ;;  %3288 = vmatprep.subr.bf16.mxu0 %v3287_v22  ;;  %v3295_v35 = vpack.c.bf16 %v504_v32, %v502_v31  ;;  %v503_v37 = vld [vmem:[#allocation11 + $0x70] sm:$0xff]  ;;  %v3033_v46 = vld [vmem:[%s5198_s2] ss:$0 sm:$0xff]  ;;  %v798_v56 = vld [vmem:[#allocation9 + $0x8] sm:$0xff]  ;;  %683 = vst.msk [vmem:[#allocation3 + $0x58] sm:$0x1] %vm673_vm4, %v3737_v33 }
  0x9a   : > { %v3297_v38 = vpack.c.bf16 %v503_v37, %v501_v36  ;;  %v3034_v48 = vld [vmem:[%s5199_s3] ss:$0 sm:$0xff]  ;;  %vm4066_vm2 = vmpackc.low %vm642_vm1, %vm642_vm1  ;;  %s3740_s20 = smov 112   ;;  %v799_v24 = vld [vmem:[#allocation9 + $0x10] sm:$0xff]  ;;  %s3741_s29 = smov 96   ;;  %vm1628_vm5 = vcmask 1046528  }
  0x9b   : > { %v797_v55 = vld [vmem:[#allocation9] sm:$0xff]  ;;  %s3742_s11 = smov 80   ;;  %s3743_s13 = smov 64   ;;  %v803_v31 = vld [vmem:[#allocation9 + $0x30] sm:$0xff]  ;;  %v804_v32 = vld [vmem:[#allocation9 + $0x38] sm:$0xff]  ;;  %vm1280_vm6 = vcmask 121856  }
  0x9c   : > { %3290 = vmatpush1.bf16.msra.mxu0 %v3289_v25  ;;  %v3300_v57 = vpack.c.bf16 %v798_v56, %v797_v55  ;;  %v505_v63 = vld [vmem:[%s5201_s5] sm:$0x3]  ;;  %v800_v25 = vld [vmem:[#allocation9 + $0x18] sm:$0xff]  ;;  %v3312_v36 = vpack.c.bf16 %v804_v32, %v803_v31  ;;  %s3744_s21 = smov 127   ;;  %s3745_s23 = smov 15  }
  0x9d   : > { %3292 = vmatprep.subr.bf16.mxu0 %v3291_v29  ;;  %v3304_v26 = vpack.c.bf16 %v800_v25, %v799_v24  ;;  %v771_v29 = vld [vmem:[#allocation3 + $0x10] sm:$0x1]  ;;  %s3746_s25 = smov 14   ;;  %s3747_s12 = smov 126  }
  0x9e   : > { %3302 = vmatpush3.bf16.xpose.msk.msra.mxu1 %vm4066_vm2, %v3300_v57  ;;  %s3748_s9 = smov 12   ;;  %s3749_s30 = smov 124  }
  0x9f   : > { %3303 = vmatprep.subr.bf16.mxu1 %v3738_v58  ;;  %s3750_s1 = smov 120   ;;  %s3751_s28 = smov 8  }
  0xa0   : > { %3294 = vmatpush1.bf16.msra.mxu0 %v3293_v34  ;;  %v780_v56 = vld [vmem:[#allocation3 + $0x58] sm:$0x1]  ;;  %s3752_s27 = smov 16   ;;  %s3753_s19 = smov 32  }
  0xa1   : > { %3296 = vmatprep.subr.bf16.mxu0 %v3295_v35 }
  0xa4   : > { %3298 = vmatpush1.bf16.msra.mxu0 %v3297_v38 }
  0xa5   : > { %3307 = vmatprep.subr.bf16.mxu0 %v3738_v58 }
 0x122   : > { %v446_v4 = vpop.xlane.xlu0 %445 }
 0x123   : > { %v451_v5 = vmul.f32 0.015625, %v446_v4  ;;  %v3038_v4 = vld [vmem:[%s5203_s7] ss:$0 sm:$0xff] }
 0x125   : > { %v453_v6 = vsub.f32 %v441_v0, %v451_v5  ;;  %v513_v0 = vsub.s32 1, %v4083_v61  ;;  %v3037_v5 = vld [vmem:[%s5244_s22] ss:$0 sm:$0xff]  ;;  %s3754_s22 = smov 48  }
 0x126   : > { %v449_v7 = vpop.xlane.xlu0 %448 }
 0x127   : > { %v452_v8 = vmul.f32 0.015625, %v449_v7  ;;  %v455_v9 = vmul.f32 %v453_v6, %v453_v6  ;;  %v514_v2 = vrot.slane %v505_v63, %v513_v0 }
 0x129   : > { %v454_v10 = vsub.f32 %v442_v1, %v452_v8  ;;  %v457_v11 = vsel %vm443_vm0, %v455_v9, 0.0  ;;  %v510_v1 = vrot.slane %v505_v63, %v509_v62  ;;  %v801_v8 = vld [vmem:[#allocation9 + $0x20] sm:$0xff]  ;;  %v802_v9 = vld [vmem:[#allocation9 + $0x28] sm:$0xff] }
 0x12a   : > { %458 = vadd.xlane.f32.xlu1 %v457_v11  ;;  %v3308_v11 = vpack.c.bf16 %v802_v9, %v801_v8 }
 0x12b   : > { %v456_v12 = vmul.f32 %v454_v10, %v454_v10 }
 0x12d   : > { %v460_v13 = vsel %vm443_vm0, %v456_v12, 0.0 }
 0x12e   : > { %461 = vadd.xlane.f32.xlu1 %v460_v13 }
 0x1b7   : > { %v459_v39 = vpop.xlane.xlu1 %458 }
 0x1b8   : > { %v463_v40 = vmul.f32 0.015625, %v459_v39 }
 0x1ba   : > { %v465_v41 = vadd.f32 1e-05, %v463_v40 }
 0x1bb   : > { %v462_v42 = vpop.xlane.xlu1 %461 }
 0x1bc   : > { %3487 = vrsqrt.f32 %v465_v41  ;;  %v464_v43 = vmul.f32 0.015625, %v462_v42 }
 0x1be   : > { %v466_v44 = vadd.f32 1e-05, %v464_v43  ;;  %v774_v43 = vld [vmem:[#allocation3 + $0x28] sm:$0x1] }
 0x1c0   : > { %3489 = vrsqrt.f32 %v466_v44 }
 0x1c6   : > { %v3488_v45 = vpop.eup %3487 }
 0x1c7   : > { %v469_v47 = vmul.f32 %v3488_v45, %v453_v6 }
 0x1c9   : > { %v478_v49 = vmul.f32 %v3033_v46, %v469_v47 }
 0x1ca   : > { %v3490_v50 = vpop.eup %3489 }
 0x1cb   : > { %v487_v51 = vadd.f32 %v3034_v48, %v478_v49  ;;  %v470_v52 = vmul.f32 %v3490_v50, %v454_v10 }
 0x1cd   : > { %3035 = vmatmul.mubr.msk.f32.vlgmr.msra.gmra.mrb[0].mxu0 %vm443_vm0, %v487_v51  ;;  %v479_v53 = vmul.f32 %v3033_v46, %v470_v52  ;;  %v777_v51 = vld [vmem:[#allocation3 + $0x40] sm:$0x1] }
 0x1ce   : > { %593 = vmatprep.mubr.f32.mxu0 %v3737_v33  ;;  %3310 = vmatpush3.bf16.xpose.msk.msra.mxu0 %vm4066_vm2, %v3308_v11 }
 0x1cf   : > { %v488_v54 = vadd.f32 %v3034_v48, %v479_v53 }
 0x1d1   : > { %3036 = vmatmul.mubr.msk.f32.gmra.mrb[2].mxu0 %vm443_vm0, %v488_v54 }
 0x1d2   : > { %3186 = vmatprep.mubr.msk.f32.mxu0 %vm3739_vm3, %v3737_v33 }
 0x2a0   : > { %v589_v3 = vpop.f32.mrb[0].mxu0 }
 0x2a1   : > { %v590_v6 = vadd.f32 %v589_v3, %v510_v1  ;;  %v591_v7 = vpop.f32.mrb[1].mxu0 }
 0x2a2   : > { %v4096_v10 = vadd.f32 %v591_v7, %v514_v2 }
 0x2a3   : > { %v618_v12 = vadd.f32 %v3038_v4, %v590_v6  ;;  %v607_v13 = vadd.f32 %v3037_v5, %v590_v6 }
 0x2a4   : > { %750 = vst.msk [vmem:[#allocation5] sm:$0xff] %vm642_vm1, %v4096_v10  ;;  %v595_v14 = vpop.f32.mrb[2].mxu0 }
 0x2a5   : > { %v596_v15 = vadd.f32 %v595_v14, %v510_v1  ;;  %v597_v16 = vpop.f32.mrb[3].mxu0  ;;  %v620_v17 = vmul.f32 0.125, %v618_v12  ;;  %v609_v18 = vmul.f32 0.125, %v607_v13 }
 0x2a6   : > { %v4102_v19 = vadd.f32 %v597_v16, %v514_v2 }
 0x2a7   : > { %653 = vrot.lane.b32.xlu0 %v620_v17, %s3740_s20  ;;  %671 = vst.msk [vmem:[#allocation3] sm:$0xff] %vm642_vm1, %v620_v17  ;;  %v619_v20 = vadd.f32 %v3038_v4, %v596_v15  ;;  %643 = vst.msk [vmem:[#allocation2] sm:$0xff] %vm642_vm1, %v609_v18  ;;  %v608_v21 = vadd.f32 %v3037_v5, %v596_v15 }
 0x2a8   : > { %751 = vst.msk [vmem:[#allocation5 + $0x8] sm:$0xff] %vm642_vm1, %v4102_v19 }
 0x2a9   : > { %v621_v22 = vmul.f32 0.125, %v619_v20  ;;  %v610_v23 = vmul.f32 0.125, %v608_v21 }
 0x2ab   : > { %661 = vrot.lane.b32.xlu0 %v621_v22, %s3741_s29  ;;  %672 = vst.msk [vmem:[#allocation3 + $0x8] sm:$0xff] %vm642_vm1, %v621_v22  ;;  %655 = vrot.lane.b32.xlu1 %v621_v22, %s3740_s20  ;;  %644 = vst.msk [vmem:[#allocation2 + $0x8] sm:$0xff] %vm642_vm1, %v610_v23 }
 0x2ae   : > { %v769_v27 = vld [vmem:[#allocation3] sm:$0xff] }
 0x2af   : > { %3161 = vmatmul.mubr.msk.f32.vlgmr.msra.gmra.mrb[0].mxu1 %vm642_vm1, %v769_v27  ;;  %686 = vrot.lane.b32.xlu0 %v590_v6, %s3740_s20  ;;  %v790_v32 = vld [vmem:[#allocation5 + $0x8] sm:$0xff] }
 0x2b0   : > { %659 = vrot.lane.b32.xlu1 %v620_v17, %s3741_s29  ;;  %3163 = vmatprep.mubr.msk.f32.mxu1 %vm3739_vm3, %v3737_v33 }
 0x2b1   : > { %3306 = vmatpush3.bf16.xpose.msk.msra.mxu1 %vm4066_vm2, %v3304_v26 }
 0x2b2   : > { %v770_v28 = vld [vmem:[#allocation3 + $0x8] sm:$0xff]  ;;  %3311 = vmatprep.subr.bf16.mxu1 %v3738_v58  ;;  %v760_v58 = vld [vmem:[#allocation2] sm:$0xff] }
 0x2b3   : > { %690 = vrot.lane.b32.xlu0 %v590_v6, %s3741_s29  ;;  %3164 = vmatmul.mubr.msk.f32.gmra.mrb[2].mxu1 %vm642_vm1, %v770_v28 }
 0x2b4   : > { %665 = vrot.lane.b32.xlu1 %v620_v17, %s3742_s11  ;;  %3166 = vmatprep.mubr.msk.f32.mxu1 %vm3739_vm3, %v3737_v33 }
 0x2b7   : > { %694 = vrot.lane.b32.xlu0 %v590_v6, %s3742_s11  ;;  %3167 = vmatmul.mubr.msk.f32.gmra.mrb[4].mxu1 %vm642_vm1, %v771_v29 }
 0x2b8   : > { %667 = vrot.lane.b32.xlu1 %v621_v22, %s3742_s11  ;;  %3173 = vmatprep.mubr.msk.f32.mxu1 %vm3739_vm3, %v3737_v33 }
 0x2bb   : > { %698 = vrot.lane.b32.xlu0 %v590_v6, %s3743_s13  ;;  %v761_v6 = vld [vmem:[#allocation2 + $0x8] sm:$0xff] }
 0x2bc   : > { %688 = vrot.lane.b32.xlu1 %v596_v15, %s3740_s20 }
 0x2bf   : > { %624 = vrot.lane.b32.xlu0 %v609_v18, %s3740_s20 }
 0x2c0   : > { %692 = vrot.lane.b32.xlu1 %v596_v15, %s3741_s29 }
 0x2c3   : > { %630 = vrot.lane.b32.xlu0 %v609_v18, %s3741_s29 }
 0x2c4   : > { %696 = vrot.lane.b32.xlu1 %v596_v15, %s3742_s11 }
 0x2c7   : > { %636 = vrot.lane.b32.xlu0 %v609_v18, %s3742_s11 }
 0x2c8   : > { %700 = vrot.lane.b32.xlu1 %v596_v15, %s3743_s13 }
 0x2cc   : > { %626 = vrot.lane.b32.xlu1 %v610_v23, %s3740_s20 }
 0x2d0   : > { %632 = vrot.lane.b32.xlu1 %v610_v23, %s3741_s29 }
 0x2d4   : > { %638 = vrot.lane.b32.xlu1 %v610_v23, %s3742_s11 }
 0x319   : > { %v654_v30 = vpop.permute.xlu0 %653 }
 0x31a   : > { %675 = vst.msk [vmem:[#allocation3 + $0x18] sm:$0xff] %vm642_vm1, %v654_v30 }
 0x31d   : > { %v656_v34 = vpop.permute.xlu1 %655  ;;  %v662_v35 = vpop.permute.xlu0 %661 }
 0x31e   : > { %676 = vst.msk [vmem:[#allocation3 + $0x20] sm:$0xff] %vm642_vm1, %v656_v34  ;;  %679 = vst.msk [vmem:[#allocation3 + $0x38] sm:$0xff] %vm642_vm1, %v662_v35  ;;  %v789_v35 = vld [vmem:[#allocation5] sm:$0xff] }
 0x321   : > { %v687_v37 = vpop.permute.xlu0 %686  ;;  %v772_v38 = vld [vmem:[#allocation3 + $0x18] sm:$0xff] }
 0x322   : > { %v660_v39 = vpop.permute.xlu1 %659  ;;  %3174 = vmatmul.mubr.msk.f32.vlgmr.msra.gmra.mrb[6].mxu1 %vm642_vm1, %v772_v38  ;;  %702 = vrot.lane.b32.xlu0 %v687_v37, %s3743_s13 }
 0x323   : > { %678 = vst.msk [vmem:[#allocation3 + $0x30] sm:$0xff] %vm642_vm1, %v660_v39  ;;  %3176 = vmatprep.mubr.msk.f32.mxu1 %vm3739_vm3, %v3737_v33  ;;  %3314 = vmatpush3.bf16.xpose.msk.msra.mxu1 %vm4066_vm2, %v3312_v36  ;;  %v3339_v36 = vpack.c.bf16 %v790_v32, %v789_v35 }
 0x325   : > { %v691_v40 = vpop.permute.xlu0 %690  ;;  %v773_v41 = vld [vmem:[#allocation3 + $0x20] sm:$0xff]  ;;  %v776_v49 = vld [vmem:[#allocation3 + $0x38] sm:$0xff] }
 0x326   : > { %v666_v42 = vpop.permute.xlu1 %665  ;;  %3177 = vmatmul.mubr.msk.f32.gmra.mrb[8].mxu1 %vm642_vm1, %v773_v41  ;;  %706 = vrot.lane.b32.xlu0 %v691_v40, %s3743_s13 }
 0x327   : > { %681 = vst.msk [vmem:[#allocation3 + $0x48] sm:$0xff] %vm642_vm1, %v666_v42  ;;  %3179 = vmatprep.mubr.msk.f32.mxu1 %vm3739_vm3, %v3737_v33 }
 0x329   : > { %v695_v44 = vpop.permute.xlu0 %694 }
 0x32a   : > { %v668_v45 = vpop.permute.xlu1 %667  ;;  %3180 = vmatmul.mubr.msk.f32.gmra.mrb[10].mxu1 %vm642_vm1, %v774_v43  ;;  %v775_v46 = vld [vmem:[#allocation3 + $0x30] sm:$0xff]  ;;  %710 = vrot.lane.b32.xlu0 %v695_v44, %s3743_s13  ;;  %v1194_v44 = vsub.s32 15, %v4083_v61 }
 0x32b   : > { %682 = vst.msk [vmem:[#allocation3 + $0x50] sm:$0xff] %vm642_vm1, %v668_v45  ;;  %3187 = vmatmul.mubr.msk.f32.vlgmr.msra.gmra.mrb[4].mxu0 %vm642_vm1, %v775_v46  ;;  %3199 = vmatprep.mubr.msk.f32.mxu1 %vm3739_vm3, %v3737_v33 }
 0x32c   : > { %3189 = vmatprep.mubr.msk.f32.mxu0 %vm3739_vm3, %v3737_v33  ;;  %v4240_v45 = vand.u32 15, %v1194_v44 }
 0x32d   : > { %v699_v47 = vpop.permute.xlu0 %698 }
 0x32e   : > { %v689_v48 = vpop.permute.xlu1 %688  ;;  %722 = vst.msk [vmem:[#allocation4] sm:$0xff] %vm642_vm1, %v699_v47  ;;  %v778_v50 = vld [vmem:[#allocation3 + $0x48] sm:$0xff] }
 0x32f   : > { %704 = vrot.lane.b32.xlu1 %v689_v48, %s3743_s13  ;;  %3190 = vmatmul.mubr.msk.f32.gmra.mrb[6].mxu0 %vm642_vm1, %v776_v49  ;;  %v1220_v48 = vand.u32 1, %v4240_v45  ;;  %v4248_v49 = vadd.s32 8, %v4083_v61 }
 0x330   : > { %3200 = vmatmul.mubr.msk.f32.vlgmr.msra.gmra.mrb[12].mxu1 %vm642_vm1, %v778_v50  ;;  %3192 = vmatprep.mubr.msk.f32.mxu0 %vm3739_vm3, %v3737_v33 }
 0x331   : > { %3202 = vmatprep.mubr.msk.f32.mxu1 %vm3739_vm3, %v3737_v33  ;;  %v625_v52 = vpop.permute.xlu0 %624  ;;  %vm4252_vm7 = vcmp.eq.s32.totalorder %v1220_v48, 1 }
 0x332   : > { %v693_v53 = vpop.permute.xlu1 %692  ;;  %645 = vst.msk [vmem:[#allocation2 + $0x10] sm:$0xff] %vm642_vm1, %v625_v52  ;;  %v779_v54 = vld [vmem:[#allocation3 + $0x50] sm:$0xff] }
 0x333   : > { %708 = vrot.lane.b32.xlu1 %v693_v53, %s3743_s13  ;;  %3193 = vmatmul.mubr.msk.f32.gmra.mrb[8].mxu0 %vm642_vm1, %v777_v51 }
 0x334   : > { %3203 = vmatmul.mubr.msk.f32.gmra.mrb[14].mxu1 %vm642_vm1, %v779_v54 }
 0x335   : > { %3205 = vmatprep.mubr.msk.f32.mxu1 %vm3739_vm3, %v3737_v33  ;;  %v631_v55 = vpop.permute.xlu0 %630  ;;  %v781_v2 = vld [vmem:[#allocation4] sm:$0xff] }
 0x336   : > { %v697_v57 = vpop.permute.xlu1 %696  ;;  %647 = vst.msk [vmem:[#allocation2 + $0x20] sm:$0xff] %vm642_vm1, %v631_v55 }
 0x337   : > { %712 = vrot.lane.b32.xlu1 %v697_v57, %s3743_s13  ;;  %v1551_v57 = vsub.s32 14, %v4248_v49  ;;  %s5254_s13 = sld [smem:[#allocation24_spill]] }
 0x338   : > { %3206 = vmatmul.mubr.msk.f32.gmra.mrb[16].mxu1 %vm642_vm1, %v780_v56 }
 0x339   : > { %3212 = vmatprep.mubr.msk.f32.mxu1 %vm642_vm1, %v760_v58  ;;  %v637_v62 = vpop.permute.xlu0 %636  ;;  %v762_v63 = vld [vmem:[#allocation2 + $0x10] sm:$0xff]  ;;  %vm1559_vm8 = vcmp.lt.s32.totalorder %v1551_v57, 0 }
 0x33a   : > { %v701_v0 = vpop.permute.xlu1 %700  ;;  %649 = vst.msk [vmem:[#allocation2 + $0x30] sm:$0xff] %vm642_vm1, %v637_v62  ;;  %3219 = vmatprep.mubr.msk.f32.mxu0 %vm642_vm1, %v762_v63 }
 0x33b   : > { %723 = vst.msk [vmem:[#allocation4 + $0x8] sm:$0xff] %vm642_vm1, %v701_v0 }
 0x33d   : > { %v764_v7 = vld [vmem:[#allocation2 + $0x20] sm:$0xff] }
 0x33e   : > { %v627_v33 = vpop.permute.xlu1 %626 }
 0x33f   : > { %646 = vst.msk [vmem:[#allocation2 + $0x18] sm:$0xff] %vm642_vm1, %v627_v33 }
 0x341   : > { %v766_v41 = vld [vmem:[#allocation2 + $0x30] sm:$0xff] }
 0x342   : > { %v633_v1 = vpop.permute.xlu1 %632  ;;  %v782_v3 = vld [vmem:[#allocation4 + $0x8] sm:$0xff] }
 0x343   : > { %648 = vst.msk [vmem:[#allocation2 + $0x28] sm:$0xff] %vm642_vm1, %v633_v1  ;;  %v3315_v4 = vpack.c.bf16 %v782_v3, %v781_v2 }
 0x345   : > { %3317 = vmatprep.subr.msk.bf16.mxu1 %vm4066_vm2, %v3315_v4 }
 0x346   : > { %v639_v5 = vpop.permute.xlu1 %638  ;;  %3320 = vmatpush3.bf16.xpose.msk.msra.mxu1 %vm4066_vm2, %v3315_v4  ;;  %v763_v40 = vld [vmem:[#allocation2 + $0x18] sm:$0xff]  ;;  %v1560_v4 = vsub.s32 0, %v1551_v57 }
 0x347   : > { %650 = vst.msk [vmem:[#allocation2 + $0x38] sm:$0xff] %vm642_vm1, %v639_v5 }
 0x34a   : > { %v765_v42 = vld [vmem:[#allocation2 + $0x28] sm:$0xff] }
 0x34d   : > { %3213 = vmatmul.mubr.msk.f32.vlgmr.msra.gmra.mrb[18].mxu1 %vm642_vm1, %v761_v6 }
 0x34e   : > { %3226 = vmatprep.mubr.msk.f32.mxu1 %vm642_vm1, %v764_v7  ;;  %v767_v43 = vld [vmem:[#allocation2 + $0x38] sm:$0xff] }
 0x382   : > { %v4195_v8 = vpop.f32.mrb[0].mxu1 }
 0x383   : > { %v3162_v9 = vpop.f32.mrb[1].mxu1  ;;  %1232 = vrot.lane.b32.xlu0 %v4195_v8, %s3744_s21  ;;  %v1657_v12 = vrot.slane %v4195_v8, 1 }
 0x386   : > { %v4199_v11 = vpop.f32.mrb[2].mxu1 }
 0x387   : > { %v1658_v13 = vrot.slane %v4199_v11, 1  ;;  %v3165_v14 = vpop.f32.mrb[3].mxu1  ;;  %1234 = vrot.lane.b32.xlu1 %v4199_v11, %s3744_s21  ;;  %1256 = vrot.lane.b32.xlu0 %v4195_v8, %s3745_s23 }
 0x388   : > { %v3059_v14 = vmin.u32 %v1560_v4, %v1551_v57 }
 0x389   : > { %v4208_v15 = vsel %vm1628_vm5, %v1657_v12, %v1658_v13 }
 0x38a   : > { %v897_v16 = vpop.f32.mrb[4].mxu1 }
 0x38b   : > { %v1660_v17 = vrot.slane %v897_v16, 1  ;;  %1258 = vrot.lane.b32.xlu1 %v4199_v11, %s3745_s23  ;;  %1584 = vrot.lane.b32.xlu0 %v897_v16, %s3744_s21  ;;  %v3168_v18 = vpop.f32.mrb[5].mxu1 }
 0x38d   : > { %v4214_v20 = vsel %vm1628_vm5, %v1658_v13, %v1660_v17  ;;  %v1550_v13 = vsub.s32 14, %v4083_v61 }
 0x38f   : > { %1596 = vrot.lane.b32.xlu1 %v897_v16, %s3745_s23 }
 0x394   : > { %v703_v21 = vpop.permute.xlu0 %702 }
 0x395   : > { %724 = vst.msk [vmem:[#allocation4 + $0x10] sm:$0xff] %vm642_vm1, %v703_v21 }
 0x398   : > { %v707_v22 = vpop.permute.xlu0 %706 }
 0x399   : > { %726 = vst.msk [vmem:[#allocation4 + $0x20] sm:$0xff] %vm642_vm1, %v707_v22 }
 0x39c   : > { %v711_v23 = vpop.permute.xlu0 %710  ;;  %v783_v27 = vld [vmem:[#allocation4 + $0x10] sm:$0xff] }
 0x39d   : > { %728 = vst.msk [vmem:[#allocation4 + $0x30] sm:$0xff] %vm642_vm1, %v711_v23 }
 0x3a0   : > { %v785_v30 = vld [vmem:[#allocation4 + $0x20] sm:$0xff] }
 0x3a1   : > { %v705_v24 = vpop.permute.xlu1 %704 }
 0x3a2   : > { %725 = vst.msk [vmem:[#allocation4 + $0x18] sm:$0xff] %vm642_vm1, %v705_v24  ;;  %v4299_v24 = vand.u32 15, %v1550_v13 }
 0x3a4   : > { %v787_v37 = vld [vmem:[#allocation4 + $0x30] sm:$0xff] }
 0x3a5   : > { %v709_v25 = vpop.permute.xlu1 %708 }
 0x3a6   : > { %727 = vst.msk [vmem:[#allocation4 + $0x28] sm:$0xff] %vm642_vm1, %v709_v25 }
 0x3a9   : > { %v713_v26 = vpop.permute.xlu1 %712  ;;  %v784_v28 = vld [vmem:[#allocation4 + $0x18] sm:$0xff] }
 0x3aa   : > { %729 = vst.msk [vmem:[#allocation4 + $0x38] sm:$0xff] %vm642_vm1, %v713_v26  ;;  %v3321_v29 = vpack.c.bf16 %v784_v28, %v783_v27  ;;  %v1563_v26 = vand.u32 15, %v3059_v14 }
 0x3ac   : > { %3323 = vmatprep.subr.msk.bf16.mxu0 %vm4066_vm2, %v3321_v29 }
 0x3ad   : > { %3326 = vmatpush3.bf16.xpose.msk.msra.mxu0 %vm4066_vm2, %v3321_v29  ;;  %v786_v31 = vld [vmem:[#allocation4 + $0x28] sm:$0xff] }
 0x3ae   : > { %v3327_v34 = vpack.c.bf16 %v786_v31, %v785_v30 }
 0x3b0   : > { %3329 = vmatprep.subr.msk.bf16.mxu1 %vm4066_vm2, %v3327_v34 }
 0x3b1   : > { %3332 = vmatpush3.bf16.xpose.msk.msra.mxu1 %vm4066_vm2, %v3327_v34  ;;  %v788_v38 = vld [vmem:[#allocation4 + $0x38] sm:$0xff] }
 0x3b2   : > { %3340 = vmatprep.subr.bf16.mxu1 %v3339_v36  ;;  %v3333_v39 = vpack.c.bf16 %v788_v38, %v787_v37  ;;  %v1564_v37 = vsub.s32 0, %v1563_v26 }
 0x3b4   : > { %3220 = vmatmul.mubr.msk.f32.vlgmr.msra.gmra.mrb[10].mxu0 %vm642_vm1, %v763_v40  ;;  %3335 = vmatprep.subr.msk.bf16.mxu0 %vm4066_vm2, %v3333_v39  ;;  %v1565_v44 = vsel %vm1559_vm8, %v1564_v37, %v1563_v26 }
 0x3b5   : > { %3338 = vmatpush3.bf16.xpose.msk.msra.mxu0 %vm4066_vm2, %v3333_v39  ;;  %3233 = vmatprep.mubr.msk.f32.mxu0 %vm642_vm1, %v766_v41  ;;  %vm1567_vm10 = vcmp.ne.s32.totalorder %v1565_v44, 0  ;;  %vm1569_vm11 = vcmp.lt.s32.totalorder %v1565_v44, 0  ;;  %v1573_v48 = vadd.s32 16, %v1565_v44  ;;  %vm1363_vm2 = vcmask 113664  }
 0x3b6   : > { %vm1571_vm12 = vmand %vm1569_vm11, %vm1567_vm10  ;;  %vm1529_vm11 = vcmask 64512  }
 0x3b8   : > { %3227 = vmatmul.mubr.msk.f32.vlgmr.msra.gmra.mrb[20].mxu1 %vm642_vm1, %v765_v42 }
 0x3b9   : > { %3342 = vmatpush3.bf16.msra.mxu1 %v3339_v36  ;;  %v1576_v36 = vand.u32 1, %v4299_v24 }
 0x3bb   : > { %vm4320_vm9 = vcmp.eq.s32.totalorder %v1576_v36, 1 }
 0x3bc   : > { %3234 = vmatmul.mubr.msk.f32.vlgmr.msra.gmra.mrb[12].mxu0 %vm642_vm1, %v767_v43 }
 0x3f5   : > { %v4242_v46 = vpop.f32.mrb[6].mxu1  ;;  %v1233_v47 = vpop.permute.xlu0 %1232 }
 0x3f6   : > { %v3175_v59 = vpop.f32.mrb[7].mxu1  ;;  %1236 = vrot.lane.b32.xlu0 %v4242_v46, %s3744_s21  ;;  %v1662_v52 = vrot.slane %v4242_v46, 1 }
 0x3f9   : > { %v4250_v50 = vpop.f32.mrb[8].mxu1  ;;  %v1257_v54 = vpop.permute.xlu0 %1256 }
 0x3fa   : > { %v1663_v53 = vrot.slane %v4250_v50, 1  ;;  %v3178_v55 = vpop.f32.mrb[9].mxu1  ;;  %1260 = vrot.lane.b32.xlu0 %v4242_v46, %s3745_s23  ;;  %v1281_v56 = vsel %vm1280_vm6, %v1233_v47, %v1257_v54  ;;  %v1235_v2 = vpop.permute.xlu1 %1234 }
 0x3fb   : > { %v4265_v58 = vsel %vm4252_vm7, %v1281_v56, %v4195_v8  ;;  %v1629_v40 = vrot.slane %v1281_v56, 1 }
 0x3fc   : > { %v4268_v62 = vsel %vm1628_vm5, %v1662_v52, %v1663_v53  ;;  %1339 = vrot.lane.b32.xlu1 %v4265_v58, %s3746_s25 }
 0x3fd   : > { %v992_v63 = vpop.f32.mrb[10].mxu1  ;;  %v1585_v52 = vpop.permute.xlu0 %1584 }
 0x3fe   : > { %v4272_v0 = vpop.f32.mrb[4].mxu0  ;;  %v1665_v33 = vrot.slane %v992_v63, 1  ;;  %v3181_v1 = vpop.f32.mrb[11].mxu1 }
 0x3ff   : > { %v3188_v3 = vpop.f32.mrb[5].mxu0  ;;  %1240 = vrot.lane.b32.xlu0 %v4272_v0, %s3744_s21  ;;  %v1667_v7 = vrot.slane %v4272_v0, 1  ;;  %v1259_v17 = vpop.permute.xlu1 %1258 }
 0x400   : > { %v4277_v5 = vsel %vm1628_vm5, %v1663_v53, %v1665_v33  ;;  %1238 = vrot.lane.b32.xlu1 %v4250_v50, %s3744_s21  ;;  %v1282_v27 = vsel %vm1280_vm6, %v1235_v2, %v1259_v17  ;;  %v1195_v53 = vsub.s32 15, %v4248_v49 }
 0x401   : > { %v1630_v34 = vrot.slane %v1282_v27, 1 }
 0x402   : > { %v4281_v6 = vpop.f32.mrb[6].mxu0  ;;  %v4345_v57 = vand.u32 15, %v1195_v53 }
 0x403   : > { %v1668_v8 = vrot.slane %v4281_v6, 1  ;;  %v4285_v9 = vpop.f32.mrb[12].mxu1  ;;  %v3191_v12 = vpop.f32.mrb[7].mxu0  ;;  %1264 = vrot.lane.b32.xlu0 %v4272_v0, %s3745_s23  ;;  %v1631_v43 = vsel %vm1628_vm5, %v1629_v40, %v1630_v34 }
 0x404   : > { %v3201_v16 = vpop.f32.mrb[13].mxu1  ;;  %1262 = vrot.lane.b32.xlu1 %v4250_v50, %s3745_s23  ;;  %v1672_v28 = vrot.slane %v4285_v9, 1  ;;  %v4329_v47 = vsel %vm4320_vm9, %v1631_v43, %v4208_v15  ;;  %v1597_v59 = vpop.permute.xlu1 %1596  ;;  %v4338_v15 = vsel %vm1571_vm12, %v1573_v48, %v1565_v44  ;;  %v1221_v1 = vand.u32 1, %v4345_v57 }
 0x405   : > { %v4293_v18 = vsel %vm1628_vm5, %v1667_v7, %v1668_v8  ;;  %v1608_v54 = vsel %vm1280_vm6, %v1585_v52, %v1597_v59  ;;  %v1577_v56 = vand.u32 1, %v4338_v15  ;;  %v1693_v44 = vshra.s32 %v4299_v24, 1 }
 0x406   : > { %v1087_v21 = vpop.f32.mrb[8].mxu0  ;;  %v1632_v55 = vrot.slane %v1608_v54, 1  ;;  %vm4369_vm14 = vcmp.eq.s32.totalorder %v1221_v1, 1 }
 0x407   : > { %v1670_v22 = vrot.slane %v1087_v21, 1  ;;  %v4295_v23 = vpop.f32.mrb[14].mxu1  ;;  %1315 = vrot.lane.b32.xlu0 %v4265_v58, %s3747_s12  ;;  %v3194_v25 = vpop.f32.mrb[9].mxu0  ;;  %vm4350_vm13 = vcmp.eq.s32.totalorder %v1577_v56, 1 }
 0x408   : > { %v1673_v29 = vrot.slane %v4295_v23, 1  ;;  %v3204_v30 = vpop.f32.mrb[15].mxu1  ;;  %1242 = vrot.lane.b32.xlu1 %v4281_v6, %s3744_s21  ;;  %v1633_v33 = vsel %vm1628_vm5, %v1630_v34, %v1632_v55 }
 0x409   : > { %v4307_v31 = vsel %vm1628_vm5, %v1668_v8, %v1670_v22  ;;  %v4365_v4 = vsel %vm4350_vm13, %v1633_v33, %v4214_v20  ;;  %v4377_v8 = vsel %vm4369_vm14, %v1282_v27, %v4199_v11 }
 0x40a   : > { %v4310_v32 = vsel %vm1628_vm5, %v1672_v28, %v1673_v29 }
 0x40b   : > { %v1182_v35 = vpop.f32.mrb[16].mxu1  ;;  %1586 = vrot.lane.b32.xlu0 %v992_v63, %s3744_s21 }
 0x40c   : > { %v1675_v38 = vrot.slane %v1182_v35, 1  ;;  %v3207_v39 = vpop.f32.mrb[17].mxu1  ;;  %1266 = vrot.lane.b32.xlu1 %v4281_v6, %s3745_s23 }
 0x40e   : > { %v4317_v41 = vsel %vm1628_vm5, %v1673_v29, %v1675_v38 }
 0x40f   : > { %1588 = vrot.lane.b32.xlu0 %v1087_v21, %s3744_s21 }
 0x410   : > { %1598 = vrot.lane.b32.xlu1 %v992_v63, %s3745_s23 }
 0x413   : > { %1707 = vrot.lane.b32.xlu0 %v4329_v47, %s3747_s12 }
 0x414   : > { %1600 = vrot.lane.b32.xlu1 %v1087_v21, %s3745_s23 }
 0x417   : > { %1244 = vrot.lane.b32.xlu0 %v4285_v9, %s3744_s21 }
 0x418   : > { %1731 = vrot.lane.b32.xlu1 %v4329_v47, %s3746_s25 }
 0x41b   : > { %1268 = vrot.lane.b32.xlu0 %v4285_v9, %s3745_s23 }
 0x41c   : > { %1246 = vrot.lane.b32.xlu1 %v4295_v23, %s3744_s21 }
 0x41f   : > { %1590 = vrot.lane.b32.xlu0 %v1182_v35, %s3744_s21  ;;  %s435_s21 = scalar_lea.vmem [#allocation14], %s3028_s6  ;;  %s2885_s6 = scalar_lea.sflag [#allocation8], %s4031_s16 }
 0x420   : > { %v4356_v2 = vpop.f32.mrb[18].mxu1  ;;  %1270 = vrot.lane.b32.xlu1 %v4295_v23, %s3745_s23 }
 0x421   : > { %v4358_v3 = vpop.f32.mrb[19].mxu1 }
 0x423   : > { %1709 = vrot.lane.b32.xlu0 %v4365_v4, %s3747_s12 }
 0x424   : > { %1602 = vrot.lane.b32.xlu1 %v1182_v35, %s3745_s23  ;;  %s2900_s23 = sshll.u32 %s435_s21, 4  ;;  %s5139_s23 = int_to_ptr.vmem [resolvable:$true] %s2900_s23 }
 0x427   : > { %1317 = vrot.lane.b32.xlu0 %v4377_v8, %s3747_s12 }
 0x428   : > { %1733 = vrot.lane.b32.xlu1 %v4365_v4, %s3746_s25 }
 0x42c   : > { %1341 = vrot.lane.b32.xlu1 %v4377_v8, %s3746_s25 }
 0x468   : > { %v1237_v20 = vpop.permute.xlu0 %1236 }
 0x46c   : > { %v1261_v12 = vpop.permute.xlu0 %1260 }
 0x46d   : > { %v1283_v13 = vsel %vm1280_vm6, %v1237_v20, %v1261_v12 }
 0x46e   : > { %v4389_v14 = vsel %vm4252_vm7, %v1283_v13, %v4242_v46  ;;  %v4391_v11 = vpop.permute.xlu1 %1339  ;;  %v1634_v29 = vrot.slane %v1283_v13, 1 }
 0x46f   : > { %1343 = vrot.lane.b32.xlu1 %v4389_v14, %s3746_s25  ;;  %1319 = vrot.lane.b32.xlu0 %v4389_v14, %s3747_s12 }
 0x471   : > { %v1241_v16 = vpop.permute.xlu0 %1240 }
 0x472   : > { %v1239_v17 = vpop.permute.xlu1 %1238 }
 0x475   : > { %v1265_v21 = vpop.permute.xlu0 %1264 }
 0x476   : > { %v1285_v22 = vsel %vm1280_vm6, %v1241_v16, %v1265_v21  ;;  %v1263_v25 = vpop.permute.xlu1 %1262 }
 0x477   : > { %v4401_v26 = vsel %vm4252_vm7, %v1285_v22, %v4272_v0  ;;  %v1284_v46 = vsel %vm1280_vm6, %v1239_v17, %v1263_v25 }
 0x478   : > { %1347 = vrot.lane.b32.xlu1 %v4401_v26, %s3746_s25  ;;  %1323 = vrot.lane.b32.xlu0 %v4401_v26, %s3747_s12  ;;  %v1635_v27 = vrot.slane %v1284_v46, 1  ;;  %v4413_v34 = vsel %vm4369_vm14, %v1284_v46, %v4250_v50  ;;  %v1639_v50 = vrot.slane %v1285_v22, 1 }
 0x479   : > { %v4408_v28 = vpop.permute.xlu0 %1315 }
 0x47a   : > { %v1243_v30 = vpop.permute.xlu1 %1242  ;;  %v1636_v0 = vsel %vm1628_vm5, %v1634_v29, %v1635_v27 }
 0x47b   : > { %v4423_v37 = vsel %vm4320_vm9, %v1636_v0, %v4268_v62 }
 0x47c   : > { %1345 = vrot.lane.b32.xlu1 %v4413_v34, %s3746_s25  ;;  %1321 = vrot.lane.b32.xlu0 %v4413_v34, %s3747_s12 }
 0x47d   : > { %v1587_v35 = vpop.permute.xlu0 %1586 }
 0x47e   : > { %v1267_v36 = vpop.permute.xlu1 %1266 }
 0x47f   : > { %v1286_v38 = vsel %vm1280_vm6, %v1243_v30, %v1267_v36 }
 0x480   : > { %1735 = vrot.lane.b32.xlu1 %v4423_v37, %s3746_s25  ;;  %v1640_v39 = vrot.slane %v1286_v38, 1  ;;  %v4431_v43 = vsel %vm4369_vm14, %v1286_v38, %v4281_v6  ;;  %v4446_v6 = vand.u32 1, %v1693_v44 }
 0x481   : > { %v1589_v40 = vpop.permute.xlu0 %1588  ;;  %1325 = vrot.lane.b32.xlu0 %v4431_v43, %s3747_s12 }
 0x482   : > { %v1599_v62 = vpop.permute.xlu1 %1598  ;;  %v1641_v48 = vsel %vm1628_vm5, %v1639_v50, %v1640_v39  ;;  %vm1697_vm15 = vcmp.eq.s32.totalorder %v4446_v6, 1 }
 0x483   : > { %v4440_v59 = vsel %vm4320_vm9, %v1641_v48, %v4293_v18  ;;  %v1609_v53 = vsel %vm1280_vm6, %v1587_v35, %v1599_v62  ;;  %v1301_v48 = vshra.s32 %v4240_v45, 1 }
 0x484   : > { %1739 = vrot.lane.b32.xlu1 %v4440_v59, %s3746_s25  ;;  %v1637_v1 = vrot.slane %v1609_v53, 1  ;;  %v1694_v53 = vshra.s32 %v4338_v15, 1 }
 0x485   : > { %v1708_v52 = vpop.permute.xlu0 %1707  ;;  %1349 = vrot.lane.b32.xlu0 %v4431_v43, %s3746_s25  ;;  %v4528_v7 = vand.u32 1, %v1301_v48 }
 0x486   : > { %v1601_v55 = vpop.permute.xlu1 %1600  ;;  %v1638_v21 = vsel %vm1628_vm5, %v1635_v27, %v1637_v1  ;;  %v4544_v42 = vand.u32 1, %v1694_v53  ;;  %v1302_v1 = vshra.s32 %v4345_v57, 1 }
 0x487   : > { %v4449_v54 = vpop.f32.mrb[10].mxu0  ;;  %v1610_v22 = vsel %vm1280_vm6, %v1589_v40, %v1601_v55  ;;  %vm1305_vm3 = vcmp.eq.s32.totalorder %v4528_v7, 1 }
 0x488   : > { %v4451_v56 = vpop.f32.mrb[11].mxu0  ;;  %v1642_v30 = vrot.slane %v1610_v22, 1  ;;  %vm1698_vm4 = vcmp.eq.s32.totalorder %v4544_v42, 1 }
 0x489   : > { %v1245_v33 = vpop.permute.xlu0 %1244  ;;  %1711 = vrot.lane.b32.xlu0 %v4423_v37, %s3747_s12 }
 0x48a   : > { %v1732_v20 = vpop.permute.xlu1 %1731 }
 0x48b   : > { %v4456_v18 = vpop.f32.mrb[20].mxu1  ;;  %v1755_v12 = vsel %vm1363_vm2, %v1708_v52, %v1732_v20 }
 0x48c   : > { %v4459_v13 = vpop.f32.mrb[21].mxu1  ;;  %v4464_v16 = vsel %vm1697_vm15, %v1755_v12, %v4329_v47  ;;  %v4479_v47 = vsel %vm4350_vm13, %v1638_v21, %v4277_v5  ;;  %v1643_v5 = vsel %vm1628_vm5, %v1640_v39, %v1642_v30 }
 0x48d   : > { %v1269_v17 = vpop.permute.xlu0 %1268  ;;  %1715 = vrot.lane.b32.xlu0 %v4440_v59, %s3747_s12  ;;  %1813 = vrot.lane.b32.xlu1 %v4464_v16, %s3748_s9  ;;  %v4500_v50 = vsel %vm4350_vm13, %v1643_v5, %v4307_v31 }
 0x48e   : > { %v1247_v46 = vpop.permute.xlu1 %1246  ;;  %v1287_v0 = vsel %vm1280_vm6, %v1245_v33, %v1269_v17 }
 0x48f   : > { %v4472_v25 = vpop.f32.mrb[12].mxu0  ;;  %v4489_v35 = vsel %vm4252_vm7, %v1287_v0, %v4285_v9  ;;  %v1644_v44 = vrot.slane %v1287_v0, 1 }
 0x490   : > { %v4474_v29 = vpop.f32.mrb[13].mxu0 }
 0x491   : > { %1737 = vrot.lane.b32.xlu1 %v4479_v47, %s3746_s25  ;;  %1789 = vrot.lane.b32.xlu0 %v4464_v16, %s3749_s30  ;;  %v1591_v40 = vpop.permute.xlu0 %1590 }
 0x492   : > { %v1271_v27 = vpop.permute.xlu1 %1270 }
 0x493   : > { %v1288_v36 = vsel %vm1280_vm6, %v1247_v46, %v1271_v27 }
 0x494   : > { %v1645_v51 = vrot.slane %v1288_v36, 1  ;;  %v4510_v39 = vsel %vm4369_vm14, %v1288_v36, %v4295_v23 }
 0x495   : > { %1713 = vrot.lane.b32.xlu0 %v4479_v47, %s3747_s12  ;;  %1327 = vrot.lane.b32.xlu1 %v4489_v35, %s3747_s12  ;;  %v1710_v20 = vpop.permute.xlu0 %1709 }
 0x496   : > { %v1603_v38 = vpop.permute.xlu1 %1602  ;;  %v1646_v31 = vsel %vm1628_vm5, %v1644_v44, %v1645_v51 }
 0x497   : > { %v1611_v9 = vsel %vm1280_vm6, %v1591_v40, %v1603_v38  ;;  %v4521_v52 = vsel %vm4320_vm9, %v1646_v31, %v4310_v32  ;;  %v1364_v32 = vsel %vm1363_vm2, %v4408_v28, %v4391_v11  ;;  %v4558_v11 = vand.u32 1, %v1302_v1 }
 0x498   : > { %v1647_v62 = vrot.slane %v1611_v9, 1  ;;  %vm1446_vm6 = vcmask 97280  }
 0x499   : > { %1717 = vrot.lane.b32.xlu0 %v4500_v50, %s3747_s12  ;;  %1351 = vrot.lane.b32.xlu1 %v4489_v35, %s3746_s25  ;;  %v1318_v12 = vpop.permute.xlu0 %1317 }
 0x49a   : > { %v1648_v23 = vsel %vm1628_vm5, %v1645_v51, %v1647_v62  ;;  %v1734_v55 = vpop.permute.xlu1 %1733  ;;  %vm1306_vm5 = vcmp.eq.s32.totalorder %v4558_v11, 1  ;;  %v1384_v11 = vshra.s32 %v4240_v45, 2 }
 0x49b   : > { %v4534_v33 = vsel %vm4350_vm13, %v1648_v23, %v4317_v41  ;;  %v4550_v41 = vsel %vm1305_vm3, %v1364_v32, %v4265_v58  ;;  %v1756_v63 = vsel %vm1363_vm2, %v1710_v20, %v1734_v55 }
 0x49c   : > { %v4563_v17 = vsel %vm1698_vm4, %v1756_v63, %v4365_v4 }
 0x49d   : > { %1741 = vrot.lane.b32.xlu0 %v4500_v50, %s3746_s25  ;;  %1353 = vrot.lane.b32.xlu1 %v4510_v39, %s3746_s25 }
 0x49e   : > { %v1342_v28 = vpop.permute.xlu1 %1341 }
 0x49f   : > { %v1365_v58 = vsel %vm1363_vm2, %v1318_v12, %v1342_v28 }
 0x4a0   : > { %v4574_v21 = vsel %vm1306_vm5, %v1365_v58, %v4377_v8 }
 0x4a1   : > { %1329 = vrot.lane.b32.xlu0 %v4510_v39, %s3747_s12  ;;  %1719 = vrot.lane.b32.xlu1 %v4521_v52, %s3747_s12 }
 0x4a5   : > { %1743 = vrot.lane.b32.xlu1 %v4521_v52, %s3746_s25  ;;  %1721 = vrot.lane.b32.xlu0 %v4534_v33, %s3747_s12 }
 0x4a9   : > { %1745 = vrot.lane.b32.xlu1 %v4534_v33, %s3746_s25  ;;  %1398 = vrot.lane.b32.xlu0 %v4550_v41, %s3749_s30 }
 0x4ad   : > { %1422 = vrot.lane.b32.xlu1 %v4550_v41, %s3748_s9  ;;  %1791 = vrot.lane.b32.xlu0 %v4563_v17, %s3749_s30 }
 0x4b1   : > { %1815 = vrot.lane.b32.xlu1 %v4563_v17, %s3748_s9  ;;  %1400 = vrot.lane.b32.xlu0 %v4574_v21, %s3749_s30 }
 0x4b5   : > { %1424 = vrot.lane.b32.xlu1 %v4574_v21, %s3748_s9 }
 0x4e1   : > { %v1344_v4 = vpop.permute.xlu1 %1343  ;;  %v1320_v22 = vpop.permute.xlu0 %1319 }
 0x4e2   : > { %v1366_v46 = vsel %vm1363_vm2, %v1320_v22, %v1344_v4 }
 0x4e3   : > { %v4586_v30 = vsel %vm1305_vm3, %v1366_v46, %v4389_v14 }
 0x4e4   : > { %1426 = vrot.lane.b32.xlu1 %v4586_v30, %s3748_s9  ;;  %1402 = vrot.lane.b32.xlu0 %v4586_v30, %s3749_s30 }
 0x4ea   : > { %v1348_v8 = vpop.permute.xlu1 %1347  ;;  %v1324_v0 = vpop.permute.xlu0 %1323 }
 0x4eb   : > { %v1368_v27 = vsel %vm1363_vm2, %v1324_v0, %v1348_v8 }
 0x4ec   : > { %v4596_v5 = vsel %vm1305_vm3, %v1368_v27, %v4401_v26 }
 0x4ed   : > { %1430 = vrot.lane.b32.xlu1 %v4596_v5, %s3748_s9  ;;  %1406 = vrot.lane.b32.xlu0 %v4596_v5, %s3749_s30 }
 0x4ee   : > { %v1346_v14 = vpop.permute.xlu1 %1345  ;;  %v1322_v36 = vpop.permute.xlu0 %1321 }
 0x4ef   : > { %v1367_v38 = vsel %vm1363_vm2, %v1322_v36, %v1346_v14 }
 0x4f0   : > { %v4606_v40 = vsel %vm1306_vm5, %v1367_v38, %v4413_v34 }
 0x4f1   : > { %1428 = vrot.lane.b32.xlu1 %v4606_v40, %s3748_s9  ;;  %1404 = vrot.lane.b32.xlu0 %v4606_v40, %s3749_s30 }
 0x4f2   : > { %v1736_v51 = vpop.permute.xlu1 %1735 }
 0x4f3   : > { %v1326_v26 = vpop.permute.xlu0 %1325 }
 0x4f6   : > { %v1740_v34 = vpop.permute.xlu1 %1739 }
 0x4f7   : > { %v1350_v9 = vpop.permute.xlu0 %1349 }
 0x4f8   : > { %v1369_v44 = vsel %vm1363_vm2, %v1326_v26, %v1350_v9 }
 0x4f9   : > { %v4616_v62 = vsel %vm1306_vm5, %v1369_v44, %v4431_v43 }
 0x4fa   : > { %1408 = vrot.lane.b32.xlu0 %v4616_v62, %s3749_s30 }
 0x4fb   : > { %v1712_v31 = vpop.permute.xlu0 %1711 }
 0x4fc   : > { %v1757_v48 = vsel %vm1363_vm2, %v1712_v31, %v1736_v51  ;;  %v4706_v31 = vand.u32 1, %v1384_v11 }
 0x4fd   : > { %v4624_v23 = vsel %vm1697_vm15, %v1757_v48, %v4423_v37  ;;  %v1776_v48 = vshra.s32 %v4338_v15, 2 }
 0x4fe   : > { %1432 = vrot.lane.b32.xlu0 %v4616_v62, %s3748_s9  ;;  %1817 = vrot.lane.b32.xlu1 %v4624_v23, %s3748_s9  ;;  %vm1388_vm8 = vcmp.eq.s32.totalorder %v4706_v31, 1 }
 0x4ff   : > { %v1814_v43 = vpop.permute.xlu1 %1813  ;;  %v1716_v53 = vpop.permute.xlu0 %1715 }
 0x500   : > { %v1759_v55 = vsel %vm1363_vm2, %v1716_v53, %v1740_v34 }
 0x501   : > { %v4634_v32 = vsel %vm1697_vm15, %v1759_v55, %v4440_v59  ;;  %v1385_v55 = vshra.s32 %v4345_v57, 2 }
 0x502   : > { %1793 = vrot.lane.b32.xlu0 %v4624_v23, %s3749_s30  ;;  %1821 = vrot.lane.b32.xlu1 %v4634_v32, %s3748_s9 }
 0x503   : > { %v1738_v37 = vpop.permute.xlu1 %1737  ;;  %v1790_v1 = vpop.permute.xlu0 %1789 }
 0x506   : > { %1797 = vrot.lane.b32.xlu0 %v4634_v32, %s3749_s30 }
 0x507   : > { %v1328_v20 = vpop.permute.xlu1 %1327  ;;  %v1714_v63 = vpop.permute.xlu0 %1713 }
 0x508   : > { %v1758_v28 = vsel %vm1363_vm2, %v1714_v63, %v1738_v37  ;;  %v4734_v63 = vand.u32 1, %v1385_v55 }
 0x509   : > { %v4646_v59 = vsel %vm1698_vm4, %v1758_v28, %v4479_v47 }
 0x50a   : > { %1819 = vrot.lane.b32.xlu1 %v4646_v59, %s3748_s9  ;;  %1795 = vrot.lane.b32.xlu0 %v4646_v59, %s3749_s30  ;;  %vm1389_vm10 = vcmp.eq.s32.totalorder %v4734_v63, 1 }
 0x50b   : > { %v1352_v12 = vpop.permute.xlu1 %1351  ;;  %v1718_v58 = vpop.permute.xlu0 %1717 }
 0x50c   : > { %v1370_v4 = vsel %vm1363_vm2, %v1328_v20, %v1352_v12 }
 0x50d   : > { %v4656_v22 = vsel %vm1305_vm3, %v1370_v4, %v4489_v35 }
 0x50e   : > { %1410 = vrot.lane.b32.xlu1 %v4656_v22, %s3749_s30 }
 0x50f   : > { %v1354_v47 = vpop.permute.xlu1 %1353  ;;  %v1742_v46 = vpop.permute.xlu0 %1741 }
 0x510   : > { %v1760_v8 = vsel %vm1363_vm2, %v1718_v58, %v1742_v46 }
 0x511   : > { %v4664_v0 = vsel %vm1698_vm4, %v1760_v8, %v4500_v50  ;;  %v1775_v50 = vshra.s32 %v4299_v24, 2 }
 0x512   : > { %1434 = vrot.lane.b32.xlu1 %v4656_v22, %s3748_s9  ;;  %1799 = vrot.lane.b32.xlu0 %v4664_v0, %s3749_s30 }
 0x513   : > { %v1720_v35 = vpop.permute.xlu1 %1719  ;;  %v1330_v7 = vpop.permute.xlu0 %1329 }
 0x514   : > { %v1371_v27 = vsel %vm1363_vm2, %v1330_v7, %v1354_v47 }
 0x515   : > { %v4674_v14 = vsel %vm1306_vm5, %v1371_v27, %v4510_v39  ;;  %v4691_v39 = vand.u32 1, %v1775_v50 }
 0x516   : > { %1823 = vrot.lane.b32.xlu0 %v4664_v0, %s3748_s9  ;;  %1436 = vrot.lane.b32.xlu1 %v4674_v14, %s3748_s9 }
 0x517   : > { %v1744_v36 = vpop.permute.xlu1 %1743  ;;  %v1722_v38 = vpop.permute.xlu0 %1721  ;;  %vm1779_vm7 = vcmp.eq.s32.totalorder %v4691_v39, 1 }
 0x518   : > { %v1761_v26 = vsel %vm1363_vm2, %v1720_v35, %v1744_v36 }
 0x519   : > { %v4685_v51 = vsel %vm1697_vm15, %v1761_v26, %v4521_v52  ;;  %v1837_v52 = vsel %vm1446_vm6, %v1790_v1, %v1814_v43  ;;  %v4720_v43 = vand.u32 1, %v1776_v48 }
 0x51a   : > { %1801 = vrot.lane.b32.xlu1 %v4685_v51, %s3749_s30  ;;  %1412 = vrot.lane.b32.xlu0 %v4674_v14, %s3749_s30 }
 0x51b   : > { %v1746_v9 = vpop.permute.xlu1 %1745  ;;  %v1399_v34 = vpop.permute.xlu0 %1398  ;;  %vm1780_vm9 = vcmp.eq.s32.totalorder %v4720_v43, 1  ;;  %v1857_v43 = vshra.s32 %v4299_v24, 3  ;;  %v1858_v24 = vshra.s32 %v4338_v15, 3 }
 0x51c   : > { %v1762_v44 = vsel %vm1363_vm2, %v1722_v38, %v1746_v9 }
 0x51d   : > { %v4698_v6 = vsel %vm1698_vm4, %v1762_v44, %v4534_v33  ;;  %v4712_v33 = vsel %vm1779_vm7, %v1837_v52, %v4464_v16 }
 0x51e   : > { %1825 = vrot.lane.b32.xlu1 %v4685_v51, %s3748_s9  ;;  %1803 = vrot.lane.b32.xlu0 %v4698_v6, %s3749_s30  ;;  %s5255_s30 = sld [smem:[#allocation25_spill]] }
 0x51f   : > { %v1423_v53 = vpop.permute.xlu1 %1422  ;;  %v1792_v37 = vpop.permute.xlu0 %1791 }
 0x520   : > { %v1447_v42 = vsel %vm1446_vm6, %v1399_v34, %v1423_v53 }
 0x521   : > { %v4726_v16 = vsel %vm1388_vm8, %v1447_v42, %v4550_v41 }
 0x522   : > { %1827 = vrot.lane.b32.xlu1 %v4698_v6, %s3748_s9  ;;  %1871 = vrot.lane.b32.xlu0 %v4712_v33, %s3750_s1 }
 0x523   : > { %v1816_v1 = vpop.permute.xlu1 %1815  ;;  %v1401_v12 = vpop.permute.xlu0 %1400 }
 0x524   : > { %v1838_v20 = vsel %vm1446_vm6, %v1792_v37, %v1816_v1 }
 0x525   : > { %v4739_v41 = vsel %vm1780_vm9, %v1838_v20, %v4563_v17 }
 0x526   : > { %1895 = vrot.lane.b32.xlu1 %v4712_v33, %s3751_s28  ;;  %1481 = vrot.lane.b32.xlu0 %v4726_v16, %s3750_s1 }
 0x527   : > { %v1425_v28 = vpop.permute.xlu1 %1424 }
 0x528   : > { %v1448_v58 = vsel %vm1446_vm6, %v1401_v12, %v1425_v28 }
 0x529   : > { %v4750_v4 = vsel %vm1389_vm10, %v1448_v58, %v4574_v21 }
 0x52a   : > { %1505 = vrot.lane.b32.xlu1 %v4726_v16, %s3751_s28  ;;  %1873 = vrot.lane.b32.xlu0 %v4739_v41, %s3750_s1 }
 0x52e   : > { %1897 = vrot.lane.b32.xlu1 %v4739_v41, %s3751_s28  ;;  %1483 = vrot.lane.b32.xlu0 %v4750_v4, %s3750_s1 }
 0x532   : > { %1507 = vrot.lane.b32.xlu1 %v4750_v4, %s3751_s28 }
 0x556   : > { %v1427_v17 = vpop.permute.xlu1 %1426  ;;  %v1403_v47 = vpop.permute.xlu0 %1402 }
 0x557   : > { %v1449_v46 = vsel %vm1446_vm6, %v1403_v47, %v1427_v17 }
 0x558   : > { %v4762_v8 = vsel %vm1388_vm8, %v1449_v46, %v4586_v30 }
 0x559   : > { %1509 = vrot.lane.b32.xlu1 %v4762_v8, %s3751_s28  ;;  %1485 = vrot.lane.b32.xlu0 %v4762_v8, %s3750_s1 }
 0x55f   : > { %v1431_v21 = vpop.permute.xlu1 %1430  ;;  %v1407_v35 = vpop.permute.xlu0 %1406 }
 0x560   : > { %v1451_v7 = vsel %vm1446_vm6, %v1407_v35, %v1431_v21 }
 0x561   : > { %v4772_v27 = vsel %vm1388_vm8, %v1451_v7, %v4596_v5 }
 0x562   : > { %1513 = vrot.lane.b32.xlu1 %v4772_v27, %s3751_s28  ;;  %1489 = vrot.lane.b32.xlu0 %v4772_v27, %s3750_s1 }
 0x563   : > { %v1429_v30 = vpop.permute.xlu1 %1428  ;;  %v1405_v50 = vpop.permute.xlu0 %1404 }
 0x564   : > { %v1450_v36 = vsel %vm1446_vm6, %v1405_v50, %v1429_v30 }
 0x565   : > { %v4782_v38 = vsel %vm1389_vm10, %v1450_v36, %v4606_v40 }
 0x566   : > { %1511 = vrot.lane.b32.xlu1 %v4782_v38, %s3751_s28  ;;  %1487 = vrot.lane.b32.xlu0 %v4782_v38, %s3750_s1 }
 0x56c   : > { %v1409_v5 = vpop.permute.xlu0 %1408 }
 0x570   : > { %v1433_v26 = vpop.permute.xlu0 %1432  ;;  %v1818_v9 = vpop.permute.xlu1 %1817 }
 0x571   : > { %v1452_v11 = vsel %vm1446_vm6, %v1409_v5, %v1433_v26  ;;  %v1467_v26 = vshra.s32 %v4240_v45, 3 }
 0x572   : > { %v4792_v44 = vsel %vm1389_vm10, %v1452_v11, %v4616_v62 }
 0x573   : > { %1491 = vrot.lane.b32.xlu0 %v4792_v44, %s3750_s1  ;;  %v4882_v63 = vand.u32 1, %v1467_v26 }
 0x574   : > { %v1794_v40 = vpop.permute.xlu0 %1793  ;;  %v1822_v48 = vpop.permute.xlu1 %1821 }
 0x575   : > { %v1839_v34 = vsel %vm1446_vm6, %v1794_v40, %v1818_v9  ;;  %v4880_v9 = vand.u32 1, %v1857_v43  ;;  %v4885_v40 = vand.u32 127, %v507_v60  ;;  %vm1471_vm13 = vcmp.eq.s32.totalorder %v4882_v63, 1 }
 0x576   : > { %v4800_v52 = vsel %vm1779_vm7, %v1839_v34, %v4624_v23  ;;  %v4888_v34 = vadd.s32 1, %v4083_v61 }
 0x577   : > { %1515 = vrot.lane.b32.xlu0 %v4792_v44, %s3751_s28  ;;  %1899 = vrot.lane.b32.xlu1 %v4800_v52, %s3751_s28  ;;  %vm1861_vm12 = vcmp.eq.s32.totalorder %v4880_v9, 1  ;;  %vm1939_vm15 = vcmp.le.s32.totalorder %v4885_v40, %v4083_v61  ;;  %vm1940_vm5 = vcmp.le.s32.totalorder %v4885_v40, %v4248_v49 }
 0x578   : > { %v1798_v62 = vpop.permute.xlu0 %1797  ;;  %vm1943_vm14 = vcmp.eq.s32.totalorder %v4885_v40, %v4888_v34 }
 0x579   : > { %v1841_v53 = vsel %vm1446_vm6, %v1798_v62, %v1822_v48 }
 0x57a   : > { %v4810_v42 = vsel %vm1779_vm7, %v1841_v53, %v4634_v32  ;;  %v1468_v53 = vshra.s32 %v4345_v57, 3 }
 0x57b   : > { %1875 = vrot.lane.b32.xlu0 %v4800_v52, %s3750_s1  ;;  %1903 = vrot.lane.b32.xlu1 %v4810_v42, %s3751_s28 }
 0x57c   : > { %v1820_v23 = vpop.permute.xlu1 %1819  ;;  %v1796_v55 = vpop.permute.xlu0 %1795  ;;  %v4911_v57 = vand.u32 1, %v1468_v53 }
 0x57d   : > { %v1840_v37 = vsel %vm1446_vm6, %v1796_v55, %v1820_v23 }
 0x57e   : > { %v4820_v1 = vsel %vm1780_vm9, %v1840_v37, %v4646_v59  ;;  %v4906_v37 = vand.u32 1, %v1858_v24  ;;  %vm1472_vm3 = vcmp.eq.s32.totalorder %v4911_v57, 1 }
 0x57f   : > { %1879 = vrot.lane.b32.xlu0 %v4810_v42, %s3750_s1  ;;  %1901 = vrot.lane.b32.xlu1 %v4820_v1, %s3751_s28 }
 0x580   : > { %v1411_v32 = vpop.permute.xlu1 %1410  ;;  %vm1862_vm2 = vcmp.eq.s32.totalorder %v4906_v37, 1 }
 0x583   : > { %1877 = vrot.lane.b32.xlu0 %v4820_v1, %s3750_s1 }
 0x584   : > { %v1435_v20 = vpop.permute.xlu1 %1434  ;;  %v1800_v28 = vpop.permute.xlu0 %1799 }
 0x585   : > { %v1453_v12 = vsel %vm1446_vm6, %v1411_v32, %v1435_v20  ;;  %v4917_v20 = vadd.s32 1, %v4248_v49 }
 0x586   : > { %v4832_v58 = vsel %vm1388_vm8, %v1453_v12, %v4656_v22 }
 0x587   : > { %1493 = vrot.lane.b32.xlu1 %v4832_v58, %s3750_s1  ;;  %vm1944_vm4 = vcmp.eq.s32.totalorder %v4885_v40, %v4917_v20 }
 0x588   : > { %v1437_v59 = vpop.permute.xlu1 %1436  ;;  %v1824_v17 = vpop.permute.xlu0 %1823 }
 0x589   : > { %v1842_v47 = vsel %vm1446_vm6, %v1800_v28, %v1824_v17 }
 0x58a   : > { %v4840_v46 = vsel %vm1780_vm9, %v1842_v47, %v4664_v0 }
 0x58b   : > { %1517 = vrot.lane.b32.xlu1 %v4832_v58, %s3751_s28  ;;  %1881 = vrot.lane.b32.xlu0 %v4840_v46, %s3750_s1 }
 0x58c   : > { %v1802_v22 = vpop.permute.xlu1 %1801  ;;  %v1413_v31 = vpop.permute.xlu0 %1412 }
 0x58d   : > { %v1454_v5 = vsel %vm1446_vm6, %v1413_v31, %v1437_v59 }
 0x58f   : > { %1905 = vrot.lane.b32.xlu0 %v4840_v46, %s3751_s28 }
 0x590   : > { %v1826_v21 = vpop.permute.xlu1 %1825  ;;  %v1804_v0 = vpop.permute.xlu0 %1803 }
 0x591   : > { %v1843_v35 = vsel %vm1446_vm6, %v1802_v22, %v1826_v21 }
 0x592   : > { %v4852_v7 = vsel %vm1779_vm7, %v1843_v35, %v4685_v51  ;;  %v4870_v51 = vsel %vm1389_vm10, %v1454_v5, %v4674_v14  ;;  %vm2782_vm7 = vcmask 392192  }
 0x593   : > { %1883 = vrot.lane.b32.xlu1 %v4852_v7, %s3750_s1 }
 0x594   : > { %v1828_v30 = vpop.permute.xlu1 %1827 }
 0x595   : > { %v1844_v50 = vsel %vm1446_vm6, %v1804_v0, %v1828_v30  ;;  %vm2779_vm6 = vcmask 261120  }
 0x596   : > { %v4860_v36 = vsel %vm1780_vm9, %v1844_v50, %v4698_v6  ;;  %v1872_v6 = vpop.permute.xlu0 %1871 }
 0x597   : > { %1907 = vrot.lane.b32.xlu1 %v4852_v7, %s3751_s28  ;;  %1885 = vrot.lane.b32.xlu0 %v4860_v36, %s3750_s1 }
 0x598   : > { %v1896_v39 = vpop.permute.xlu1 %1895 }
 0x599   : > { %v1919_v48 = vsel %vm1529_vm11, %v1872_v6, %v1896_v39 }
 0x59a   : > { %v1482_v14 = vpop.permute.xlu0 %1481  ;;  %v1931_v60 = vsel %vm1861_vm12, %v1919_v48, %v4712_v33 }
 0x59b   : > { %1909 = vrot.lane.b32.xlu1 %v4860_v36, %s3751_s28  ;;  %1495 = vrot.lane.b32.xlu0 %v4870_v51, %s3750_s1  ;;  %v1949_v15 = vsel %vm1943_vm14, 0.0, %v1931_v60 }
 0x59c   : > { %v1506_v11 = vpop.permute.xlu1 %1505 }
 0x59d   : > { %v1530_v45 = vsel %vm1529_vm11, %v1482_v14, %v1506_v11 }
 0x59e   : > { %v1874_v23 = vpop.permute.xlu0 %1873  ;;  %v1542_v55 = vsel %vm1471_vm13, %v1530_v45, %v4726_v16 }
 0x59f   : > { %1519 = vrot.lane.b32.xlu1 %v4870_v51, %s3751_s28  ;;  %v1961_v33 = vsel %vm1939_vm15, %v1542_v55, %v1949_v15 }
 0x5a0   : > { %v1898_v62 = vpop.permute.xlu1 %1897  ;;  %v4924_v59 = vadd.f32 %v4358_v3, %v1961_v33 }
 0x5a1   : > { %v1920_v16 = vsel %vm1529_vm11, %v1874_v23, %v1898_v62 }
 0x5a2   : > { %v1484_v28 = vpop.permute.xlu0 %1483  ;;  %v1932_v17 = vsel %vm1862_vm2, %v1920_v16, %v4739_v41  ;;  %v2317_v22 = vsel %vm642_vm1, %v4924_v59, -inf }
 0x5a3   : > { %v1950_v3 = vsel %vm1944_vm4, 0.0, %v1932_v17 }
 0x5a4   : > { %v1508_v32 = vpop.permute.xlu1 %1507 }
 0x5a5   : > { %v1531_v12 = vsel %vm1529_vm11, %v1484_v28, %v1508_v32 }
 0x5a6   : > { %v1543_v47 = vsel %vm1472_vm3, %v1531_v12, %v4750_v4 }
 0x5a7   : > { %v1962_v31 = vsel %vm1940_vm5, %v1543_v47, %v1950_v3 }
 0x5a8   : > { %v4945_v41 = vadd.f32 %v4356_v2, %v1962_v31 }
 0x5aa   : > { %v2320_v4 = vsel %vm642_vm1, %v4945_v41, -inf }
 0x5ba   : > { %2318 = vmax.xlane.f32.xlu0 %v2317_v22 }
 0x5c3   : > { %2321 = vmax.xlane.f32.xlu1 %v2320_v4 }
 0x5cb   : > { %v1486_v21 = vpop.permute.xlu0 %1485  ;;  %v1510_v35 = vpop.permute.xlu1 %1509 }
 0x5cc   : > { %v1532_v26 = vsel %vm1529_vm11, %v1486_v21, %v1510_v35 }
 0x5cd   : > { %v1544_v45 = vsel %vm1471_vm13, %v1532_v26, %v4762_v8 }
 0x5d4   : > { %v1490_v0 = vpop.permute.xlu0 %1489  ;;  %v1514_v30 = vpop.permute.xlu1 %1513 }
 0x5d5   : > { %v1534_v62 = vsel %vm1529_vm11, %v1490_v0, %v1514_v30 }
 0x5d8   : > { %v1488_v50 = vpop.permute.xlu0 %1487  ;;  %v1512_v5 = vpop.permute.xlu1 %1511 }
 0x5d9   : > { %v1533_v33 = vsel %vm1529_vm11, %v1488_v50, %v1512_v5 }
 0x5da   : > { %v1545_v17 = vsel %vm1472_vm3, %v1533_v33, %v4782_v38 }
 0x5e5   : > { %v1492_v39 = vpop.permute.xlu0 %1491 }
 0x5e9   : > { %v1900_v6 = vpop.permute.xlu1 %1899  ;;  %v1516_v43 = vpop.permute.xlu0 %1515 }
 0x5ea   : > { %v1535_v4 = vsel %vm1529_vm11, %v1492_v39, %v1516_v43 }
 0x5ed   : > { %v1876_v11 = vpop.permute.xlu0 %1875  ;;  %v1904_v2 = vpop.permute.xlu1 %1903 }
 0x5ee   : > { %v1921_v14 = vsel %vm1529_vm11, %v1876_v11, %v1900_v6 }
 0x5ef   : > { %v1933_v48 = vsel %vm1861_vm12, %v1921_v14, %v4800_v52  ;;  %v1546_v52 = vsel %vm1471_vm13, %v1534_v62, %v4772_v27 }
 0x5f0   : > { %v1951_v24 = vsel %vm1943_vm14, 0.0, %v1933_v48 }
 0x5f1   : > { %v1880_v53 = vpop.permute.xlu0 %1879  ;;  %v1963_v60 = vsel %vm1939_vm15, %v1544_v45, %v1951_v24  ;;  %v1902_v16 = vpop.permute.xlu1 %1901 }
 0x5f2   : > { %v1923_v23 = vsel %vm1529_vm11, %v1880_v53, %v1904_v2  ;;  %v4966_v55 = vadd.f32 %v4451_v56, %v1963_v60 }
 0x5f3   : > { %v1935_v8 = vsel %vm1861_vm12, %v1923_v23, %v4810_v42 }
 0x5f4   : > { %v1953_v15 = vsel %vm1943_vm14, 0.0, %v1935_v8  ;;  %v2323_v32 = vsel %vm642_vm1, %v4966_v55, -inf }
 0x5f5   : > { %2324 = vmax.xlane.f32.xlu0 %v2323_v32  ;;  %v1878_v56 = vpop.permute.xlu0 %1877  ;;  %v1965_v42 = vsel %vm1939_vm15, %v1546_v52, %v1953_v15 }
 0x5f6   : > { %v1922_v28 = vsel %vm1529_vm11, %v1878_v56, %v1902_v16  ;;  %v4985_v27 = vadd.f32 %v4459_v13, %v1965_v42 }
 0x5f7   : > { %v1934_v12 = vsel %vm1862_vm2, %v1922_v28, %v4820_v1 }
 0x5f8   : > { %v1952_v47 = vsel %vm1944_vm4, 0.0, %v1934_v12  ;;  %v2329_v22 = vsel %vm642_vm1, %v4985_v27, -inf }
 0x5f9   : > { %2330 = vmax.xlane.f32.xlu0 %v2329_v22  ;;  %v1964_v13 = vsel %vm1940_vm5, %v1545_v17, %v1952_v47  ;;  %v1494_v1 = vpop.permute.xlu1 %1493 }
 0x5fa   : > { %v5002_v3 = vadd.f32 %v4449_v54, %v1964_v13  ;;  %v1547_v54 = vsel %vm1472_vm3, %v1535_v4, %v4792_v44 }
 0x5fc   : > { %v2326_v31 = vsel %vm642_vm1, %v5002_v3, -inf }
 0x5fd   : > { %2327 = vmax.xlane.f32.xlu0 %v2326_v31  ;;  %v1882_v38 = vpop.permute.xlu0 %1881  ;;  %v1518_v21 = vpop.permute.xlu1 %1517 }
 0x601   : > { %v1906_v35 = vpop.permute.xlu0 %1905 }
 0x602   : > { %v1924_v0 = vsel %vm1529_vm11, %v1882_v38, %v1906_v35 }
 0x603   : > { %v1936_v30 = vsel %vm1862_vm2, %v1924_v0, %v4840_v46  ;;  %v1536_v46 = vsel %vm1529_vm11, %v1494_v1, %v1518_v21 }
 0x604   : > { %v1954_v50 = vsel %vm1944_vm4, 0.0, %v1936_v30  ;;  %v1548_v2 = vsel %vm1471_vm13, %v1536_v46, %v4832_v58 }
 0x605   : > { %v1884_v5 = vpop.permute.xlu1 %1883  ;;  %v1966_v39 = vsel %vm1940_vm5, %v1547_v54, %v1954_v50 }
 0x606   : > { %v5021_v6 = vadd.f32 %v4456_v18, %v1966_v39 }
 0x608   : > { %v2332_v43 = vsel %vm642_vm1, %v5021_v6, -inf }
 0x609   : > { %v1908_v26 = vpop.permute.xlu1 %1907  ;;  %2333 = vmax.xlane.f32.xlu1 %v2332_v43  ;;  %v1886_v14 = vpop.permute.xlu0 %1885 }
 0x60a   : > { %v1925_v44 = vsel %vm1529_vm11, %v1884_v5, %v1908_v26 }
 0x60b   : > { %v1937_v11 = vsel %vm1861_vm12, %v1925_v44, %v4852_v7 }
 0x60c   : > { %v1955_v18 = vsel %vm1943_vm14, 0.0, %v1937_v11 }
 0x60d   : > { %v1910_v48 = vpop.permute.xlu1 %1909  ;;  %v1967_v45 = vsel %vm1939_vm15, %v1548_v2, %v1955_v18  ;;  %v1496_v58 = vpop.permute.xlu0 %1495 }
 0x60e   : > { %v1926_v24 = vsel %vm1529_vm11, %v1886_v14, %v1910_v48  ;;  %v2309_v62 = vadd.f32 %v4474_v29, %v1967_v45 }
 0x60f   : > { %v1938_v7 = vsel %vm1862_vm2, %v1926_v24, %v4860_v36 }
 0x610   : > { %v2335_v9 = vsel %vm642_vm1, %v2309_v62, -inf  ;;  %v1956_v61 = vsel %vm1944_vm4, 0.0, %v1938_v7 }
 0x611   : > { %v1520_v63 = vpop.permute.xlu1 %1519  ;;  %2336 = vmax.xlane.f32.xlu0 %v2335_v9 }
 0x612   : > { %v1537_v34 = vsel %vm1529_vm11, %v1496_v58, %v1520_v63 }
 0x613   : > { %v1549_v53 = vsel %vm1472_vm3, %v1537_v34, %v4870_v51 }
 0x614   : > { %v1968_v29 = vsel %vm1940_vm5, %v1549_v53, %v1956_v61 }
 0x615   : > { %v2314_v36 = vadd.f32 %v4472_v25, %v1968_v29 }
 0x617   : > { %v2338_v37 = vsel %vm642_vm1, %v2314_v36, -inf }
 0x618   : > { %2339 = vmax.xlane.f32.xlu1 %v2338_v37 }
 0x627   : > { %732 = vrot.lane.b32.xlu0 %v4096_v10, %s3740_s20 }
 0x629   : > { %734 = vrot.lane.b32.xlu1 %v4102_v19, %s3740_s20  ;;  %s5253_s20 = sld [smem:[#allocation20_spill]] }
 0x62d   : > { %738 = vrot.lane.b32.xlu1 %v4096_v10, %s3741_s29 }
 0x62f   : > { %s3093_s25 = sshll.u32 %s5253_s20, 8 }
 0x630   : > { %s5144_s1 = scalar_lea.hbm %s5255_s30, %s3093_s25 }
 0x631   : > { %740 = vrot.lane.b32.xlu1 %v4102_v19, %s3741_s29 }
 0x647   : > { %v2319_v51 = vpop.xlane.xlu0 %2318 }
 0x648   : > { %v2341_v49 = vsub.f32 %v4924_v59, %v2319_v51 }
 0x64a   : > { %v2349_v40 = vmul.f32 1.442695, %v2341_v49 }
 0x64c   : > { %3491 = vpow2.f32 %v2349_v40 }
 0x650   : > { %v2322_v25 = vpop.xlane.xlu1 %2321 }
 0x651   : > { %v2342_v57 = vsub.f32 %v4945_v41, %v2322_v25 }
 0x653   : > { %v2351_v20 = vmul.f32 1.442695, %v2342_v57 }
 0x655   : > { %3493 = vpow2.f32 %v2351_v20 }
 0x656   : > { %v5067_v60 = vpop.eup %3491 }
 0x657   : > { %v2365_v23 = vsel %vm642_vm1, %v5067_v60, 0.0 }
 0x658   : > { %2366 = vadd.xlane.f32.xlu0 %v2365_v23 }
 0x65f   : > { %v5071_v8 = vpop.eup %3493 }
 0x660   : > { %v2368_v52 = vsel %vm642_vm1, %v5071_v8, 0.0 }
 0x661   : > { %2369 = vadd.xlane.f32.xlu1 %v2368_v52 }
 0x682   : > { %v2325_v59 = vpop.xlane.xlu0 %2324 }
 0x683   : > { %v2343_v15 = vsub.f32 %v4966_v55, %v2325_v59 }
 0x685   : > { %v2353_v32 = vmul.f32 1.442695, %v2343_v15 }
 0x686   : > { %v2331_v33 = vpop.xlane.xlu0 %2330 }
 0x687   : > { %3495 = vpow2.f32 %v2353_v32  ;;  %v2345_v41 = vsub.f32 %v4985_v27, %v2331_v33 }
 0x689   : > { %v2357_v16 = vmul.f32 1.442695, %v2345_v41 }
 0x68a   : > { %v2328_v56 = vpop.xlane.xlu0 %2327 }
 0x68b   : > { %3497 = vpow2.f32 %v2357_v16  ;;  %v2344_v42 = vsub.f32 %v5002_v3, %v2328_v56 }
 0x68d   : > { %v2355_v28 = vmul.f32 1.442695, %v2344_v42 }
 0x68f   : > { %3499 = vpow2.f32 %v2355_v28 }
 0x691   : > { %v5078_v12 = vpop.eup %3495 }
 0x692   : > { %v2371_v17 = vsel %vm642_vm1, %v5078_v12, 0.0 }
 0x693   : > { %2372 = vadd.xlane.f32.xlu0 %v2371_v17 }
 0x695   : > { %v5082_v47 = vpop.eup %3497 }
 0x696   : > { %v2334_v55 = vpop.xlane.xlu1 %2333  ;;  %v2377_v22 = vsel %vm642_vm1, %v5082_v47, 0.0 }
 0x697   : > { %v2346_v27 = vsub.f32 %v5021_v6, %v2334_v55  ;;  %2378 = vadd.xlane.f32.xlu0 %v2377_v22 }
 0x699   : > { %v5087_v13 = vpop.eup %3499  ;;  %v2359_v3 = vmul.f32 1.442695, %v2346_v27 }
 0x69a   : > { %v2374_v1 = vsel %vm642_vm1, %v5087_v13, 0.0 }
 0x69b   : > { %3501 = vpow2.f32 %v2359_v3  ;;  %2375 = vadd.xlane.f32.xlu1 %v2374_v1 }
 0x69e   : > { %v2337_v31 = vpop.xlane.xlu0 %2336 }
 0x69f   : > { %v2347_v38 = vsub.f32 %v2309_v62, %v2337_v31 }
 0x6a1   : > { %v2361_v4 = vmul.f32 1.442695, %v2347_v38 }
 0x6a2   : > { %v733_v21 = vpop.permute.xlu0 %732 }
 0x6a3   : > { %3503 = vpow2.f32 %v2361_v4  ;;  %752 = vst.msk [vmem:[#allocation5 + $0x10] sm:$0xff] %vm642_vm1, %v733_v21 }
 0x6a5   : > { %v5092_v35 = vpop.eup %3501  ;;  %v2340_v0 = vpop.xlane.xlu1 %2339 }
 0x6a6   : > { %v2348_v30 = vsub.f32 %v2314_v36, %v2340_v0  ;;  %v2380_v54 = vsel %vm642_vm1, %v5092_v35, 0.0 }
 0x6a7   : > { %2381 = vadd.xlane.f32.xlu1 %v2380_v54 }
 0x6a8   : > { %v2363_v50 = vmul.f32 1.442695, %v2348_v30 }
 0x6a9   : > { %v735_v5 = vpop.permute.xlu1 %734 }
 0x6aa   : > { %3505 = vpow2.f32 %v2363_v50  ;;  %753 = vst.msk [vmem:[#allocation5 + $0x18] sm:$0xff] %vm642_vm1, %v735_v5  ;;  %v791_v26 = vld [vmem:[#allocation5 + $0x10] sm:$0xff] }
 0x6ad   : > { %v5097_v39 = vpop.eup %3503  ;;  %v739_v6 = vpop.permute.xlu1 %738 }
 0x6ae   : > { %754 = vst.msk [vmem:[#allocation5 + $0x20] sm:$0xff] %vm642_vm1, %v739_v6  ;;  %v2383_v43 = vsel %vm642_vm1, %v5097_v39, 0.0 }
 0x6af   : > { %2384 = vadd.xlane.f32.xlu0 %v2383_v43 }
 0x6b1   : > { %v741_v46 = vpop.permute.xlu1 %740  ;;  %v792_v44 = vld [vmem:[#allocation5 + $0x18] sm:$0xff] }
 0x6b2   : > { %755 = vst.msk [vmem:[#allocation5 + $0x28] sm:$0xff] %vm642_vm1, %v741_v46  ;;  %v3343_v11 = vpack.c.bf16 %v792_v44, %v791_v26  ;;  %v2785_v44 = vld [vmem:[#allocation12] sm:$0xff] }
 0x6b4   : > { %v5103_v14 = vpop.eup %3505  ;;  %3344 = vmatprep.subr.bf16.mxu1 %v3343_v11 }
 0x6b5   : > { %v2386_v2 = vsel %vm642_vm1, %v5103_v14, 0.0  ;;  %v793_v18 = vld [vmem:[#allocation5 + $0x20] sm:$0xff] }
 0x6b6   : > { %2387 = vadd.xlane.f32.xlu1 %v2386_v2 }
 0x6b9   : > { %v794_v48 = vld [vmem:[#allocation5 + $0x28] sm:$0xff] }
 0x6ba   : > { %v3347_v45 = vpack.c.bf16 %v794_v48, %v793_v18  ;;  %v2787_v18 = vld [vmem:[#allocation12 + $0x10] sm:$0xff]  ;;  %v2788_v48 = vld [vmem:[#allocation12 + $0x18] sm:$0xff] }
 0x6bc   : > { %3348 = vmatprep.subr.bf16.mxu0 %v3347_v45 }
 0x6bd   : > { %3350 = vmatpush3.bf16.msra.mxu0 %v3347_v45  ;;  %v3359_v45 = vpack.c.bf16 %v2788_v48, %v2787_v18 }
 0x6c5   : > { %744 = vrot.lane.b32.xlu0 %v4096_v10, %s3742_s11 }
 0x6c7   : > { %746 = vrot.lane.b32.xlu1 %v4102_v19, %s3742_s11 }
 0x6e5   : > { %v2367_v24 = vpop.xlane.xlu0 %2366 }
 0x6e6   : > { %3507 = vrcp.f32 %v2367_v24 }
 0x6ee   : > { %v2370_v62 = vpop.xlane.xlu1 %2369 }
 0x6ef   : > { %3509 = vrcp.f32 %v2370_v62 }
 0x6f0   : > { %v3508_v7 = vpop.eup %3507 }
 0x6f1   : > { %v2397_v9 = vmul.f32 %v3508_v7, %v2367_v24  ;;  %v2789_v24 = vld [vmem:[#allocation12 + $0x20] sm:$0xff] }
 0x6f3   : > { %v2405_v58 = vsub.f32 2.0, %v2397_v9  ;;  %v2792_v9 = vld [vmem:[#allocation12 + $0x38] sm:$0xff] }
 0x6f5   : > { %v2413_v63 = vmul.f32 %v3508_v7, %v2405_v58  ;;  %v2791_v7 = vld [vmem:[#allocation12 + $0x30] sm:$0xff] }
 0x6f6   : > { %v3367_v58 = vpack.c.bf16 %v2792_v9, %v2791_v7 }
 0x6f7   : > { %v2421_v34 = vmul.f32 %v5067_v60, %v2413_v63 }
 0x6f9   : > { %v3510_v61 = vpop.eup %3509  ;;  %3240 = vmatprep.mubr.msk.f32.mxu1 %vm642_vm1, %v2421_v34 }
 0x6fa   : > { %v2398_v53 = vmul.f32 %v3510_v61, %v2370_v62  ;;  %v2790_v62 = vld [vmem:[#allocation12 + $0x28] sm:$0xff] }
 0x6fc   : > { %v2406_v29 = vsub.f32 2.0, %v2398_v53 }
 0x6fe   : > { %v2414_v36 = vmul.f32 %v3510_v61, %v2406_v29 }
 0x700   : > { %v2422_v10 = vmul.f32 %v5071_v8, %v2414_v36 }
 0x702   : > { %3241 = vmatmul.mubr.msk.f32.vlgmr.msra.gmra.mrb[22].mxu1 %vm642_vm1, %v2422_v10 }
 0x703   : > { %3346 = vmatpush3.bf16.msra.mxu1 %v3343_v11  ;;  %v2786_v11 = vld [vmem:[#allocation12 + $0x8] sm:$0xff] }
 0x704   : > { %v3355_v2 = vpack.c.bf16 %v2786_v11, %v2785_v44 }
 0x706   : > { %3356 = vmatprep.subr.bf16.mxu0 %v3355_v2 }
 0x720   : > { %v2373_v19 = vpop.xlane.xlu0 %2372 }
 0x721   : > { %3511 = vrcp.f32 %v2373_v19 }
 0x724   : > { %v2379_v37 = vpop.xlane.xlu0 %2378 }
 0x725   : > { %3513 = vrcp.f32 %v2379_v37 }
 0x728   : > { %v2376_v51 = vpop.xlane.xlu1 %2375 }
 0x729   : > { %3515 = vrcp.f32 %v2376_v51 }
 0x72b   : > { %v3512_v49 = vpop.eup %3511 }
 0x72c   : > { %v2399_v40 = vmul.f32 %v3512_v49, %v2373_v19 }
 0x72e   : > { %v2407_v25 = vsub.f32 2.0, %v2399_v40 }
 0x72f   : > { %v3514_v57 = vpop.eup %3513 }
 0x730   : > { %v2415_v20 = vmul.f32 %v3512_v49, %v2407_v25  ;;  %v2401_v60 = vmul.f32 %v3514_v57, %v2379_v37 }
 0x732   : > { %v2423_v23 = vmul.f32 %v5078_v12, %v2415_v20  ;;  %v2409_v52 = vsub.f32 2.0, %v2401_v60 }
 0x733   : > { %v3516_v59 = vpop.eup %3515 }
 0x734   : > { %v2417_v8 = vmul.f32 %v3514_v57, %v2409_v52  ;;  %v2400_v15 = vmul.f32 %v3516_v59, %v2376_v51  ;;  %v2382_v32 = vpop.xlane.xlu1 %2381  ;;  %3247 = vmatprep.mubr.msk.f32.mxu1 %vm642_vm1, %v2423_v23  ;;  %v3084_v23 = vld [vmem:[%s5254_s13] ss:$0 sm:$0xff] }
 0x735   : > { %3517 = vrcp.f32 %v2382_v32 }
 0x736   : > { %v2425_v33 = vmul.f32 %v5082_v47, %v2417_v8  ;;  %v2408_v41 = vsub.f32 2.0, %v2400_v15 }
 0x738   : > { %v2416_v16 = vmul.f32 %v3516_v59, %v2408_v41  ;;  %3254 = vmatprep.mubr.msk.f32.mxu0 %vm642_vm1, %v2425_v33 }
 0x73a   : > { %v2424_v56 = vmul.f32 %v5087_v13, %v2416_v16 }
 0x73c   : > { %3248 = vmatmul.mubr.msk.f32.vlgmr.msra.gmra.mrb[24].mxu1 %vm642_vm1, %v2424_v56  ;;  %v2385_v42 = vpop.xlane.xlu0 %2384 }
 0x73d   : > { %3519 = vrcp.f32 %v2385_v42 }
 0x73f   : > { %v3518_v28 = vpop.eup %3517 }
 0x740   : > { %v2402_v12 = vmul.f32 %v3518_v28, %v2382_v32  ;;  %v745_v17 = vpop.permute.xlu0 %744 }
 0x741   : > { %756 = vst.msk [vmem:[#allocation5 + $0x30] sm:$0xff] %vm642_vm1, %v745_v17 }
 0x742   : > { %v2410_v55 = vsub.f32 2.0, %v2402_v12 }
 0x743   : > { %v2388_v22 = vpop.xlane.xlu1 %2387 }
 0x744   : > { %v2418_v27 = vmul.f32 %v3518_v28, %v2410_v55  ;;  %3521 = vrcp.f32 %v2388_v22 }
 0x746   : > { %v2426_v47 = vmul.f32 %v5092_v35, %v2418_v27 }
 0x747   : > { %v3520_v3 = vpop.eup %3519  ;;  %v747_v1 = vpop.permute.xlu1 %746 }
 0x748   : > { %v2403_v31 = vmul.f32 %v3520_v3, %v2385_v42  ;;  %757 = vst.msk [vmem:[#allocation5 + $0x38] sm:$0xff] %vm642_vm1, %v747_v1  ;;  %3255 = vmatmul.mubr.msk.f32.vlgmr.msra.gmra.mrb[14].mxu0 %vm642_vm1, %v2426_v47  ;;  %v795_v30 = vld [vmem:[#allocation5 + $0x30] sm:$0xff] }
 0x749   : > { %3358 = vmatpush3.bf16.msra.mxu0 %v3355_v2 }
 0x74a   : > { %v2411_v13 = vsub.f32 2.0, %v2403_v31  ;;  %3360 = vmatprep.subr.bf16.mxu0 %v3359_v45 }
 0x74c   : > { %v2419_v38 = vmul.f32 %v3520_v3, %v2411_v13 }
 0x74d   : > { %3362 = vmatpush3.bf16.msra.mxu0 %v3359_v45 }
 0x74e   : > { %v3522_v4 = vpop.eup %3521  ;;  %v2427_v21 = vmul.f32 %v5097_v39, %v2419_v38 }
 0x74f   : > { %v2404_v0 = vmul.f32 %v3522_v4, %v2388_v22  ;;  %v796_v54 = vld [vmem:[#allocation5 + $0x38] sm:$0xff] }
 0x750   : > { %3261 = vmatprep.mubr.msk.f32.mxu1 %vm642_vm1, %v2427_v21  ;;  %v3351_v50 = vpack.c.bf16 %v796_v54, %v795_v30 }
 0x751   : > { %v2412_v5 = vsub.f32 2.0, %v2404_v0 }
 0x752   : > { %3352 = vmatprep.subr.bf16.mxu1 %v3351_v50 }
 0x753   : > { %v2420_v35 = vmul.f32 %v3522_v4, %v2412_v5  ;;  %3354 = vmatpush3.bf16.msra.mxu1 %v3351_v50 }
 0x755   : > { %v2428_v6 = vmul.f32 %v5103_v14, %v2420_v35  ;;  %v3363_v14 = vpack.c.bf16 %v2790_v62, %v2789_v24 }
 0x757   : > { %3262 = vmatmul.mubr.msk.f32.vlgmr.msra.gmra.mrb[26].mxu1 %vm642_vm1, %v2428_v6  ;;  %3364 = vmatprep.subr.bf16.mxu0 %v3363_v14 }
 0x758   : > { %3366 = vmatpush3.bf16.msra.mxu0 %v3363_v14 }
 0x759   : > { %3368 = vmatprep.subr.bf16.mxu0 %v3367_v58 }
 0x75c   : > { %3370 = vmatpush3.bf16.msra.mxu0 %v3367_v58 }
 0x7d5   : > { %v3242_v43 = vpop.f32.mrb[22].mxu1 }
 0x7d6   : > { %v2501_v46 = vpop.f32.mrb[23].mxu1 }
 0x80f   : > { %v3249_v26 = vpop.f32.mrb[24].mxu1 }
 0x810   : > { %2757 = vrot.lane.b32.xlu1 %v3249_v26, %s3752_s27  ;;  %v2582_v39 = vpop.f32.mrb[25].mxu1 }
 0x811   : > { %2755 = vrot.lane.b32.xlu0 %v2582_v39, %s3752_s27  ;;  %s3637_s27 = scalar_lea.vmem %s5139_s23, 256 }
 0x812   : > { %p3638_p13 = scmp.ne.s32.totalorder %s5139_s23, %s3637_s27 }
 0x814   : > { %p3639_p6 = pnand %p3638_p13, %p3972_p3 }
 0x816   : > { %p3640_p10 = pneg %p3639_p6 }
 0x81b   : > { %v3256_v63 = vpop.f32.mrb[14].mxu0 }
 0x81c   : > { %2765 = vrot.lane.b32.xlu1 %v3256_v63, %s3753_s19  ;;  %v2663_v34 = vpop.f32.mrb[15].mxu0 }
 0x81d   : > { %2763 = vrot.lane.b32.xlu0 %v2663_v34, %s3753_s19  ;;  %s3755_s19 = smov [#allocation14]  }
 0x82a   : > { %v3263_v61 = vpop.f32.mrb[26].mxu1 }
 0x82b   : > { %2773 = vrot.lane.b32.xlu1 %v3263_v61, %s3754_s22  ;;  %v2744_v53 = vpop.f32.mrb[27].mxu1 }
 0x82c   : > { %2771 = vrot.lane.b32.xlu0 %v2744_v53, %s3754_s22  ;;  %s3641_s22 = sshll.u32 %s3755_s19, 4  ;;  %s3642_s22 = int_to_ptr.vmem [resolvable:$false] %s3641_s22 }
 0x82d   : > { %s3643_s20 = scalar_lea.vmem %s3642_s22, 512  ;;  %p3644_p11 = scmp.lt.s32.totalorder %s5139_s23, %s3642_s22 }
 0x82e   : > { %p3645_p5 = scmp.lt.s32.totalorder %s3643_s20, %s3637_s27 }
 0x830   : > { %p3646_p9 = por %p3645_p5, %p3644_p11 }
 0x832   : > { %p3647_p0 = pnand %p3646_p9, %p3640_p10 }
 0x882   : > { %v2758_v29 = vpop.permute.xlu1 %2757 }
 0x883   : > { %v2756_v36 = vpop.permute.xlu0 %2755  ;;  %v2778_v49 = vsel %vm642_vm1, %v3242_v43, %v2758_v29 }
 0x884   : > { %v2777_v37 = vsel %vm642_vm1, %v2501_v46, %v2756_v36 }
 0x88e   : > { %v2766_v10 = vpop.permute.xlu1 %2765 }
 0x88f   : > { %v2764_v19 = vpop.permute.xlu0 %2763  ;;  %v2781_v57 = vsel %vm2779_vm6, %v2778_v49, %v2766_v10 }
 0x890   : > { %v2780_v40 = vsel %vm2779_vm6, %v2777_v37, %v2764_v19 }
 0x89d   : > { %v2774_v51 = vpop.permute.xlu1 %2773 }
 0x89e   : > { %v2772_v25 = vpop.permute.xlu0 %2771  ;;  %v2784_v60 = vsel %vm2782_vm7, %v2781_v57, %v2774_v51 }
 0x89f   : > { %v2783_v20 = vsel %vm2782_vm7, %v2780_v40, %v2772_v25 }
 0x8a0   : > { %3280 = vmatprep.mubr.msk.f32.mxu0 %vm443_vm0, %v2783_v20 }
 0x8a1   : > { %3281 = vmatmul.mubr.msk.f32.vlgmr.msra.gmra.mrb[16].mxu0 %vm443_vm0, %v2784_v60 }
 0x974   : > { %v3282_v52 = vpop.f32.mrb[16].mxu0 }
 0x975   : > { %v2879_v59 = vadd.f32 %v3282_v52, %v3084_v23  ;;  %v2873_v8 = vpop.f32.mrb[17].mxu0 }
 0x976   : > { %v2874_v15 = vadd.f32 %v3084_v23, %v2873_v8 }
 0x977   : > { %2883 = vst.msk [vmem:[%s435_s21 + $0x8] sm:$0xff] %vm443_vm0, %v2879_v59 }
 0x978   : > { %2882 = vst.msk [vmem:[%s435_s21] sm:$0xff] %vm443_vm0, %v2874_v15 }
 0x979   : > { %3650 = shalt.err (!%p3647_p0)
}
 0x97a   : > { %s3651_s29 = scalar_lea.hbm %s5144_s1, 256  ;;  %s3655_s21 = scalar_lea.hbm %s5255_s30, 512 }
 0x97b   : > { %p3652_p4 = scmp.ne.s32.totalorder %s5144_s1, %s3651_s29  ;;  %p3656_p12 = scmp.lt.u32.totalorder %s5144_s1, %s5255_s30 }
 0x97c   : > { %p3657_p1 = scmp.lt.u32.totalorder %s3655_s21, %s3651_s29  ;;  %p3659_p13 = scmp.lt.u32.totalorder %s3651_s29, %s5144_s1 }
 0x97d   : > { %p3653_p2 = pnand %p3652_p4, %p3972_p3 }
 0x97e   : > { %p3658_p7 = por %p3657_p1, %p3656_p12 }
 0x97f   : > { %p3654_p8 = pneg %p3653_p2 }
 0x980   : > { %p3660_p6 = por %p3659_p13, %p3658_p7 }
 0x982   : > { %p3661_p10 = pnand %p3660_p6, %p3654_p8 }
 0x984   : > { %3664 = shalt.err (!%p3661_p10)
}
 0x985   : > { %s3756_s9 = smov 128  }
 0x986   : > { %3385 = dma.vmem_to_hbm [thread:$0]  (%p3972_p3), %s5139_s23, 256, %s5144_s1, %s2885_s6, %s3756_s9, %s3756_s9, %s3751_s28  }
 0x987 PF: > { %s5256_s27 = sld [smem:[#allocation19_spill]]  ;;  %s5257_s19 = sld [smem:[#allocation21_spill]] }
 0x988   : > { %p5259_p5 = scmp.ge.s32.totalorder %s3727_s18, 2 }
 0x98d   : > { %s2915_s22 = sand.u32 1, %s5256_s27   ;;  %p5258_p11 = scmp.ne.s32.totalorder %s5257_s19, 0 }
 0x98e   : > { %s2916_s20 = scalar_lea.sflag [#allocation8], %s2915_s22 }
 0x98f   : > { %p3402_p9 = pnand %p5259_p5, %p5258_p11 }
 0x991   : > { %3702 = dma.done.wait (!%p3402_p9), %s2916_s20, 256  }
 0x992   : > { %3704 = vsyncadd (!%p3402_p9), %s2916_s20, 4294967040  ;;  %s28_s18 = sadd.s32 1, %s3727_s18   ;;  %s5260_s13 = smov %s3711_s14 }
 0x993   : > { %p25_p0 = scmp.ge.s32.totalorder %s28_s18, 4   ;;  %s5261_s14 = smov %s3715_s15 }
 0x994   : > { %s5262_s15 = smov %s3981_s26  ;;  %s5263_s16 = smov %s3723_s17 }
 0x995   : > { %s5264_s17 = smov %s5266_s24  ;;  %27 = sbr.rel (!%p25_p0) target bundleno = 13 (0xd), region = 123 }
 0x99c   :  { %2921 = vsyncpa [#allocation7], 1 }
 0x99d   :  { %2923 = vsyncpa [#allocation7 + $0x1], 1 }
 0x99e   :  { %2924 = vsyncpa [#allocation10], 1 }
 0x99f   :  { %2925 = vsyncpa [#allocation13], 1 }
 0x9a0   :  { %2926 = vsyncpa [#allocation8], 1 }
 0x9a1   :  { %2928 = vsyncpa [#allocation8 + $0x1], 1 }

</bundles_post_ra>
